<compile_context>
chip_gen: v6e
topology: v6e:2x2x1
jax: 0.10.0
libtpu: 0.0.40
codegen_flags: <defaults>
</compile_context>

<pallas_src>
import functools

import jax
import jax.numpy as jnp
from jax import lax
from jax.experimental import pallas as pl
from jax.experimental.pallas import tpu as pltpu


# Batch grid is embarrassingly parallel -> let megacore (v7x) shard it.
_PARALLEL_B = pltpu.CompilerParams(dimension_semantics=("parallel",))


def _rep_spec(shape):
    """BlockSpec for a weight that is replicated across the batch grid."""
    zeros = (0,) * len(shape)
    return pl.BlockSpec(shape, lambda b, _z=zeros: _z)


# --------------------------------------------------------------------------
# In-kernel building blocks (everything stays in VMEM)
# --------------------------------------------------------------------------
def _pairwise_dist(x):
    """d[i, j] = |x_j|^2 - 2 x_i.x_j  (the |x_i|^2 row constant is dropped: argmin-invariant)."""
    gram = lax.dot_general(x, x, (((1,), (1,)), ((), ())),
                           preferred_element_type=jnp.float32)            # (N, N): x_i . x_j
    ones = jnp.ones((1, x.shape[1]), jnp.float32)
    sq_row = lax.dot_general(ones, x * x, (((1,), (1,)), ((), ())),
                             preferred_element_type=jnp.float32)          # (1, N): |x_j|^2, lane-major
    return sq_row - 2.0 * gram


def _knn_gather_max(d, xwn, k, per_neighbour=None):
    """max over the k nearest neighbours (incl. self) of f(projected neighbour feature).

    One XLU min-reduce per neighbour; the chosen rows are gathered with a one-hot (exact in bf16)
    matmul against the already-projected neighbour features `xwn` (bf16), accumulating in f32.
    TODO(synk): exact duplicate points tie the row-min and would be gathered summed / consume one
                k slot together; irrelevant for continuous data (torch.topk tie order is also
                unspecified).
    """
    acc = None
    for j in range(k):
        mn = jnp.min(d, axis=-1, keepdims=True)                  # (N, 1) single reduce / neighbour
        sel = d <= mn                                            # one-hot rows
        oh = sel.astype(jnp.float32).astype(jnp.bfloat16)
        nbr = jnp.dot(oh, xwn, preferred_element_type=jnp.float32)   # (N, Cout) gather on bf16 MXU
        h = nbr if per_neighbour is None else per_neighbour(nbr)
        acc = h if acc is None else jnp.maximum(acc, h)
        if j + 1 < k:
            d = jnp.where(sel, jnp.inf, d)                       # mask chosen neighbour
    return acc


def _edge_conv_block(x, w_base, w_nbr, bias, k):
    """EdgeConvBlockV2: max_j relu(x_i @ (wc-wd)*s + x_j @ wd*s + b) over the k nearest j.

    The `base +` add and the ReLU are hoisted out of the k-loop (they commute with the max).
    """
    d = _pairwise_dist(x)
    base = jnp.dot(x, w_base, preferred_element_type=jnp.float32) + bias       # (N, Cout)
    xwn = jnp.dot(x, w_nbr, preferred_element_type=jnp.float32).astype(jnp.bfloat16)
    nbr_max = _knn_gather_max(d, xwn, k)                                       # pure gather + max
    return jnp.maximum(base + nbr_max, 0.0)


def _tnet_edge_conv(x, w_base1, w_nbr1, b1, w2, b2, k):
    """TNet edge conv: BOTH SharedMLP convs are applied per-neighbour, max over k afterwards
    (matches the reference: edge_conv(get_edge_feature(x)) then torch.max(x, 3)), so the second
    conv cannot be hoisted out of the k-loop."""
    d = _pairwise_dist(x)
    base = jnp.dot(x, w_base1, preferred_element_type=jnp.float32) + b1        # (N, H1)
    xwn = jnp.dot(x, w_nbr1, preferred_element_type=jnp.float32).astype(jnp.bfloat16)

    def per_neighbour(nbr):
        h1 = jnp.maximum(base + nbr, 0.0)
        return jnp.maximum(jnp.dot(h1, w2, preferred_element_type=jnp.float32) + b2, 0.0)

    return _knn_gather_max(d, xwn, k, per_neighbour)


# --------------------------------------------------------------------------
# Kernel 1: fused TNet (kNN + 2-layer edge conv + local MLP + max + global MLP + Linear)
# --------------------------------------------------------------------------
def _tnet_kernel(x_ref, wb1_ref, wn1_ref, b1_ref, w2_ref, b2_ref,
                 lw_ref, lb_ref, gw1_ref, gb1_ref, gw2_ref, gb2_ref,
                 linw_ref, linb_ref, out_ref, *, k):
    x = x_ref[0]                                                               # (N, C)
    feat = _tnet_edge_conv(x, wb1_ref[...], wn1_ref[...], b1_ref[...],
                           w2_ref[...], b2_ref[...], k)                        # (N, H2)
    h = jnp.maximum(jnp.dot(feat, lw_ref[...], preferred_element_type=jnp.float32)
                    + lb_ref[...], 0.0)                                        # (N, L)
    mx = jnp.max(h, axis=0, keepdims=True)                                     # (1, L)
    g = jnp.maximum(jnp.dot(mx, gw1_ref[...], preferred_element_type=jnp.float32)
                    + gb1_ref[...], 0.0)
    g = jnp.maximum(jnp.dot(g, gw2_ref[...], preferred_element_type=jnp.float32)
                    + gb2_ref[...], 0.0)
    out_ref[0] = jnp.dot(g, linw_ref[...], preferred_element_type=jnp.float32) + linb_ref[...]


def tnet_pallas(x_t, weights, k):
    B, N, C = x_t.shape
    CC = C * C
    return pl.pallas_call(
        functools.partial(_tnet_kernel, k=k),
        out_shape=jax.ShapeDtypeStruct((B, 1, CC), jnp.float32),
        grid=(B,),
        in_specs=[pl.BlockSpec((1, N, C), lambda b: (b, 0, 0))]
                 + [_rep_spec(w.shape) for w in weights],
        out_specs=pl.BlockSpec((1, 1, CC), lambda b: (b, 0, 0)),
        compiler_params=_PARALLEL_B,
    )(x_t, *weights)


# --------------------------------------------------------------------------
# Kernel 2: fused main path (transform + 4 edge-conv blocks + concat + local MLP
#                            + max/argmax + global MLP + classifier)
# --------------------------------------------------------------------------
def _dgcnn_main_kernel(*refs, k, n_blocks):
    t_ref, x_ref = refs[0], refs[1]
    pos = 2
    blk_refs = [refs[pos + 3 * i: pos + 3 * i + 3] for i in range(n_blocks)]
    pos += 3 * n_blocks
    wl_refs = refs[pos: pos + n_blocks]
    pos += n_blocks
    bl_ref, gw1_ref, gb1_ref, gw2_ref, gb2_ref, cw_ref, cb_ref = refs[pos: pos + 7]
    logit_ref, idx_ref = refs[pos + 7], refs[pos + 8]

    # bmm(trans, x) in channels-last == x_t @ trans^T (trans pre-transposed host-side)
    cur = jnp.dot(x_ref[0], t_ref[0], preferred_element_type=jnp.float32)      # (N, C)

    # Edge-conv chain; the feature concat is fused away:
    #   cat(feats, -1) @ W_local == sum_i feat_i @ W_local[row-slice of block i]
    acc = None
    for (wb_ref, wn_ref, bb_ref), wl_ref in zip(blk_refs, wl_refs):
        cur = _edge_conv_block(cur, wb_ref[...], wn_ref[...], bb_ref[...], k)
        contrib = jnp.dot(cur, wl_ref[...], preferred_element_type=jnp.float32)
        acc = contrib if acc is None else acc + contrib

    h = jnp.maximum(acc + bl_ref[...], 0.0)                                    # (N, F) mlp_local
    mx = jnp.max(h, axis=0, keepdims=True)                                     # (1, F)
    row = lax.broadcasted_iota(jnp.int32, h.shape, 0)
    idx = jnp.min(jnp.where(h >= mx, row, h.shape[0]), axis=0, keepdims=True)  # first arg-max
    g = jnp.maximum(jnp.dot(mx, gw1_ref[...], preferred_element_type=jnp.float32)
                    + gb1_ref[...], 0.0)
    g = jnp.maximum(jnp.dot(g, gw2_ref[...], preferred_element_type=jnp.float32)
                    + gb2_ref[...], 0.0)
    logit_ref[0] = jnp.dot(g, cw_ref[...], preferred_element_type=jnp.float32) + cb_ref[...]
    idx_ref[0] = idx


def dgcnn_main_pallas(x_t, trans_t, block_ws, wl_slices, tail_ws, k):
    B, N, C = x_t.shape
    F = tail_ws[0].shape[1]        # mlp_local bias (1, F)
    nc = tail_ws[-1].shape[1]      # classifier bias (1, num_classes)
    n_blocks = len(block_ws)

    inputs = [trans_t, x_t]
    in_specs = [pl.BlockSpec((1, C, C), lambda b: (b, 0, 0)),
                pl.BlockSpec((1, N, C), lambda b: (b, 0, 0))]
    for w in [w for blk in block_ws for w in blk] + list(wl_slices) + list(tail_ws):
        inputs.append(w)
        in_specs.append(_rep_spec(w.shape))

    logit, idx = pl.pallas_call(
        functools.partial(_dgcnn_main_kernel, k=k, n_blocks=n_blocks),
        out_shape=(jax.ShapeDtypeStruct((B, 1, nc), jnp.float32),
                   jax.ShapeDtypeStruct((B, 1, F), jnp.int32)),
        grid=(B,),
        in_specs=in_specs,
        out_specs=(pl.BlockSpec((1, 1, nc), lambda b: (b, 0, 0)),
                   pl.BlockSpec((1, 1, F), lambda b: (b, 0, 0))),
        compiler_params=_PARALLEL_B,
    )(*inputs)
    return logit[:, 0, :], idx[:, 0, :]


# --------------------------------------------------------------------------
# Parameter construction (deterministic, synthetic; BN folded eval-mode)
# --------------------------------------------------------------------------
def _glorot(key, shape):
    fan_in, fan_out = shape
    lim = (6.0 / (fan_in + fan_out)) ** 0.5
    return jax.random.uniform(key, shape, jnp.float32, -lim, lim)


def _affine(key, c):
    k1, k2 = jax.random.split(key)
    scale = 1.0 + 0.1 * jax.random.normal(k1, (1, c), jnp.float32)   # folded BN gamma/sqrt(var+eps)
    bias = 0.1 * jax.random.normal(k2, (1, c), jnp.float32)          # folded conv bias + BN beta
    return scale, bias


def make_params(key, in_channels, num_classes,
                edge_conv_channels=(16, 16, 16, 32), inter_channels=64,
                global_channels=(32, 16),
                tnet_conv=(16, 32), tnet_local=64, tnet_global=(32, 16)):
    keys = iter(jax.random.split(key, 64))
    p = {}

    # ---- TNet ----
    tn = {}
    tn['wc1'] = _glorot(next(keys), (in_channels, tnet_conv[0]))
    tn['wd1'] = _glorot(next(keys), (in_channels, tnet_conv[0]))
    tn['s1'], tn['b1'] = _affine(next(keys), tnet_conv[0])
    tn['w2'] = _glorot(next(keys), (tnet_conv[0], tnet_conv[1]))
    tn['s2'], tn['b2'] = _affine(next(keys), tnet_conv[1])
    tn['local_w'] = _glorot(next(keys), (tnet_conv[1], tnet_local))
    tn['local_s'], tn['local_b'] = _affine(next(keys), tnet_local)
    tn['g_w1'] = _glorot(next(keys), (tnet_local, tnet_global[0]))
    tn['g_s1'], tn['g_b1'] = _affine(next(keys), tnet_global[0])
    tn['g_w2'] = _glorot(next(keys), (tnet_global[0], tnet_global[1]))
    tn['g_s2'], tn['g_b2'] = _affine(next(keys), tnet_global[1])
    # faithful to TNet.init_weights(): final linear zero-initialized -> transform = identity
    tn['lin_w'] = jnp.zeros((tnet_global[1], in_channels * in_channels), jnp.float32)
    tn['lin_b'] = jnp.zeros((1, in_channels * in_channels), jnp.float32)
    p['tnet'] = tn

    # ---- edge conv blocks ----
    blocks = []
    cin = in_channels
    for cout in edge_conv_channels:
        blk = {'wc': _glorot(next(keys), (cin, cout)),
               'wd': _glorot(next(keys), (cin, cout))}
        blk['s'], blk['b'] = _affine(next(keys), cout)
        blocks.append(blk)
        cin = cout
    p['edge_blocks'] = blocks

    # ---- mlp_local (Conv1d 1x1 + BN + ReLU) ----
    p['local_w'] = _glorot(next(keys), (sum(edge_conv_channels), inter_channels))
    p['local_s'], p['local_b'] = _affine(next(keys), inter_channels)

    # ---- mlp_global + classifier ----
    p['g_w1'] = _glorot(next(keys), (inter_channels, global_channels[0]))
    p['g_s1'], p['g_b1'] = _affine(next(keys), global_channels[0])
    p['g_w2'] = _glorot(next(keys), (global_channels[0], global_channels[1]))
    p['g_s2'], p['g_b2'] = _affine(next(keys), global_channels[1])
    p['cls_w'] = _glorot(next(keys), (global_channels[1], num_classes))
    p['cls_b'] = 0.1 * jax.random.normal(next(keys), (1, num_classes), jnp.float32)
    return p


# --------------------------------------------------------------------------
# Forward passes
# --------------------------------------------------------------------------
def tnet_forward(x_t, tn, k):
    B, N, C = x_t.shape
    # Fold BN scale into weights; fold the "- x @ wd" self term into (wc - wd).
    wb1 = (tn['wc1'] - tn['wd1']) * tn['s1']
    wn1 = tn['wd1'] * tn['s1']
    w2 = tn['w2'] * tn['s2']
    weights = [wb1, wn1, tn['b1'], w2, tn['b2'],
               tn['local_w'] * tn['local_s'], tn['local_b'],
               tn['g_w1'] * tn['g_s1'], tn['g_b1'],
               tn['g_w2'] * tn['g_s2'], tn['g_b2'],
               tn['lin_w'], tn['lin_b']]
    out = tnet_pallas(x_t, weights, k)                                 # (B, 1, C*C)
    trans = out[:, 0, :].reshape(B, C, C) + jnp.eye(C, dtype=jnp.float32)
    return trans


def dgcnn_forward(points, params, k):
    # points: (B, C, N)  -- matches the PyTorch data_batch['points'] layout
    x_t = jnp.transpose(points, (0, 2, 1)).astype(jnp.float32)         # (B, N, C)

    trans = tnet_forward(x_t, params['tnet'], k)                        # (B, C, C)
    trans_t = jnp.transpose(trans, (0, 2, 1))                           # kernel computes x @ trans^T

    block_ws = []
    for blk in params['edge_blocks']:
        block_ws.append(((blk['wc'] - blk['wd']) * blk['s'], blk['wd'] * blk['s'], blk['b']))

    # split the mlp_local weight row-wise per block -> in-kernel concat becomes a sum of matmuls
    wl_full = params['local_w'] * params['local_s']
    wl_slices, off = [], 0
    for blk in params['edge_blocks']:
        cout = blk['wc'].shape[1]
        wl_slices.append(wl_full[off:off + cout])
        off += cout

    tail_ws = (params['local_b'],
               params['g_w1'] * params['g_s1'], params['g_b1'],
               params['g_w2'] * params['g_s2'], params['g_b2'],
               params['cls_w'], params['cls_b'])

    logits, max_idx = dgcnn_main_pallas(x_t, trans_t, block_ws, wl_slices, tail_ws, k)

    return {'cls_logit': logits,
            'trans_input': trans,
            'key_point_inds': max_idx}


# --------------------------------------------------------------------------
if __name__ == "__main__":
    B, C_IN, N, K = 2, 3, 32, 8
    NUM_CLASSES = 10

    key = jax.random.PRNGKey(0)
    k_pts, k_par = jax.random.split(key)
    points = jax.random.normal(k_pts, (B, C_IN, N), jnp.float32)       # (B, C, N) like PyTorch
    params = make_params(k_par, C_IN, NUM_CLASSES)

    fwd = jax.jit(functools.partial(dgcnn_forward, k=K))
    preds = jax.block_until_ready(fwd(points, params))

    assert preds['cls_logit'].shape == (B, NUM_CLASSES)
    assert preds['trans_input'].shape == (B, C_IN, C_IN)
    assert preds['key_point_inds'].shape == (B, 64)
    assert bool(jnp.all(jnp.isfinite(preds['cls_logit'])))
    print("KERNEL_OK")
</pallas_src>

<mosaic_0001>
module attributes {stable_mosaic.version = 11 : i64} {
  func.func @_tnet_kernel(%arg0: i32, %arg1: memref<1x32x3xf32, #tpu.memory_space<vmem>>, %arg2: memref<3x16xf32, #tpu.memory_space<vmem>>, %arg3: memref<3x16xf32, #tpu.memory_space<vmem>>, %arg4: memref<1x16xf32, #tpu.memory_space<vmem>>, %arg5: memref<16x32xf32, #tpu.memory_space<vmem>>, %arg6: memref<1x32xf32, #tpu.memory_space<vmem>>, %arg7: memref<32x64xf32, #tpu.memory_space<vmem>>, %arg8: memref<1x64xf32, #tpu.memory_space<vmem>>, %arg9: memref<64x32xf32, #tpu.memory_space<vmem>>, %arg10: memref<1x32xf32, #tpu.memory_space<vmem>>, %arg11: memref<32x16xf32, #tpu.memory_space<vmem>>, %arg12: memref<1x16xf32, #tpu.memory_space<vmem>>, %arg13: memref<16x9xf32, #tpu.memory_space<vmem>>, %arg14: memref<1x9xf32, #tpu.memory_space<vmem>>, %arg15: memref<1x1x9xf32, #tpu.memory_space<vmem>>) attributes {dimension_semantics = [#tpu.dimension_semantics<parallel>], iteration_bounds = array<i64: 2>, scalar_prefetch = 0 : i64, scratch_operands = 0 : i64, tpu.core_type = #tpu.core_type<tc>, window_params = [{transform_indices = @transform_0, window_bounds = array<i64: 1, 32, 3>}, {pipeline_mode = #tpu.pipeline_mode<synchronous>, transform_indices = @transform_1, window_bounds = array<i64: 3, 16>}, {pipeline_mode = #tpu.pipeline_mode<synchronous>, transform_indices = @transform_2, window_bounds = array<i64: 3, 16>}, {pipeline_mode = #tpu.pipeline_mode<synchronous>, transform_indices = @transform_3, window_bounds = array<i64: 1, 16>}, {pipeline_mode = #tpu.pipeline_mode<synchronous>, transform_indices = @transform_4, window_bounds = array<i64: 16, 32>}, {pipeline_mode = #tpu.pipeline_mode<synchronous>, transform_indices = @transform_5, window_bounds = array<i64: 1, 32>}, {pipeline_mode = #tpu.pipeline_mode<synchronous>, transform_indices = @transform_6, window_bounds = array<i64: 32, 64>}, {pipeline_mode = #tpu.pipeline_mode<synchronous>, transform_indices = @transform_7, window_bounds = array<i64: 1, 64>}, {pipeline_mode = #tpu.pipeline_mode<synchronous>, transform_indices = @transform_8, window_bounds = array<i64: 64, 32>}, {pipeline_mode = #tpu.pipeline_mode<synchronous>, transform_indices = @transform_9, window_bounds = array<i64: 1, 32>}, {pipeline_mode = #tpu.pipeline_mode<synchronous>, transform_indices = @transform_10, window_bounds = array<i64: 32, 16>}, {pipeline_mode = #tpu.pipeline_mode<synchronous>, transform_indices = @transform_11, window_bounds = array<i64: 1, 16>}, {pipeline_mode = #tpu.pipeline_mode<synchronous>, transform_indices = @transform_12, window_bounds = array<i64: 16, 9>}, {pipeline_mode = #tpu.pipeline_mode<synchronous>, transform_indices = @transform_13, window_bounds = array<i64: 1, 9>}, {transform_indices = @transform_14, window_bounds = array<i64: 1, 1, 9>}]} {
    %c0 = arith.constant 0 : index
    %c0_0 = arith.constant 0 : index
    %c0_1 = arith.constant 0 : index
    %0 = vector.load %arg1[%c0, %c0_0, %c0_1] : memref<1x32x3xf32, #tpu.memory_space<vmem>>, vector<1x32x3xf32>
    %1 = vector.shape_cast %0 : vector<1x32x3xf32> to vector<32x3xf32>
    %c0_2 = arith.constant 0 : index
    %c0_3 = arith.constant 0 : index
    %2 = vector.load %arg2[%c0_2, %c0_3] : memref<3x16xf32, #tpu.memory_space<vmem>>, vector<3x16xf32>
    %c0_4 = arith.constant 0 : index
    %c0_5 = arith.constant 0 : index
    %3 = vector.load %arg3[%c0_4, %c0_5] : memref<3x16xf32, #tpu.memory_space<vmem>>, vector<3x16xf32>
    %c0_6 = arith.constant 0 : index
    %c0_7 = arith.constant 0 : index
    %4 = vector.load %arg4[%c0_6, %c0_7] : memref<1x16xf32, #tpu.memory_space<vmem>>, vector<1x16xf32>
    %c0_8 = arith.constant 0 : index
    %c0_9 = arith.constant 0 : index
    %5 = vector.load %arg5[%c0_8, %c0_9] : memref<16x32xf32, #tpu.memory_space<vmem>>, vector<16x32xf32>
    %c0_10 = arith.constant 0 : index
    %c0_11 = arith.constant 0 : index
    %6 = vector.load %arg6[%c0_10, %c0_11] : memref<1x32xf32, #tpu.memory_space<vmem>>, vector<1x32xf32>
    %cst = arith.constant dense<0.000000e+00> : vector<32x32xf32>
    %7 = tpu.matmul %1, %1, %cst {dimension_numbers = #tpu.dot_dimension_numbers<[1], [1], [0], [0], [0, 0, 1, 0], [], []>} : vector<32x3xf32>, vector<32x3xf32>, vector<32x32xf32> -> vector<32x32xf32>
    %cst_12 = arith.constant 1.000000e+00 : f32
    %8 = vector.broadcast %cst_12 : f32 to vector<1x3xf32>
    %9 = arith.mulf %1, %1 : vector<32x3xf32>
    %cst_13 = arith.constant dense<0.000000e+00> : vector<1x32xf32>
    %10 = tpu.matmul %8, %9, %cst_13 {dimension_numbers = #tpu.dot_dimension_numbers<[1], [1], [0], [0], [0, 0, 1, 0], [], []>} : vector<1x3xf32>, vector<32x3xf32>, vector<1x32xf32> -> vector<1x32xf32>
    %cst_14 = arith.constant 2.000000e+00 : f32
    %11 = vector.broadcast %cst_14 : f32 to vector<32x32xf32>
    %12 = arith.mulf %11, %7 : vector<32x32xf32>
    %13 = vector.broadcast %10 : vector<1x32xf32> to vector<32x32xf32>
    %14 = arith.subf %13, %12 : vector<32x32xf32>
    %cst_15 = arith.constant dense<0.000000e+00> : vector<32x16xf32>
    %15 = tpu.matmul %1, %2, %cst_15 {dimension_numbers = #tpu.dot_dimension_numbers<[1], [0], [0], [1], [0, 0, 1, 1], [], []>} : vector<32x3xf32>, vector<3x16xf32>, vector<32x16xf32> -> vector<32x16xf32>
    %16 = vector.broadcast %4 : vector<1x16xf32> to vector<32x16xf32>
    %17 = arith.addf %15, %16 : vector<32x16xf32>
    %cst_16 = arith.constant dense<0.000000e+00> : vector<32x16xf32>
    %18 = tpu.matmul %1, %3, %cst_16 {dimension_numbers = #tpu.dot_dimension_numbers<[1], [0], [0], [1], [0, 0, 1, 1], [], []>} : vector<32x3xf32>, vector<3x16xf32>, vector<32x16xf32> -> vector<32x16xf32>
    %19 = arith.truncf %18 : vector<32x16xf32> to vector<32x16xbf16>
    %cst_17 = arith.constant dense<0x7F800000> : vector<32xf32>
    %20 = vector.multi_reduction <minimumf>, %14, %cst_17 [1] : vector<32x32xf32> to vector<32xf32>
    %21 = vector.shape_cast %20 : vector<32xf32> to vector<32x1xf32>
    %22 = vector.broadcast %21 : vector<32x1xf32> to vector<32x32xf32>
    %23 = arith.cmpf ole, %14, %22 : vector<32x32xf32>
    %24 = arith.extui %23 : vector<32x32xi1> to vector<32x32xi32>
    %25 = arith.sitofp %24 : vector<32x32xi32> to vector<32x32xf32>
    %26 = arith.truncf %25 : vector<32x32xf32> to vector<32x32xbf16>
    %cst_18 = arith.constant dense<0.000000e+00> : vector<32x16xf32>
    %27 = tpu.matmul %26, %19, %cst_18 {dimension_numbers = #tpu.dot_dimension_numbers<[1], [0], [0], [1], [0, 0, 1, 1], [], []>} : vector<32x32xbf16>, vector<32x16xbf16>, vector<32x16xf32> -> vector<32x16xf32>
    %28 = arith.addf %17, %27 : vector<32x16xf32>
    %cst_19 = arith.constant 0.000000e+00 : f32
    %29 = vector.broadcast %cst_19 : f32 to vector<32x16xf32>
    %30 = arith.maximumf %28, %29 : vector<32x16xf32>
    %cst_20 = arith.constant dense<0.000000e+00> : vector<32x32xf32>
    %31 = tpu.matmul %30, %5, %cst_20 {dimension_numbers = #tpu.dot_dimension_numbers<[1], [0], [0], [1], [0, 0, 1, 1], [], []>} : vector<32x16xf32>, vector<16x32xf32>, vector<32x32xf32> -> vector<32x32xf32>
    %32 = vector.broadcast %6 : vector<1x32xf32> to vector<32x32xf32>
    %33 = arith.addf %31, %32 : vector<32x32xf32>
    %cst_21 = arith.constant 0.000000e+00 : f32
    %34 = vector.broadcast %cst_21 : f32 to vector<32x32xf32>
    %35 = arith.maximumf %33, %34 : vector<32x32xf32>
    %cst_22 = arith.constant 0x7F800000 : f32
    %36 = vector.broadcast %cst_22 : f32 to vector<32x32xf32>
    %37 = arith.select %23, %36, %14 : vector<32x32xi1>, vector<32x32xf32>
    %cst_23 = arith.constant dense<0x7F800000> : vector<32xf32>
    %38 = vector.multi_reduction <minimumf>, %37, %cst_23 [1] : vector<32x32xf32> to vector<32xf32>
    %39 = vector.shape_cast %38 : vector<32xf32> to vector<32x1xf32>
    %40 = vector.broadcast %39 : vector<32x1xf32> to vector<32x32xf32>
    %41 = arith.cmpf ole, %37, %40 : vector<32x32xf32>
    %42 = arith.extui %41 : vector<32x32xi1> to vector<32x32xi32>
    %43 = arith.sitofp %42 : vector<32x32xi32> to vector<32x32xf32>
    %44 = arith.truncf %43 : vector<32x32xf32> to vector<32x32xbf16>
    %cst_24 = arith.constant dense<0.000000e+00> : vector<32x16xf32>
    %45 = tpu.matmul %44, %19, %cst_24 {dimension_numbers = #tpu.dot_dimension_numbers<[1], [0], [0], [1], [0, 0, 1, 1], [], []>} : vector<32x32xbf16>, vector<32x16xbf16>, vector<32x16xf32> -> vector<32x16xf32>
    %46 = arith.addf %17, %45 : vector<32x16xf32>
    %cst_25 = arith.constant 0.000000e+00 : f32
    %47 = vector.broadcast %cst_25 : f32 to vector<32x16xf32>
    %48 = arith.maximumf %46, %47 : vector<32x16xf32>
    %cst_26 = arith.constant dense<0.000000e+00> : vector<32x32xf32>
    %49 = tpu.matmul %48, %5, %cst_26 {dimension_numbers = #tpu.dot_dimension_numbers<[1], [0], [0], [1], [0, 0, 1, 1], [], []>} : vector<32x16xf32>, vector<16x32xf32>, vector<32x32xf32> -> vector<32x32xf32>
    %50 = vector.broadcast %6 : vector<1x32xf32> to vector<32x32xf32>
    %51 = arith.addf %49, %50 : vector<32x32xf32>
    %cst_27 = arith.constant 0.000000e+00 : f32
    %52 = vector.broadcast %cst_27 : f32 to vector<32x32xf32>
    %53 = arith.maximumf %51, %52 : vector<32x32xf32>
    %54 = arith.maximumf %35, %53 : vector<32x32xf32>
    %cst_28 = arith.constant 0x7F800000 : f32
    %55 = vector.broadcast %cst_28 : f32 to vector<32x32xf32>
    %56 = arith.select %41, %55, %37 : vector<32x32xi1>, vector<32x32xf32>
    %cst_29 = arith.constant dense<0x7F800000> : vector<32xf32>
    %57 = vector.multi_reduction <minimumf>, %56, %cst_29 [1] : vector<32x32xf32> to vector<32xf32>
    %58 = vector.shape_cast %57 : vector<32xf32> to vector<32x1xf32>
    %59 = vector.broadcast %58 : vector<32x1xf32> to vector<32x32xf32>
    %60 = arith.cmpf ole, %56, %59 : vector<32x32xf32>
    %61 = arith.extui %60 : vector<32x32xi1> to vector<32x32xi32>
    %62 = arith.sitofp %61 : vector<32x32xi32> to vector<32x32xf32>
    %63 = arith.truncf %62 : vector<32x32xf32> to vector<32x32xbf16>
    %cst_30 = arith.constant dense<0.000000e+00> : vector<32x16xf32>
    %64 = tpu.matmul %63, %19, %cst_30 {dimension_numbers = #tpu.dot_dimension_numbers<[1], [0], [0], [1], [0, 0, 1, 1], [], []>} : vector<32x32xbf16>, vector<32x16xbf16>, vector<32x16xf32> -> vector<32x16xf32>
    %65 = arith.addf %17, %64 : vector<32x16xf32>
    %cst_31 = arith.constant 0.000000e+00 : f32
    %66 = vector.broadcast %cst_31 : f32 to vector<32x16xf32>
    %67 = arith.maximumf %65, %66 : vector<32x16xf32>
    %cst_32 = arith.constant dense<0.000000e+00> : vector<32x32xf32>
    %68 = tpu.matmul %67, %5, %cst_32 {dimension_numbers = #tpu.dot_dimension_numbers<[1], [0], [0], [1], [0, 0, 1, 1], [], []>} : vector<32x16xf32>, vector<16x32xf32>, vector<32x32xf32> -> vector<32x32xf32>
    %69 = vector.broadcast %6 : vector<1x32xf32> to vector<32x32xf32>
    %70 = arith.addf %68, %69 : vector<32x32xf32>
    %cst_33 = arith.constant 0.000000e+00 : f32
    %71 = vector.broadcast %cst_33 : f32 to vector<32x32xf32>
    %72 = arith.maximumf %70, %71 : vector<32x32xf32>
    %73 = arith.maximumf %54, %72 : vector<32x32xf32>
    %cst_34 = arith.constant 0x7F800000 : f32
    %74 = vector.broadcast %cst_34 : f32 to vector<32x32xf32>
    %75 = arith.select %60, %74, %56 : vector<32x32xi1>, vector<32x32xf32>
    %cst_35 = arith.constant dense<0x7F800000> : vector<32xf32>
    %76 = vector.multi_reduction <minimumf>, %75, %cst_35 [1] : vector<32x32xf32> to vector<32xf32>
    %77 = vector.shape_cast %76 : vector<32xf32> to vector<32x1xf32>
    %78 = vector.broadcast %77 : vector<32x1xf32> to vector<32x32xf32>
    %79 = arith.cmpf ole, %75, %78 : vector<32x32xf32>
    %80 = arith.extui %79 : vector<32x32xi1> to vector<32x32xi32>
    %81 = arith.sitofp %80 : vector<32x32xi32> to vector<32x32xf32>
    %82 = arith.truncf %81 : vector<32x32xf32> to vector<32x32xbf16>
    %cst_36 = arith.constant dense<0.000000e+00> : vector<32x16xf32>
    %83 = tpu.matmul %82, %19, %cst_36 {dimension_numbers = #tpu.dot_dimension_numbers<[1], [0], [0], [1], [0, 0, 1, 1], [], []>} : vector<32x32xbf16>, vector<32x16xbf16>, vector<32x16xf32> -> vector<32x16xf32>
    %84 = arith.addf %17, %83 : vector<32x16xf32>
    %cst_37 = arith.constant 0.000000e+00 : f32
    %85 = vector.broadcast %cst_37 : f32 to vector<32x16xf32>
    %86 = arith.maximumf %84, %85 : vector<32x16xf32>
    %cst_38 = arith.constant dense<0.000000e+00> : vector<32x32xf32>
    %87 = tpu.matmul %86, %5, %cst_38 {dimension_numbers = #tpu.dot_dimension_numbers<[1], [0], [0], [1], [0, 0, 1, 1], [], []>} : vector<32x16xf32>, vector<16x32xf32>, vector<32x32xf32> -> vector<32x32xf32>
    %88 = vector.broadcast %6 : vector<1x32xf32> to vector<32x32xf32>
    %89 = arith.addf %87, %88 : vector<32x32xf32>
    %cst_39 = arith.constant 0.000000e+00 : f32
    %90 = vector.broadcast %cst_39 : f32 to vector<32x32xf32>
    %91 = arith.maximumf %89, %90 : vector<32x32xf32>
    %92 = arith.maximumf %73, %91 : vector<32x32xf32>
    %cst_40 = arith.constant 0x7F800000 : f32
    %93 = vector.broadcast %cst_40 : f32 to vector<32x32xf32>
    %94 = arith.select %79, %93, %75 : vector<32x32xi1>, vector<32x32xf32>
    %cst_41 = arith.constant dense<0x7F800000> : vector<32xf32>
    %95 = vector.multi_reduction <minimumf>, %94, %cst_41 [1] : vector<32x32xf32> to vector<32xf32>
    %96 = vector.shape_cast %95 : vector<32xf32> to vector<32x1xf32>
    %97 = vector.broadcast %96 : vector<32x1xf32> to vector<32x32xf32>
    %98 = arith.cmpf ole, %94, %97 : vector<32x32xf32>
    %99 = arith.extui %98 : vector<32x32xi1> to vector<32x32xi32>
    %100 = arith.sitofp %99 : vector<32x32xi32> to vector<32x32xf32>
    %101 = arith.truncf %100 : vector<32x32xf32> to vector<32x32xbf16>
    %cst_42 = arith.constant dense<0.000000e+00> : vector<32x16xf32>
    %102 = tpu.matmul %101, %19, %cst_42 {dimension_numbers = #tpu.dot_dimension_numbers<[1], [0], [0], [1], [0, 0, 1, 1], [], []>} : vector<32x32xbf16>, vector<32x16xbf16>, vector<32x16xf32> -> vector<32x16xf32>
    %103 = arith.addf %17, %102 : vector<32x16xf32>
    %cst_43 = arith.constant 0.000000e+00 : f32
    %104 = vector.broadcast %cst_43 : f32 to vector<32x16xf32>
    %105 = arith.maximumf %103, %104 : vector<32x16xf32>
    %cst_44 = arith.constant dense<0.000000e+00> : vector<32x32xf32>
    %106 = tpu.matmul %105, %5, %cst_44 {dimension_numbers = #tpu.dot_dimension_numbers<[1], [0], [0], [1], [0, 0, 1, 1], [], []>} : vector<32x16xf32>, vector<16x32xf32>, vector<32x32xf32> -> vector<32x32xf32>
    %107 = vector.broadcast %6 : vector<1x32xf32> to vector<32x32xf32>
    %108 = arith.addf %106, %107 : vector<32x32xf32>
    %cst_45 = arith.constant 0.000000e+00 : f32
    %109 = vector.broadcast %cst_45 : f32 to vector<32x32xf32>
    %110 = arith.maximumf %108, %109 : vector<32x32xf32>
    %111 = arith.maximumf %92, %110 : vector<32x32xf32>
    %cst_46 = arith.constant 0x7F800000 : f32
    %112 = vector.broadcast %cst_46 : f32 to vector<32x32xf32>
    %113 = arith.select %98, %112, %94 : vector<32x32xi1>, vector<32x32xf32>
    %cst_47 = arith.constant dense<0x7F800000> : vector<32xf32>
    %114 = vector.multi_reduction <minimumf>, %113, %cst_47 [1] : vector<32x32xf32> to vector<32xf32>
    %115 = vector.shape_cast %114 : vector<32xf32> to vector<32x1xf32>
    %116 = vector.broadcast %115 : vector<32x1xf32> to vector<32x32xf32>
    %117 = arith.cmpf ole, %113, %116 : vector<32x32xf32>
    %118 = arith.extui %117 : vector<32x32xi1> to vector<32x32xi32>
    %119 = arith.sitofp %118 : vector<32x32xi32> to vector<32x32xf32>
    %120 = arith.truncf %119 : vector<32x32xf32> to vector<32x32xbf16>
    %cst_48 = arith.constant dense<0.000000e+00> : vector<32x16xf32>
    %121 = tpu.matmul %120, %19, %cst_48 {dimension_numbers = #tpu.dot_dimension_numbers<[1], [0], [0], [1], [0, 0, 1, 1], [], []>} : vector<32x32xbf16>, vector<32x16xbf16>, vector<32x16xf32> -> vector<32x16xf32>
    %122 = arith.addf %17, %121 : vector<32x16xf32>
    %cst_49 = arith.constant 0.000000e+00 : f32
    %123 = vector.broadcast %cst_49 : f32 to vector<32x16xf32>
    %124 = arith.maximumf %122, %123 : vector<32x16xf32>
    %cst_50 = arith.constant dense<0.000000e+00> : vector<32x32xf32>
    %125 = tpu.matmul %124, %5, %cst_50 {dimension_numbers = #tpu.dot_dimension_numbers<[1], [0], [0], [1], [0, 0, 1, 1], [], []>} : vector<32x16xf32>, vector<16x32xf32>, vector<32x32xf32> -> vector<32x32xf32>
    %126 = vector.broadcast %6 : vector<1x32xf32> to vector<32x32xf32>
    %127 = arith.addf %125, %126 : vector<32x32xf32>
    %cst_51 = arith.constant 0.000000e+00 : f32
    %128 = vector.broadcast %cst_51 : f32 to vector<32x32xf32>
    %129 = arith.maximumf %127, %128 : vector<32x32xf32>
    %130 = arith.maximumf %111, %129 : vector<32x32xf32>
    %cst_52 = arith.constant 0x7F800000 : f32
    %131 = vector.broadcast %cst_52 : f32 to vector<32x32xf32>
    %132 = arith.select %117, %131, %113 : vector<32x32xi1>, vector<32x32xf32>
    %cst_53 = arith.constant dense<0x7F800000> : vector<32xf32>
    %133 = vector.multi_reduction <minimumf>, %132, %cst_53 [1] : vector<32x32xf32> to vector<32xf32>
    %134 = vector.shape_cast %133 : vector<32xf32> to vector<32x1xf32>
    %135 = vector.broadcast %134 : vector<32x1xf32> to vector<32x32xf32>
    %136 = arith.cmpf ole, %132, %135 : vector<32x32xf32>
    %137 = arith.extui %136 : vector<32x32xi1> to vector<32x32xi32>
    %138 = arith.sitofp %137 : vector<32x32xi32> to vector<32x32xf32>
    %139 = arith.truncf %138 : vector<32x32xf32> to vector<32x32xbf16>
    %cst_54 = arith.constant dense<0.000000e+00> : vector<32x16xf32>
    %140 = tpu.matmul %139, %19, %cst_54 {dimension_numbers = #tpu.dot_dimension_numbers<[1], [0], [0], [1], [0, 0, 1, 1], [], []>} : vector<32x32xbf16>, vector<32x16xbf16>, vector<32x16xf32> -> vector<32x16xf32>
    %141 = arith.addf %17, %140 : vector<32x16xf32>
    %cst_55 = arith.constant 0.000000e+00 : f32
    %142 = vector.broadcast %cst_55 : f32 to vector<32x16xf32>
    %143 = arith.maximumf %141, %142 : vector<32x16xf32>
    %cst_56 = arith.constant dense<0.000000e+00> : vector<32x32xf32>
    %144 = tpu.matmul %143, %5, %cst_56 {dimension_numbers = #tpu.dot_dimension_numbers<[1], [0], [0], [1], [0, 0, 1, 1], [], []>} : vector<32x16xf32>, vector<16x32xf32>, vector<32x32xf32> -> vector<32x32xf32>
    %145 = vector.broadcast %6 : vector<1x32xf32> to vector<32x32xf32>
    %146 = arith.addf %144, %145 : vector<32x32xf32>
    %cst_57 = arith.constant 0.000000e+00 : f32
    %147 = vector.broadcast %cst_57 : f32 to vector<32x32xf32>
    %148 = arith.maximumf %146, %147 : vector<32x32xf32>
    %149 = arith.maximumf %130, %148 : vector<32x32xf32>
    %cst_58 = arith.constant 0x7F800000 : f32
    %150 = vector.broadcast %cst_58 : f32 to vector<32x32xf32>
    %151 = arith.select %136, %150, %132 : vector<32x32xi1>, vector<32x32xf32>
    %cst_59 = arith.constant dense<0x7F800000> : vector<32xf32>
    %152 = vector.multi_reduction <minimumf>, %151, %cst_59 [1] : vector<32x32xf32> to vector<32xf32>
    %153 = vector.shape_cast %152 : vector<32xf32> to vector<32x1xf32>
    %154 = vector.broadcast %153 : vector<32x1xf32> to vector<32x32xf32>
    %155 = arith.cmpf ole, %151, %154 : vector<32x32xf32>
    %156 = arith.extui %155 : vector<32x32xi1> to vector<32x32xi32>
    %157 = arith.sitofp %156 : vector<32x32xi32> to vector<32x32xf32>
    %158 = arith.truncf %157 : vector<32x32xf32> to vector<32x32xbf16>
    %cst_60 = arith.constant dense<0.000000e+00> : vector<32x16xf32>
    %159 = tpu.matmul %158, %19, %cst_60 {dimension_numbers = #tpu.dot_dimension_numbers<[1], [0], [0], [1], [0, 0, 1, 1], [], []>} : vector<32x32xbf16>, vector<32x16xbf16>, vector<32x16xf32> -> vector<32x16xf32>
    %160 = arith.addf %17, %159 : vector<32x16xf32>
    %cst_61 = arith.constant 0.000000e+00 : f32
    %161 = vector.broadcast %cst_61 : f32 to vector<32x16xf32>
    %162 = arith.maximumf %160, %161 : vector<32x16xf32>
    %cst_62 = arith.constant dense<0.000000e+00> : vector<32x32xf32>
    %163 = tpu.matmul %162, %5, %cst_62 {dimension_numbers = #tpu.dot_dimension_numbers<[1], [0], [0], [1], [0, 0, 1, 1], [], []>} : vector<32x16xf32>, vector<16x32xf32>, vector<32x32xf32> -> vector<32x32xf32>
    %164 = vector.broadcast %6 : vector<1x32xf32> to vector<32x32xf32>
    %165 = arith.addf %163, %164 : vector<32x32xf32>
    %cst_63 = arith.constant 0.000000e+00 : f32
    %166 = vector.broadcast %cst_63 : f32 to vector<32x32xf32>
    %167 = arith.maximumf %165, %166 : vector<32x32xf32>
    %168 = arith.maximumf %149, %167 : vector<32x32xf32>
    %c0_64 = arith.constant 0 : index
    %c0_65 = arith.constant 0 : index
    %169 = vector.load %arg7[%c0_64, %c0_65] : memref<32x64xf32, #tpu.memory_space<vmem>>, vector<32x64xf32>
    %cst_66 = arith.constant dense<0.000000e+00> : vector<32x64xf32>
    %170 = tpu.matmul %168, %169, %cst_66 {dimension_numbers = #tpu.dot_dimension_numbers<[1], [0], [0], [1], [0, 0, 1, 1], [], []>} : vector<32x32xf32>, vector<32x64xf32>, vector<32x64xf32> -> vector<32x64xf32>
    %c0_67 = arith.constant 0 : index
    %c0_68 = arith.constant 0 : index
    %171 = vector.load %arg8[%c0_67, %c0_68] : memref<1x64xf32, #tpu.memory_space<vmem>>, vector<1x64xf32>
    %172 = vector.broadcast %171 : vector<1x64xf32> to vector<32x64xf32>
    %173 = arith.addf %170, %172 : vector<32x64xf32>
    %cst_69 = arith.constant 0.000000e+00 : f32
    %174 = vector.broadcast %cst_69 : f32 to vector<32x64xf32>
    %175 = arith.maximumf %173, %174 : vector<32x64xf32>
    %cst_70 = arith.constant dense<0xFF800000> : vector<64xf32>
    %176 = vector.multi_reduction <maximumf>, %175, %cst_70 [0] : vector<32x64xf32> to vector<64xf32>
    %177 = vector.shape_cast %176 : vector<64xf32> to vector<1x64xf32>
    %c0_71 = arith.constant 0 : index
    %c0_72 = arith.constant 0 : index
    %178 = vector.load %arg9[%c0_71, %c0_72] : memref<64x32xf32, #tpu.memory_space<vmem>>, vector<64x32xf32>
    %cst_73 = arith.constant dense<0.000000e+00> : vector<1x32xf32>
    %179 = tpu.matmul %177, %178, %cst_73 {dimension_numbers = #tpu.dot_dimension_numbers<[1], [0], [0], [1], [0, 0, 1, 1], [], []>} : vector<1x64xf32>, vector<64x32xf32>, vector<1x32xf32> -> vector<1x32xf32>
    %c0_74 = arith.constant 0 : index
    %c0_75 = arith.constant 0 : index
    %180 = vector.load %arg10[%c0_74, %c0_75] : memref<1x32xf32, #tpu.memory_space<vmem>>, vector<1x32xf32>
    %181 = arith.addf %179, %180 : vector<1x32xf32>
    %cst_76 = arith.constant 0.000000e+00 : f32
    %182 = vector.broadcast %cst_76 : f32 to vector<1x32xf32>
    %183 = arith.maximumf %181, %182 : vector<1x32xf32>
    %c0_77 = arith.constant 0 : index
    %c0_78 = arith.constant 0 : index
    %184 = vector.load %arg11[%c0_77, %c0_78] : memref<32x16xf32, #tpu.memory_space<vmem>>, vector<32x16xf32>
    %cst_79 = arith.constant dense<0.000000e+00> : vector<1x16xf32>
    %185 = tpu.matmul %183, %184, %cst_79 {dimension_numbers = #tpu.dot_dimension_numbers<[1], [0], [0], [1], [0, 0, 1, 1], [], []>} : vector<1x32xf32>, vector<32x16xf32>, vector<1x16xf32> -> vector<1x16xf32>
    %c0_80 = arith.constant 0 : index
    %c0_81 = arith.constant 0 : index
    %186 = vector.load %arg12[%c0_80, %c0_81] : memref<1x16xf32, #tpu.memory_space<vmem>>, vector<1x16xf32>
    %187 = arith.addf %185, %186 : vector<1x16xf32>
    %cst_82 = arith.constant 0.000000e+00 : f32
    %188 = vector.broadcast %cst_82 : f32 to vector<1x16xf32>
    %189 = arith.maximumf %187, %188 : vector<1x16xf32>
    %c0_83 = arith.constant 0 : index
    %c0_84 = arith.constant 0 : index
    %190 = vector.load %arg13[%c0_83, %c0_84] : memref<16x9xf32, #tpu.memory_space<vmem>>, vector<16x9xf32>
    %cst_85 = arith.constant dense<0.000000e+00> : vector<1x9xf32>
    %191 = tpu.matmul %189, %190, %cst_85 {dimension_numbers = #tpu.dot_dimension_numbers<[1], [0], [0], [1], [0, 0, 1, 1], [], []>} : vector<1x16xf32>, vector<16x9xf32>, vector<1x9xf32> -> vector<1x9xf32>
    %c0_86 = arith.constant 0 : index
    %c0_87 = arith.constant 0 : index
    %192 = vector.load %arg14[%c0_86, %c0_87] : memref<1x9xf32, #tpu.memory_space<vmem>>, vector<1x9xf32>
    %193 = arith.addf %191, %192 : vector<1x9xf32>
    %c0_88 = arith.constant 0 : index
    %c0_89 = arith.constant 0 : index
    %c0_90 = arith.constant 0 : index
    %194 = vector.load %arg15[%c0_88, %c0_89, %c0_90] : memref<1x1x9xf32, #tpu.memory_space<vmem>>, vector<1x1x9xf32>
    %195 = vector.shape_cast %194 : vector<1x1x9xf32> to vector<1x9xf32>
    %196 = vector.shape_cast %193 : vector<1x9xf32> to vector<1x1x9xf32>
    tpu.vector_store %arg15[%c0_88, %c0_89, %c0_90], %196 {strides = array<i32>} : memref<1x1x9xf32, #tpu.memory_space<vmem>>, vector<1x1x9xf32>,
    return
  }
  func.func @transform_0(%arg0: i32) -> (i32, i32, i32) {
    %c0_i32 = arith.constant 0 : i32
    %c0_i32_0 = arith.constant 0 : i32
    %c0_i32_1 = arith.constant 0 : i32
    return %arg0, %c0_i32, %c0_i32_0 : i32, i32, i32
  }
  func.func @transform_1(%arg0: i32) -> (i32, i32) {
    %c0_i32 = arith.constant 0 : i32
    %c0_i32_0 = arith.constant 0 : i32
    %c0_i32_1 = arith.constant 0 : i32
    return %c0_i32, %c0_i32_0 : i32, i32
  }
  func.func @transform_2(%arg0: i32) -> (i32, i32) {
    %c0_i32 = arith.constant 0 : i32
    %c0_i32_0 = arith.constant 0 : i32
    %c0_i32_1 = arith.constant 0 : i32
    return %c0_i32, %c0_i32_0 : i32, i32
  }
  func.func @transform_3(%arg0: i32) -> (i32, i32) {
    %c0_i32 = arith.constant 0 : i32
    %c0_i32_0 = arith.constant 0 : i32
    %c0_i32_1 = arith.constant 0 : i32
    return %c0_i32, %c0_i32_0 : i32, i32
  }
  func.func @transform_4(%arg0: i32) -> (i32, i32) {
    %c0_i32 = arith.constant 0 : i32
    %c0_i32_0 = arith.constant 0 : i32
    %c0_i32_1 = arith.constant 0 : i32
    return %c0_i32, %c0_i32_0 : i32, i32
  }
  func.func @transform_5(%arg0: i32) -> (i32, i32) {
    %c0_i32 = arith.constant 0 : i32
    %c0_i32_0 = arith.constant 0 : i32
    %c0_i32_1 = arith.constant 0 : i32
    return %c0_i32, %c0_i32_0 : i32, i32
  }
  func.func @transform_6(%arg0: i32) -> (i32, i32) {
    %c0_i32 = arith.constant 0 : i32
    %c0_i32_0 = arith.constant 0 : i32
    %c0_i32_1 = arith.constant 0 : i32
    return %c0_i32, %c0_i32_0 : i32, i32
  }
  func.func @transform_7(%arg0: i32) -> (i32, i32) {
    %c0_i32 = arith.constant 0 : i32
    %c0_i32_0 = arith.constant 0 : i32
    %c0_i32_1 = arith.constant 0 : i32
    return %c0_i32, %c0_i32_0 : i32, i32
  }
  func.func @transform_8(%arg0: i32) -> (i32, i32) {
    %c0_i32 = arith.constant 0 : i32
    %c0_i32_0 = arith.constant 0 : i32
    %c0_i32_1 = arith.constant 0 : i32
    return %c0_i32, %c0_i32_0 : i32, i32
  }
  func.func @transform_9(%arg0: i32) -> (i32, i32) {
    %c0_i32 = arith.constant 0 : i32
    %c0_i32_0 = arith.constant 0 : i32
    %c0_i32_1 = arith.constant 0 : i32
    return %c0_i32, %c0_i32_0 : i32, i32
  }
  func.func @transform_10(%arg0: i32) -> (i32, i32) {
    %c0_i32 = arith.constant 0 : i32
    %c0_i32_0 = arith.constant 0 : i32
    %c0_i32_1 = arith.constant 0 : i32
    return %c0_i32, %c0_i32_0 : i32, i32
  }
  func.func @transform_11(%arg0: i32) -> (i32, i32) {
    %c0_i32 = arith.constant 0 : i32
    %c0_i32_0 = arith.constant 0 : i32
    %c0_i32_1 = arith.constant 0 : i32
    return %c0_i32, %c0_i32_0 : i32, i32
  }
  func.func @transform_12(%arg0: i32) -> (i32, i32) {
    %c0_i32 = arith.constant 0 : i32
    %c0_i32_0 = arith.constant 0 : i32
    %c0_i32_1 = arith.constant 0 : i32
    return %c0_i32, %c0_i32_0 : i32, i32
  }
  func.func @transform_13(%arg0: i32) -> (i32, i32) {
    %c0_i32 = arith.constant 0 : i32
    %c0_i32_0 = arith.constant 0 : i32
    %c0_i32_1 = arith.constant 0 : i32
    return %c0_i32, %c0_i32_0 : i32, i32
  }
  func.func @transform_14(%arg0: i32) -> (i32, i32, i32) {
    %c0_i32 = arith.constant 0 : i32
    %c0_i32_0 = arith.constant 0 : i32
    %c0_i32_1 = arith.constant 0 : i32
    return %arg0, %c0_i32, %c0_i32_0 : i32, i32, i32
  }
}

module attributes {stable_mosaic.version = 11 : i64} {
  func.func @_dgcnn_main_kernel(%arg0: i32, %arg1: memref<1x3x3xf32, #tpu.memory_space<vmem>>, %arg2: memref<1x32x3xf32, #tpu.memory_space<vmem>>, %arg3: memref<3x16xf32, #tpu.memory_space<vmem>>, %arg4: memref<3x16xf32, #tpu.memory_space<vmem>>, %arg5: memref<1x16xf32, #tpu.memory_space<vmem>>, %arg6: memref<16x16xf32, #tpu.memory_space<vmem>>, %arg7: memref<16x16xf32, #tpu.memory_space<vmem>>, %arg8: memref<1x16xf32, #tpu.memory_space<vmem>>, %arg9: memref<16x16xf32, #tpu.memory_space<vmem>>, %arg10: memref<16x16xf32, #tpu.memory_space<vmem>>, %arg11: memref<1x16xf32, #tpu.memory_space<vmem>>, %arg12: memref<16x32xf32, #tpu.memory_space<vmem>>, %arg13: memref<16x32xf32, #tpu.memory_space<vmem>>, %arg14: memref<1x32xf32, #tpu.memory_space<vmem>>, %arg15: memref<16x64xf32, #tpu.memory_space<vmem>>, %arg16: memref<16x64xf32, #tpu.memory_space<vmem>>, %arg17: memref<16x64xf32, #tpu.memory_space<vmem>>, %arg18: memref<32x64xf32, #tpu.memory_space<vmem>>, %arg19: memref<1x64xf32, #tpu.memory_space<vmem>>, %arg20: memref<64x32xf32, #tpu.memory_space<vmem>>, %arg21: memref<1x32xf32, #tpu.memory_space<vmem>>, %arg22: memref<32x16xf32, #tpu.memory_space<vmem>>, %arg23: memref<1x16xf32, #tpu.memory_space<vmem>>, %arg24: memref<16x10xf32, #tpu.memory_space<vmem>>, %arg25: memref<1x10xf32, #tpu.memory_space<vmem>>, %arg26: memref<1x1x10xf32, #tpu.memory_space<vmem>>, %arg27: memref<1x1x64xi32, #tpu.memory_space<vmem>>) attributes {dimension_semantics = [#tpu.dimension_semantics<parallel>], iteration_bounds = array<i64: 2>, scalar_prefetch = 0 : i64, scratch_operands = 0 : i64, tpu.core_type = #tpu.core_type<tc>, window_params = [{transform_indices = @transform_0, window_bounds = array<i64: 1, 3, 3>}, {transform_indices = @transform_1, window_bounds = array<i64: 1, 32, 3>}, {pipeline_mode = #tpu.pipeline_mode<synchronous>, transform_indices = @transform_2, window_bounds = array<i64: 3, 16>}, {pipeline_mode = #tpu.pipeline_mode<synchronous>, transform_indices = @transform_3, window_bounds = array<i64: 3, 16>}, {pipeline_mode = #tpu.pipeline_mode<synchronous>, transform_indices = @transform_4, window_bounds = array<i64: 1, 16>}, {pipeline_mode = #tpu.pipeline_mode<synchronous>, transform_indices = @transform_5, window_bounds = array<i64: 16, 16>}, {pipeline_mode = #tpu.pipeline_mode<synchronous>, transform_indices = @transform_6, window_bounds = array<i64: 16, 16>}, {pipeline_mode = #tpu.pipeline_mode<synchronous>, transform_indices = @transform_7, window_bounds = array<i64: 1, 16>}, {pipeline_mode = #tpu.pipeline_mode<synchronous>, transform_indices = @transform_8, window_bounds = array<i64: 16, 16>}, {pipeline_mode = #tpu.pipeline_mode<synchronous>, transform_indices = @transform_9, window_bounds = array<i64: 16, 16>}, {pipeline_mode = #tpu.pipeline_mode<synchronous>, transform_indices = @transform_10, window_bounds = array<i64: 1, 16>}, {pipeline_mode = #tpu.pipeline_mode<synchronous>, transform_indices = @transform_11, window_bounds = array<i64: 16, 32>}, {pipeline_mode = #tpu.pipeline_mode<synchronous>, transform_indices = @transform_12, window_bounds = array<i64: 16, 32>}, {pipeline_mode = #tpu.pipeline_mode<synchronous>, transform_indices = @transform_13, window_bounds = array<i64: 1, 32>}, {pipeline_mode = #tpu.pipeline_mode<synchronous>, transform_indices = @transform_14, window_bounds = array<i64: 16, 64>}, {pipeline_mode = #tpu.pipeline_mode<synchronous>, transform_indices = @transform_15, window_bounds = array<i64: 16, 64>}, {pipeline_mode = #tpu.pipeline_mode<synchronous>, transform_indices = @transform_16, window_bounds = array<i64: 16, 64>}, {pipeline_mode = #tpu.pipeline_mode<synchronous>, transform_indices = @transform_17, window_bounds = array<i64: 32, 64>}, {pipeline_mode = #tpu.pipeline_mode<synchronous>, transform_indices = @transform_18, window_bounds = array<i64: 1, 64>}, {pipeline_mode = #tpu.pipeline_mode<synchronous>, transform_indices = @transform_19, window_bounds = array<i64: 64, 32>}, {pipeline_mode = #tpu.pipeline_mode<synchronous>, transform_indices = @transform_20, window_bounds = array<i64: 1, 32>}, {pipeline_mode = #tpu.pipeline_mode<synchronous>, transform_indices = @transform_21, window_bounds = array<i64: 32, 16>}, {pipeline_mode = #tpu.pipeline_mode<synchronous>, transform_indices = @transform_22, window_bounds = array<i64: 1, 16>}, {pipeline_mode = #tpu.pipeline_mode<synchronous>, transform_indices = @transform_23, window_bounds = array<i64: 16, 10>}, {pipeline_mode = #tpu.pipeline_mode<synchronous>, transform_indices = @transform_24, window_bounds = array<i64: 1, 10>}, {transform_indices = @transform_25, window_bounds = array<i64: 1, 1, 10>}, {transform_indices = @transform_26, window_bounds = array<i64: 1, 1, 64>}]} {
    %c0 = arith.constant 0 : index
    %c0_0 = arith.constant 0 : index
    %c0_1 = arith.constant 0 : index
    %0 = vector.load %arg2[%c0, %c0_0, %c0_1] : memref<1x32x3xf32, #tpu.memory_space<vmem>>, vector<1x32x3xf32>
    %1 = vector.shape_cast %0 : vector<1x32x3xf32> to vector<32x3xf32>
    %c0_2 = arith.constant 0 : index
    %c0_3 = arith.constant 0 : index
    %c0_4 = arith.constant 0 : index
    %2 = vector.load %arg1[%c0_2, %c0_3, %c0_4] : memref<1x3x3xf32, #tpu.memory_space<vmem>>, vector<1x3x3xf32>
    %3 = vector.shape_cast %2 : vector<1x3x3xf32> to vector<3x3xf32>
    %cst = arith.constant dense<0.000000e+00> : vector<32x3xf32>
    %4 = tpu.matmul %1, %3, %cst {dimension_numbers = #tpu.dot_dimension_numbers<[1], [0], [0], [1], [0, 0, 1, 1], [], []>} : vector<32x3xf32>, vector<3x3xf32>, vector<32x3xf32> -> vector<32x3xf32>
    %c0_5 = arith.constant 0 : index
    %c0_6 = arith.constant 0 : index
    %5 = vector.load %arg3[%c0_5, %c0_6] : memref<3x16xf32, #tpu.memory_space<vmem>>, vector<3x16xf32>
    %c0_7 = arith.constant 0 : index
    %c0_8 = arith.constant 0 : index
    %6 = vector.load %arg4[%c0_7, %c0_8] : memref<3x16xf32, #tpu.memory_space<vmem>>, vector<3x16xf32>
    %c0_9 = arith.constant 0 : index
    %c0_10 = arith.constant 0 : index
    %7 = vector.load %arg5[%c0_9, %c0_10] : memref<1x16xf32, #tpu.memory_space<vmem>>, vector<1x16xf32>
    %cst_11 = arith.constant dense<0.000000e+00> : vector<32x32xf32>
    %8 = tpu.matmul %4, %4, %cst_11 {dimension_numbers = #tpu.dot_dimension_numbers<[1], [1], [0], [0], [0, 0, 1, 0], [], []>} : vector<32x3xf32>, vector<32x3xf32>, vector<32x32xf32> -> vector<32x32xf32>
    %cst_12 = arith.constant 1.000000e+00 : f32
    %9 = vector.broadcast %cst_12 : f32 to vector<1x3xf32>
    %10 = arith.mulf %4, %4 : vector<32x3xf32>
    %cst_13 = arith.constant dense<0.000000e+00> : vector<1x32xf32>
    %11 = tpu.matmul %9, %10, %cst_13 {dimension_numbers = #tpu.dot_dimension_numbers<[1], [1], [0], [0], [0, 0, 1, 0], [], []>} : vector<1x3xf32>, vector<32x3xf32>, vector<1x32xf32> -> vector<1x32xf32>
    %cst_14 = arith.constant 2.000000e+00 : f32
    %12 = vector.broadcast %cst_14 : f32 to vector<32x32xf32>
    %13 = arith.mulf %12, %8 : vector<32x32xf32>
    %14 = vector.broadcast %11 : vector<1x32xf32> to vector<32x32xf32>
    %15 = arith.subf %14, %13 : vector<32x32xf32>
    %cst_15 = arith.constant dense<0.000000e+00> : vector<32x16xf32>
    %16 = tpu.matmul %4, %5, %cst_15 {dimension_numbers = #tpu.dot_dimension_numbers<[1], [0], [0], [1], [0, 0, 1, 1], [], []>} : vector<32x3xf32>, vector<3x16xf32>, vector<32x16xf32> -> vector<32x16xf32>
    %17 = vector.broadcast %7 : vector<1x16xf32> to vector<32x16xf32>
    %18 = arith.addf %16, %17 : vector<32x16xf32>
    %cst_16 = arith.constant dense<0.000000e+00> : vector<32x16xf32>
    %19 = tpu.matmul %4, %6, %cst_16 {dimension_numbers = #tpu.dot_dimension_numbers<[1], [0], [0], [1], [0, 0, 1, 1], [], []>} : vector<32x3xf32>, vector<3x16xf32>, vector<32x16xf32> -> vector<32x16xf32>
    %20 = arith.truncf %19 : vector<32x16xf32> to vector<32x16xbf16>
    %cst_17 = arith.constant dense<0x7F800000> : vector<32xf32>
    %21 = vector.multi_reduction <minimumf>, %15, %cst_17 [1] : vector<32x32xf32> to vector<32xf32>
    %22 = vector.shape_cast %21 : vector<32xf32> to vector<32x1xf32>
    %23 = vector.broadcast %22 : vector<32x1xf32> to vector<32x32xf32>
    %24 = arith.cmpf ole, %15, %23 : vector<32x32xf32>
    %25 = arith.extui %24 : vector<32x32xi1> to vector<32x32xi32>
    %26 = arith.sitofp %25 : vector<32x32xi32> to vector<32x32xf32>
    %27 = arith.truncf %26 : vector<32x32xf32> to vector<32x32xbf16>
    %cst_18 = arith.constant dense<0.000000e+00> : vector<32x16xf32>
    %28 = tpu.matmul %27, %20, %cst_18 {dimension_numbers = #tpu.dot_dimension_numbers<[1], [0], [0], [1], [0, 0, 1, 1], [], []>} : vector<32x32xbf16>, vector<32x16xbf16>, vector<32x16xf32> -> vector<32x16xf32>
    %cst_19 = arith.constant 0x7F800000 : f32
    %29 = vector.broadcast %cst_19 : f32 to vector<32x32xf32>
    %30 = arith.select %24, %29, %15 : vector<32x32xi1>, vector<32x32xf32>
    %cst_20 = arith.constant dense<0x7F800000> : vector<32xf32>
    %31 = vector.multi_reduction <minimumf>, %30, %cst_20 [1] : vector<32x32xf32> to vector<32xf32>
    %32 = vector.shape_cast %31 : vector<32xf32> to vector<32x1xf32>
    %33 = vector.broadcast %32 : vector<32x1xf32> to vector<32x32xf32>
    %34 = arith.cmpf ole, %30, %33 : vector<32x32xf32>
    %35 = arith.extui %34 : vector<32x32xi1> to vector<32x32xi32>
    %36 = arith.sitofp %35 : vector<32x32xi32> to vector<32x32xf32>
    %37 = arith.truncf %36 : vector<32x32xf32> to vector<32x32xbf16>
    %cst_21 = arith.constant dense<0.000000e+00> : vector<32x16xf32>
    %38 = tpu.matmul %37, %20, %cst_21 {dimension_numbers = #tpu.dot_dimension_numbers<[1], [0], [0], [1], [0, 0, 1, 1], [], []>} : vector<32x32xbf16>, vector<32x16xbf16>, vector<32x16xf32> -> vector<32x16xf32>
    %39 = arith.maximumf %28, %38 : vector<32x16xf32>
    %cst_22 = arith.constant 0x7F800000 : f32
    %40 = vector.broadcast %cst_22 : f32 to vector<32x32xf32>
    %41 = arith.select %34, %40, %30 : vector<32x32xi1>, vector<32x32xf32>
    %cst_23 = arith.constant dense<0x7F800000> : vector<32xf32>
    %42 = vector.multi_reduction <minimumf>, %41, %cst_23 [1] : vector<32x32xf32> to vector<32xf32>
    %43 = vector.shape_cast %42 : vector<32xf32> to vector<32x1xf32>
    %44 = vector.broadcast %43 : vector<32x1xf32> to vector<32x32xf32>
    %45 = arith.cmpf ole, %41, %44 : vector<32x32xf32>
    %46 = arith.extui %45 : vector<32x32xi1> to vector<32x32xi32>
    %47 = arith.sitofp %46 : vector<32x32xi32> to vector<32x32xf32>
    %48 = arith.truncf %47 : vector<32x32xf32> to vector<32x32xbf16>
    %cst_24 = arith.constant dense<0.000000e+00> : vector<32x16xf32>
    %49 = tpu.matmul %48, %20, %cst_24 {dimension_numbers = #tpu.dot_dimension_numbers<[1], [0], [0], [1], [0, 0, 1, 1], [], []>} : vector<32x32xbf16>, vector<32x16xbf16>, vector<32x16xf32> -> vector<32x16xf32>
    %50 = arith.maximumf %39, %49 : vector<32x16xf32>
    %cst_25 = arith.constant 0x7F800000 : f32
    %51 = vector.broadcast %cst_25 : f32 to vector<32x32xf32>
    %52 = arith.select %45, %51, %41 : vector<32x32xi1>, vector<32x32xf32>
    %cst_26 = arith.constant dense<0x7F800000> : vector<32xf32>
    %53 = vector.multi_reduction <minimumf>, %52, %cst_26 [1] : vector<32x32xf32> to vector<32xf32>
    %54 = vector.shape_cast %53 : vector<32xf32> to vector<32x1xf32>
    %55 = vector.broadcast %54 : vector<32x1xf32> to vector<32x32xf32>
    %56 = arith.cmpf ole, %52, %55 : vector<32x32xf32>
    %57 = arith.extui %56 : vector<32x32xi1> to vector<32x32xi32>
    %58 = arith.sitofp %57 : vector<32x32xi32> to vector<32x32xf32>
    %59 = arith.truncf %58 : vector<32x32xf32> to vector<32x32xbf16>
    %cst_27 = arith.constant dense<0.000000e+00> : vector<32x16xf32>
    %60 = tpu.matmul %59, %20, %cst_27 {dimension_numbers = #tpu.dot_dimension_numbers<[1], [0], [0], [1], [0, 0, 1, 1], [], []>} : vector<32x32xbf16>, vector<32x16xbf16>, vector<32x16xf32> -> vector<32x16xf32>
    %61 = arith.maximumf %50, %60 : vector<32x16xf32>
    %cst_28 = arith.constant 0x7F800000 : f32
    %62 = vector.broadcast %cst_28 : f32 to vector<32x32xf32>
    %63 = arith.select %56, %62, %52 : vector<32x32xi1>, vector<32x32xf32>
    %cst_29 = arith.constant dense<0x7F800000> : vector<32xf32>
    %64 = vector.multi_reduction <minimumf>, %63, %cst_29 [1] : vector<32x32xf32> to vector<32xf32>
    %65 = vector.shape_cast %64 : vector<32xf32> to vector<32x1xf32>
    %66 = vector.broadcast %65 : vector<32x1xf32> to vector<32x32xf32>
    %67 = arith.cmpf ole, %63, %66 : vector<32x32xf32>
    %68 = arith.extui %67 : vector<32x32xi1> to vector<32x32xi32>
    %69 = arith.sitofp %68 : vector<32x32xi32> to vector<32x32xf32>
    %70 = arith.truncf %69 : vector<32x32xf32> to vector<32x32xbf16>
    %cst_30 = arith.constant dense<0.000000e+00> : vector<32x16xf32>
    %71 = tpu.matmul %70, %20, %cst_30 {dimension_numbers = #tpu.dot_dimension_numbers<[1], [0], [0], [1], [0, 0, 1, 1], [], []>} : vector<32x32xbf16>, vector<32x16xbf16>, vector<32x16xf32> -> vector<32x16xf32>
    %72 = arith.maximumf %61, %71 : vector<32x16xf32>
    %cst_31 = arith.constant 0x7F800000 : f32
    %73 = vector.broadcast %cst_31 : f32 to vector<32x32xf32>
    %74 = arith.select %67, %73, %63 : vector<32x32xi1>, vector<32x32xf32>
    %cst_32 = arith.constant dense<0x7F800000> : vector<32xf32>
    %75 = vector.multi_reduction <minimumf>, %74, %cst_32 [1] : vector<32x32xf32> to vector<32xf32>
    %76 = vector.shape_cast %75 : vector<32xf32> to vector<32x1xf32>
    %77 = vector.broadcast %76 : vector<32x1xf32> to vector<32x32xf32>
    %78 = arith.cmpf ole, %74, %77 : vector<32x32xf32>
    %79 = arith.extui %78 : vector<32x32xi1> to vector<32x32xi32>
    %80 = arith.sitofp %79 : vector<32x32xi32> to vector<32x32xf32>
    %81 = arith.truncf %80 : vector<32x32xf32> to vector<32x32xbf16>
    %cst_33 = arith.constant dense<0.000000e+00> : vector<32x16xf32>
    %82 = tpu.matmul %81, %20, %cst_33 {dimension_numbers = #tpu.dot_dimension_numbers<[1], [0], [0], [1], [0, 0, 1, 1], [], []>} : vector<32x32xbf16>, vector<32x16xbf16>, vector<32x16xf32> -> vector<32x16xf32>
    %83 = arith.maximumf %72, %82 : vector<32x16xf32>
    %cst_34 = arith.constant 0x7F800000 : f32
    %84 = vector.broadcast %cst_34 : f32 to vector<32x32xf32>
    %85 = arith.select %78, %84, %74 : vector<32x32xi1>, vector<32x32xf32>
    %cst_35 = arith.constant dense<0x7F800000> : vector<32xf32>
    %86 = vector.multi_reduction <minimumf>, %85, %cst_35 [1] : vector<32x32xf32> to vector<32xf32>
    %87 = vector.shape_cast %86 : vector<32xf32> to vector<32x1xf32>
    %88 = vector.broadcast %87 : vector<32x1xf32> to vector<32x32xf32>
    %89 = arith.cmpf ole, %85, %88 : vector<32x32xf32>
    %90 = arith.extui %89 : vector<32x32xi1> to vector<32x32xi32>
    %91 = arith.sitofp %90 : vector<32x32xi32> to vector<32x32xf32>
    %92 = arith.truncf %91 : vector<32x32xf32> to vector<32x32xbf16>
    %cst_36 = arith.constant dense<0.000000e+00> : vector<32x16xf32>
    %93 = tpu.matmul %92, %20, %cst_36 {dimension_numbers = #tpu.dot_dimension_numbers<[1], [0], [0], [1], [0, 0, 1, 1], [], []>} : vector<32x32xbf16>, vector<32x16xbf16>, vector<32x16xf32> -> vector<32x16xf32>
    %94 = arith.maximumf %83, %93 : vector<32x16xf32>
    %cst_37 = arith.constant 0x7F800000 : f32
    %95 = vector.broadcast %cst_37 : f32 to vector<32x32xf32>
    %96 = arith.select %89, %95, %85 : vector<32x32xi1>, vector<32x32xf32>
    %cst_38 = arith.constant dense<0x7F800000> : vector<32xf32>
    %97 = vector.multi_reduction <minimumf>, %96, %cst_38 [1] : vector<32x32xf32> to vector<32xf32>
    %98 = vector.shape_cast %97 : vector<32xf32> to vector<32x1xf32>
    %99 = vector.broadcast %98 : vector<32x1xf32> to vector<32x32xf32>
    %100 = arith.cmpf ole, %96, %99 : vector<32x32xf32>
    %101 = arith.extui %100 : vector<32x32xi1> to vector<32x32xi32>
    %102 = arith.sitofp %101 : vector<32x32xi32> to vector<32x32xf32>
    %103 = arith.truncf %102 : vector<32x32xf32> to vector<32x32xbf16>
    %cst_39 = arith.constant dense<0.000000e+00> : vector<32x16xf32>
    %104 = tpu.matmul %103, %20, %cst_39 {dimension_numbers = #tpu.dot_dimension_numbers<[1], [0], [0], [1], [0, 0, 1, 1], [], []>} : vector<32x32xbf16>, vector<32x16xbf16>, vector<32x16xf32> -> vector<32x16xf32>
    %105 = arith.maximumf %94, %104 : vector<32x16xf32>
    %106 = arith.addf %18, %105 : vector<32x16xf32>
    %cst_40 = arith.constant 0.000000e+00 : f32
    %107 = vector.broadcast %cst_40 : f32 to vector<32x16xf32>
    %108 = arith.maximumf %106, %107 : vector<32x16xf32>
    %c0_41 = arith.constant 0 : index
    %c0_42 = arith.constant 0 : index
    %109 = vector.load %arg15[%c0_41, %c0_42] : memref<16x64xf32, #tpu.memory_space<vmem>>, vector<16x64xf32>
    %cst_43 = arith.constant dense<0.000000e+00> : vector<32x64xf32>
    %110 = tpu.matmul %108, %109, %cst_43 {dimension_numbers = #tpu.dot_dimension_numbers<[1], [0], [0], [1], [0, 0, 1, 1], [], []>} : vector<32x16xf32>, vector<16x64xf32>, vector<32x64xf32> -> vector<32x64xf32>
    %c0_44 = arith.constant 0 : index
    %c0_45 = arith.constant 0 : index
    %111 = vector.load %arg6[%c0_44, %c0_45] : memref<16x16xf32, #tpu.memory_space<vmem>>, vector<16x16xf32>
    %c0_46 = arith.constant 0 : index
    %c0_47 = arith.constant 0 : index
    %112 = vector.load %arg7[%c0_46, %c0_47] : memref<16x16xf32, #tpu.memory_space<vmem>>, vector<16x16xf32>
    %c0_48 = arith.constant 0 : index
    %c0_49 = arith.constant 0 : index
    %113 = vector.load %arg8[%c0_48, %c0_49] : memref<1x16xf32, #tpu.memory_space<vmem>>, vector<1x16xf32>
    %cst_50 = arith.constant dense<0.000000e+00> : vector<32x32xf32>
    %114 = tpu.matmul %108, %108, %cst_50 {dimension_numbers = #tpu.dot_dimension_numbers<[1], [1], [0], [0], [0, 0, 1, 0], [], []>} : vector<32x16xf32>, vector<32x16xf32>, vector<32x32xf32> -> vector<32x32xf32>
    %cst_51 = arith.constant 1.000000e+00 : f32
    %115 = vector.broadcast %cst_51 : f32 to vector<1x16xf32>
    %116 = arith.mulf %108, %108 : vector<32x16xf32>
    %cst_52 = arith.constant dense<0.000000e+00> : vector<1x32xf32>
    %117 = tpu.matmul %115, %116, %cst_52 {dimension_numbers = #tpu.dot_dimension_numbers<[1], [1], [0], [0], [0, 0, 1, 0], [], []>} : vector<1x16xf32>, vector<32x16xf32>, vector<1x32xf32> -> vector<1x32xf32>
    %cst_53 = arith.constant 2.000000e+00 : f32
    %118 = vector.broadcast %cst_53 : f32 to vector<32x32xf32>
    %119 = arith.mulf %118, %114 : vector<32x32xf32>
    %120 = vector.broadcast %117 : vector<1x32xf32> to vector<32x32xf32>
    %121 = arith.subf %120, %119 : vector<32x32xf32>
    %cst_54 = arith.constant dense<0.000000e+00> : vector<32x16xf32>
    %122 = tpu.matmul %108, %111, %cst_54 {dimension_numbers = #tpu.dot_dimension_numbers<[1], [0], [0], [1], [0, 0, 1, 1], [], []>} : vector<32x16xf32>, vector<16x16xf32>, vector<32x16xf32> -> vector<32x16xf32>
    %123 = vector.broadcast %113 : vector<1x16xf32> to vector<32x16xf32>
    %124 = arith.addf %122, %123 : vector<32x16xf32>
    %cst_55 = arith.constant dense<0.000000e+00> : vector<32x16xf32>
    %125 = tpu.matmul %108, %112, %cst_55 {dimension_numbers = #tpu.dot_dimension_numbers<[1], [0], [0], [1], [0, 0, 1, 1], [], []>} : vector<32x16xf32>, vector<16x16xf32>, vector<32x16xf32> -> vector<32x16xf32>
    %126 = arith.truncf %125 : vector<32x16xf32> to vector<32x16xbf16>
    %cst_56 = arith.constant dense<0x7F800000> : vector<32xf32>
    %127 = vector.multi_reduction <minimumf>, %121, %cst_56 [1] : vector<32x32xf32> to vector<32xf32>
    %128 = vector.shape_cast %127 : vector<32xf32> to vector<32x1xf32>
    %129 = vector.broadcast %128 : vector<32x1xf32> to vector<32x32xf32>
    %130 = arith.cmpf ole, %121, %129 : vector<32x32xf32>
    %131 = arith.extui %130 : vector<32x32xi1> to vector<32x32xi32>
    %132 = arith.sitofp %131 : vector<32x32xi32> to vector<32x32xf32>
    %133 = arith.truncf %132 : vector<32x32xf32> to vector<32x32xbf16>
    %cst_57 = arith.constant dense<0.000000e+00> : vector<32x16xf32>
    %134 = tpu.matmul %133, %126, %cst_57 {dimension_numbers = #tpu.dot_dimension_numbers<[1], [0], [0], [1], [0, 0, 1, 1], [], []>} : vector<32x32xbf16>, vector<32x16xbf16>, vector<32x16xf32> -> vector<32x16xf32>
    %cst_58 = arith.constant 0x7F800000 : f32
    %135 = vector.broadcast %cst_58 : f32 to vector<32x32xf32>
    %136 = arith.select %130, %135, %121 : vector<32x32xi1>, vector<32x32xf32>
    %cst_59 = arith.constant dense<0x7F800000> : vector<32xf32>
    %137 = vector.multi_reduction <minimumf>, %136, %cst_59 [1] : vector<32x32xf32> to vector<32xf32>
    %138 = vector.shape_cast %137 : vector<32xf32> to vector<32x1xf32>
    %139 = vector.broadcast %138 : vector<32x1xf32> to vector<32x32xf32>
    %140 = arith.cmpf ole, %136, %139 : vector<32x32xf32>
    %141 = arith.extui %140 : vector<32x32xi1> to vector<32x32xi32>
    %142 = arith.sitofp %141 : vector<32x32xi32> to vector<32x32xf32>
    %143 = arith.truncf %142 : vector<32x32xf32> to vector<32x32xbf16>
    %cst_60 = arith.constant dense<0.000000e+00> : vector<32x16xf32>
    %144 = tpu.matmul %143, %126, %cst_60 {dimension_numbers = #tpu.dot_dimension_numbers<[1], [0], [0], [1], [0, 0, 1, 1], [], []>} : vector<32x32xbf16>, vector<32x16xbf16>, vector<32x16xf32> -> vector<32x16xf32>
    %145 = arith.maximumf %134, %144 : vector<32x16xf32>
    %cst_61 = arith.constant 0x7F800000 : f32
    %146 = vector.broadcast %cst_61 : f32 to vector<32x32xf32>
    %147 = arith.select %140, %146, %136 : vector<32x32xi1>, vector<32x32xf32>
    %cst_62 = arith.constant dense<0x7F800000> : vector<32xf32>
    %148 = vector.multi_reduction <minimumf>, %147, %cst_62 [1] : vector<32x32xf32> to vector<32xf32>
    %149 = vector.shape_cast %148 : vector<32xf32> to vector<32x1xf32>
    %150 = vector.broadcast %149 : vector<32x1xf32> to vector<32x32xf32>
    %151 = arith.cmpf ole, %147, %150 : vector<32x32xf32>
    %152 = arith.extui %151 : vector<32x32xi1> to vector<32x32xi32>
    %153 = arith.sitofp %152 : vector<32x32xi32> to vector<32x32xf32>
    %154 = arith.truncf %153 : vector<32x32xf32> to vector<32x32xbf16>
    %cst_63 = arith.constant dense<0.000000e+00> : vector<32x16xf32>
    %155 = tpu.matmul %154, %126, %cst_63 {dimension_numbers = #tpu.dot_dimension_numbers<[1], [0], [0], [1], [0, 0, 1, 1], [], []>} : vector<32x32xbf16>, vector<32x16xbf16>, vector<32x16xf32> -> vector<32x16xf32>
    %156 = arith.maximumf %145, %155 : vector<32x16xf32>
    %cst_64 = arith.constant 0x7F800000 : f32
    %157 = vector.broadcast %cst_64 : f32 to vector<32x32xf32>
    %158 = arith.select %151, %157, %147 : vector<32x32xi1>, vector<32x32xf32>
    %cst_65 = arith.constant dense<0x7F800000> : vector<32xf32>
    %159 = vector.multi_reduction <minimumf>, %158, %cst_65 [1] : vector<32x32xf32> to vector<32xf32>
    %160 = vector.shape_cast %159 : vector<32xf32> to vector<32x1xf32>
    %161 = vector.broadcast %160 : vector<32x1xf32> to vector<32x32xf32>
    %162 = arith.cmpf ole, %158, %161 : vector<32x32xf32>
    %163 = arith.extui %162 : vector<32x32xi1> to vector<32x32xi32>
    %164 = arith.sitofp %163 : vector<32x32xi32> to vector<32x32xf32>
    %165 = arith.truncf %164 : vector<32x32xf32> to vector<32x32xbf16>
    %cst_66 = arith.constant dense<0.000000e+00> : vector<32x16xf32>
    %166 = tpu.matmul %165, %126, %cst_66 {dimension_numbers = #tpu.dot_dimension_numbers<[1], [0], [0], [1], [0, 0, 1, 1], [], []>} : vector<32x32xbf16>, vector<32x16xbf16>, vector<32x16xf32> -> vector<32x16xf32>
    %167 = arith.maximumf %156, %166 : vector<32x16xf32>
    %cst_67 = arith.constant 0x7F800000 : f32
    %168 = vector.broadcast %cst_67 : f32 to vector<32x32xf32>
    %169 = arith.select %162, %168, %158 : vector<32x32xi1>, vector<32x32xf32>
    %cst_68 = arith.constant dense<0x7F800000> : vector<32xf32>
    %170 = vector.multi_reduction <minimumf>, %169, %cst_68 [1] : vector<32x32xf32> to vector<32xf32>
    %171 = vector.shape_cast %170 : vector<32xf32> to vector<32x1xf32>
    %172 = vector.broadcast %171 : vector<32x1xf32> to vector<32x32xf32>
    %173 = arith.cmpf ole, %169, %172 : vector<32x32xf32>
    %174 = arith.extui %173 : vector<32x32xi1> to vector<32x32xi32>
    %175 = arith.sitofp %174 : vector<32x32xi32> to vector<32x32xf32>
    %176 = arith.truncf %175 : vector<32x32xf32> to vector<32x32xbf16>
    %cst_69 = arith.constant dense<0.000000e+00> : vector<32x16xf32>
    %177 = tpu.matmul %176, %126, %cst_69 {dimension_numbers = #tpu.dot_dimension_numbers<[1], [0], [0], [1], [0, 0, 1, 1], [], []>} : vector<32x32xbf16>, vector<32x16xbf16>, vector<32x16xf32> -> vector<32x16xf32>
    %178 = arith.maximumf %167, %177 : vector<32x16xf32>
    %cst_70 = arith.constant 0x7F800000 : f32
    %179 = vector.broadcast %cst_70 : f32 to vector<32x32xf32>
    %180 = arith.select %173, %179, %169 : vector<32x32xi1>, vector<32x32xf32>
    %cst_71 = arith.constant dense<0x7F800000> : vector<32xf32>
    %181 = vector.multi_reduction <minimumf>, %180, %cst_71 [1] : vector<32x32xf32> to vector<32xf32>
    %182 = vector.shape_cast %181 : vector<32xf32> to vector<32x1xf32>
    %183 = vector.broadcast %182 : vector<32x1xf32> to vector<32x32xf32>
    %184 = arith.cmpf ole, %180, %183 : vector<32x32xf32>
    %185 = arith.extui %184 : vector<32x32xi1> to vector<32x32xi32>
    %186 = arith.sitofp %185 : vector<32x32xi32> to vector<32x32xf32>
    %187 = arith.truncf %186 : vector<32x32xf32> to vector<32x32xbf16>
    %cst_72 = arith.constant dense<0.000000e+00> : vector<32x16xf32>
    %188 = tpu.matmul %187, %126, %cst_72 {dimension_numbers = #tpu.dot_dimension_numbers<[1], [0], [0], [1], [0, 0, 1, 1], [], []>} : vector<32x32xbf16>, vector<32x16xbf16>, vector<32x16xf32> -> vector<32x16xf32>
    %189 = arith.maximumf %178, %188 : vector<32x16xf32>
    %cst_73 = arith.constant 0x7F800000 : f32
    %190 = vector.broadcast %cst_73 : f32 to vector<32x32xf32>
    %191 = arith.select %184, %190, %180 : vector<32x32xi1>, vector<32x32xf32>
    %cst_74 = arith.constant dense<0x7F800000> : vector<32xf32>
    %192 = vector.multi_reduction <minimumf>, %191, %cst_74 [1] : vector<32x32xf32> to vector<32xf32>
    %193 = vector.shape_cast %192 : vector<32xf32> to vector<32x1xf32>
    %194 = vector.broadcast %193 : vector<32x1xf32> to vector<32x32xf32>
    %195 = arith.cmpf ole, %191, %194 : vector<32x32xf32>
    %196 = arith.extui %195 : vector<32x32xi1> to vector<32x32xi32>
    %197 = arith.sitofp %196 : vector<32x32xi32> to vector<32x32xf32>
    %198 = arith.truncf %197 : vector<32x32xf32> to vector<32x32xbf16>
    %cst_75 = arith.constant dense<0.000000e+00> : vector<32x16xf32>
    %199 = tpu.matmul %198, %126, %cst_75 {dimension_numbers = #tpu.dot_dimension_numbers<[1], [0], [0], [1], [0, 0, 1, 1], [], []>} : vector<32x32xbf16>, vector<32x16xbf16>, vector<32x16xf32> -> vector<32x16xf32>
    %200 = arith.maximumf %189, %199 : vector<32x16xf32>
    %cst_76 = arith.constant 0x7F800000 : f32
    %201 = vector.broadcast %cst_76 : f32 to vector<32x32xf32>
    %202 = arith.select %195, %201, %191 : vector<32x32xi1>, vector<32x32xf32>
    %cst_77 = arith.constant dense<0x7F800000> : vector<32xf32>
    %203 = vector.multi_reduction <minimumf>, %202, %cst_77 [1] : vector<32x32xf32> to vector<32xf32>
    %204 = vector.shape_cast %203 : vector<32xf32> to vector<32x1xf32>
    %205 = vector.broadcast %204 : vector<32x1xf32> to vector<32x32xf32>
    %206 = arith.cmpf ole, %202, %205 : vector<32x32xf32>
    %207 = arith.extui %206 : vector<32x32xi1> to vector<32x32xi32>
    %208 = arith.sitofp %207 : vector<32x32xi32> to vector<32x32xf32>
    %209 = arith.truncf %208 : vector<32x32xf32> to vector<32x32xbf16>
    %cst_78 = arith.constant dense<0.000000e+00> : vector<32x16xf32>
    %210 = tpu.matmul %209, %126, %cst_78 {dimension_numbers = #tpu.dot_dimension_numbers<[1], [0], [0], [1], [0, 0, 1, 1], [], []>} : vector<32x32xbf16>, vector<32x16xbf16>, vector<32x16xf32> -> vector<32x16xf32>
    %211 = arith.maximumf %200, %210 : vector<32x16xf32>
    %212 = arith.addf %124, %211 : vector<32x16xf32>
    %cst_79 = arith.constant 0.000000e+00 : f32
    %213 = vector.broadcast %cst_79 : f32 to vector<32x16xf32>
    %214 = arith.maximumf %212, %213 : vector<32x16xf32>
    %c0_80 = arith.constant 0 : index
    %c0_81 = arith.constant 0 : index
    %215 = vector.load %arg16[%c0_80, %c0_81] : memref<16x64xf32, #tpu.memory_space<vmem>>, vector<16x64xf32>
    %cst_82 = arith.constant dense<0.000000e+00> : vector<32x64xf32>
    %216 = tpu.matmul %214, %215, %cst_82 {dimension_numbers = #tpu.dot_dimension_numbers<[1], [0], [0], [1], [0, 0, 1, 1], [], []>} : vector<32x16xf32>, vector<16x64xf32>, vector<32x64xf32> -> vector<32x64xf32>
    %217 = arith.addf %110, %216 : vector<32x64xf32>
    %c0_83 = arith.constant 0 : index
    %c0_84 = arith.constant 0 : index
    %218 = vector.load %arg9[%c0_83, %c0_84] : memref<16x16xf32, #tpu.memory_space<vmem>>, vector<16x16xf32>
    %c0_85 = arith.constant 0 : index
    %c0_86 = arith.constant 0 : index
    %219 = vector.load %arg10[%c0_85, %c0_86] : memref<16x16xf32, #tpu.memory_space<vmem>>, vector<16x16xf32>
    %c0_87 = arith.constant 0 : index
    %c0_88 = arith.constant 0 : index
    %220 = vector.load %arg11[%c0_87, %c0_88] : memref<1x16xf32, #tpu.memory_space<vmem>>, vector<1x16xf32>
    %cst_89 = arith.constant dense<0.000000e+00> : vector<32x32xf32>
    %221 = tpu.matmul %214, %214, %cst_89 {dimension_numbers = #tpu.dot_dimension_numbers<[1], [1], [0], [0], [0, 0, 1, 0], [], []>} : vector<32x16xf32>, vector<32x16xf32>, vector<32x32xf32> -> vector<32x32xf32>
    %cst_90 = arith.constant 1.000000e+00 : f32
    %222 = vector.broadcast %cst_90 : f32 to vector<1x16xf32>
    %223 = arith.mulf %214, %214 : vector<32x16xf32>
    %cst_91 = arith.constant dense<0.000000e+00> : vector<1x32xf32>
    %224 = tpu.matmul %222, %223, %cst_91 {dimension_numbers = #tpu.dot_dimension_numbers<[1], [1], [0], [0], [0, 0, 1, 0], [], []>} : vector<1x16xf32>, vector<32x16xf32>, vector<1x32xf32> -> vector<1x32xf32>
    %cst_92 = arith.constant 2.000000e+00 : f32
    %225 = vector.broadcast %cst_92 : f32 to vector<32x32xf32>
    %226 = arith.mulf %225, %221 : vector<32x32xf32>
    %227 = vector.broadcast %224 : vector<1x32xf32> to vector<32x32xf32>
    %228 = arith.subf %227, %226 : vector<32x32xf32>
    %cst_93 = arith.constant dense<0.000000e+00> : vector<32x16xf32>
    %229 = tpu.matmul %214, %218, %cst_93 {dimension_numbers = #tpu.dot_dimension_numbers<[1], [0], [0], [1], [0, 0, 1, 1], [], []>} : vector<32x16xf32>, vector<16x16xf32>, vector<32x16xf32> -> vector<32x16xf32>
    %230 = vector.broadcast %220 : vector<1x16xf32> to vector<32x16xf32>
    %231 = arith.addf %229, %230 : vector<32x16xf32>
    %cst_94 = arith.constant dense<0.000000e+00> : vector<32x16xf32>
    %232 = tpu.matmul %214, %219, %cst_94 {dimension_numbers = #tpu.dot_dimension_numbers<[1], [0], [0], [1], [0, 0, 1, 1], [], []>} : vector<32x16xf32>, vector<16x16xf32>, vector<32x16xf32> -> vector<32x16xf32>
    %233 = arith.truncf %232 : vector<32x16xf32> to vector<32x16xbf16>
    %cst_95 = arith.constant dense<0x7F800000> : vector<32xf32>
    %234 = vector.multi_reduction <minimumf>, %228, %cst_95 [1] : vector<32x32xf32> to vector<32xf32>
    %235 = vector.shape_cast %234 : vector<32xf32> to vector<32x1xf32>
    %236 = vector.broadcast %235 : vector<32x1xf32> to vector<32x32xf32>
    %237 = arith.cmpf ole, %228, %236 : vector<32x32xf32>
    %238 = arith.extui %237 : vector<32x32xi1> to vector<32x32xi32>
    %239 = arith.sitofp %238 : vector<32x32xi32> to vector<32x32xf32>
    %240 = arith.truncf %239 : vector<32x32xf32> to vector<32x32xbf16>
    %cst_96 = arith.constant dense<0.000000e+00> : vector<32x16xf32>
    %241 = tpu.matmul %240, %233, %cst_96 {dimension_numbers = #tpu.dot_dimension_numbers<[1], [0], [0], [1], [0, 0, 1, 1], [], []>} : vector<32x32xbf16>, vector<32x16xbf16>, vector<32x16xf32> -> vector<32x16xf32>
    %cst_97 = arith.constant 0x7F800000 : f32
    %242 = vector.broadcast %cst_97 : f32 to vector<32x32xf32>
    %243 = arith.select %237, %242, %228 : vector<32x32xi1>, vector<32x32xf32>
    %cst_98 = arith.constant dense<0x7F800000> : vector<32xf32>
    %244 = vector.multi_reduction <minimumf>, %243, %cst_98 [1] : vector<32x32xf32> to vector<32xf32>
    %245 = vector.shape_cast %244 : vector<32xf32> to vector<32x1xf32>
    %246 = vector.broadcast %245 : vector<32x1xf32> to vector<32x32xf32>
    %247 = arith.cmpf ole, %243, %246 : vector<32x32xf32>
    %248 = arith.extui %247 : vector<32x32xi1> to vector<32x32xi32>
    %249 = arith.sitofp %248 : vector<32x32xi32> to vector<32x32xf32>
    %250 = arith.truncf %249 : vector<32x32xf32> to vector<32x32xbf16>
    %cst_99 = arith.constant dense<0.000000e+00> : vector<32x16xf32>
    %251 = tpu.matmul %250, %233, %cst_99 {dimension_numbers = #tpu.dot_dimension_numbers<[1], [0], [0], [1], [0, 0, 1, 1], [], []>} : vector<32x32xbf16>, vector<32x16xbf16>, vector<32x16xf32> -> vector<32x16xf32>
    %252 = arith.maximumf %241, %251 : vector<32x16xf32>
    %cst_100 = arith.constant 0x7F800000 : f32
    %253 = vector.broadcast %cst_100 : f32 to vector<32x32xf32>
    %254 = arith.select %247, %253, %243 : vector<32x32xi1>, vector<32x32xf32>
    %cst_101 = arith.constant dense<0x7F800000> : vector<32xf32>
    %255 = vector.multi_reduction <minimumf>, %254, %cst_101 [1] : vector<32x32xf32> to vector<32xf32>
    %256 = vector.shape_cast %255 : vector<32xf32> to vector<32x1xf32>
    %257 = vector.broadcast %256 : vector<32x1xf32> to vector<32x32xf32>
    %258 = arith.cmpf ole, %254, %257 : vector<32x32xf32>
    %259 = arith.extui %258 : vector<32x32xi1> to vector<32x32xi32>
    %260 = arith.sitofp %259 : vector<32x32xi32> to vector<32x32xf32>
    %261 = arith.truncf %260 : vector<32x32xf32> to vector<32x32xbf16>
    %cst_102 = arith.constant dense<0.000000e+00> : vector<32x16xf32>
    %262 = tpu.matmul %261, %233, %cst_102 {dimension_numbers = #tpu.dot_dimension_numbers<[1], [0], [0], [1], [0, 0, 1, 1], [], []>} : vector<32x32xbf16>, vector<32x16xbf16>, vector<32x16xf32> -> vector<32x16xf32>
    %263 = arith.maximumf %252, %262 : vector<32x16xf32>
    %cst_103 = arith.constant 0x7F800000 : f32
    %264 = vector.broadcast %cst_103 : f32 to vector<32x32xf32>
    %265 = arith.select %258, %264, %254 : vector<32x32xi1>, vector<32x32xf32>
    %cst_104 = arith.constant dense<0x7F800000> : vector<32xf32>
    %266 = vector.multi_reduction <minimumf>, %265, %cst_104 [1] : vector<32x32xf32> to vector<32xf32>
    %267 = vector.shape_cast %266 : vector<32xf32> to vector<32x1xf32>
    %268 = vector.broadcast %267 : vector<32x1xf32> to vector<32x32xf32>
    %269 = arith.cmpf ole, %265, %268 : vector<32x32xf32>
    %270 = arith.extui %269 : vector<32x32xi1> to vector<32x32xi32>
    %271 = arith.sitofp %270 : vector<32x32xi32> to vector<32x32xf32>
    %272 = arith.truncf %271 : vector<32x32xf32> to vector<32x32xbf16>
    %cst_105 = arith.constant dense<0.000000e+00> : vector<32x16xf32>
    %273 = tpu.matmul %272, %233, %cst_105 {dimension_numbers = #tpu.dot_dimension_numbers<[1], [0], [0], [1], [0, 0, 1, 1], [], []>} : vector<32x32xbf16>, vector<32x16xbf16>, vector<32x16xf32> -> vector<32x16xf32>
    %274 = arith.maximumf %263, %273 : vector<32x16xf32>
    %cst_106 = arith.constant 0x7F800000 : f32
    %275 = vector.broadcast %cst_106 : f32 to vector<32x32xf32>
    %276 = arith.select %269, %275, %265 : vector<32x32xi1>, vector<32x32xf32>
    %cst_107 = arith.constant dense<0x7F800000> : vector<32xf32>
    %277 = vector.multi_reduction <minimumf>, %276, %cst_107 [1] : vector<32x32xf32> to vector<32xf32>
    %278 = vector.shape_cast %277 : vector<32xf32> to vector<32x1xf32>
    %279 = vector.broadcast %278 : vector<32x1xf32> to vector<32x32xf32>
    %280 = arith.cmpf ole, %276, %279 : vector<32x32xf32>
    %281 = arith.extui %280 : vector<32x32xi1> to vector<32x32xi32>
    %282 = arith.sitofp %281 : vector<32x32xi32> to vector<32x32xf32>
    %283 = arith.truncf %282 : vector<32x32xf32> to vector<32x32xbf16>
    %cst_108 = arith.constant dense<0.000000e+00> : vector<32x16xf32>
    %284 = tpu.matmul %283, %233, %cst_108 {dimension_numbers = #tpu.dot_dimension_numbers<[1], [0], [0], [1], [0, 0, 1, 1], [], []>} : vector<32x32xbf16>, vector<32x16xbf16>, vector<32x16xf32> -> vector<32x16xf32>
    %285 = arith.maximumf %274, %284 : vector<32x16xf32>
    %cst_109 = arith.constant 0x7F800000 : f32
    %286 = vector.broadcast %cst_109 : f32 to vector<32x32xf32>
    %287 = arith.select %280, %286, %276 : vector<32x32xi1>, vector<32x32xf32>
    %cst_110 = arith.constant dense<0x7F800000> : vector<32xf32>
    %288 = vector.multi_reduction <minimumf>, %287, %cst_110 [1] : vector<32x32xf32> to vector<32xf32>
    %289 = vector.shape_cast %288 : vector<32xf32> to vector<32x1xf32>
    %290 = vector.broadcast %289 : vector<32x1xf32> to vector<32x32xf32>
    %291 = arith.cmpf ole, %287, %290 : vector<32x32xf32>
    %292 = arith.extui %291 : vector<32x32xi1> to vector<32x32xi32>
    %293 = arith.sitofp %292 : vector<32x32xi32> to vector<32x32xf32>
    %294 = arith.truncf %293 : vector<32x32xf32> to vector<32x32xbf16>
    %cst_111 = arith.constant dense<0.000000e+00> : vector<32x16xf32>
    %295 = tpu.matmul %294, %233, %cst_111 {dimension_numbers = #tpu.dot_dimension_numbers<[1], [0], [0], [1], [0, 0, 1, 1], [], []>} : vector<32x32xbf16>, vector<32x16xbf16>, vector<32x16xf32> -> vector<32x16xf32>
    %296 = arith.maximumf %285, %295 : vector<32x16xf32>
    %cst_112 = arith.constant 0x7F800000 : f32
    %297 = vector.broadcast %cst_112 : f32 to vector<32x32xf32>
    %298 = arith.select %291, %297, %287 : vector<32x32xi1>, vector<32x32xf32>
    %cst_113 = arith.constant dense<0x7F800000> : vector<32xf32>
    %299 = vector.multi_reduction <minimumf>, %298, %cst_113 [1] : vector<32x32xf32> to vector<32xf32>
    %300 = vector.shape_cast %299 : vector<32xf32> to vector<32x1xf32>
    %301 = vector.broadcast %300 : vector<32x1xf32> to vector<32x32xf32>
    %302 = arith.cmpf ole, %298, %301 : vector<32x32xf32>
    %303 = arith.extui %302 : vector<32x32xi1> to vector<32x32xi32>
    %304 = arith.sitofp %303 : vector<32x32xi32> to vector<32x32xf32>
    %305 = arith.truncf %304 : vector<32x32xf32> to vector<32x32xbf16>
    %cst_114 = arith.constant dense<0.000000e+00> : vector<32x16xf32>
    %306 = tpu.matmul %305, %233, %cst_114 {dimension_numbers = #tpu.dot_dimension_numbers<[1], [0], [0], [1], [0, 0, 1, 1], [], []>} : vector<32x32xbf16>, vector<32x16xbf16>, vector<32x16xf32> -> vector<32x16xf32>
    %307 = arith.maximumf %296, %306 : vector<32x16xf32>
    %cst_115 = arith.constant 0x7F800000 : f32
    %308 = vector.broadcast %cst_115 : f32 to vector<32x32xf32>
    %309 = arith.select %302, %308, %298 : vector<32x32xi1>, vector<32x32xf32>
    %cst_116 = arith.constant dense<0x7F800000> : vector<32xf32>
    %310 = vector.multi_reduction <minimumf>, %309, %cst_116 [1] : vector<32x32xf32> to vector<32xf32>
    %311 = vector.shape_cast %310 : vector<32xf32> to vector<32x1xf32>
    %312 = vector.broadcast %311 : vector<32x1xf32> to vector<32x32xf32>
    %313 = arith.cmpf ole, %309, %312 : vector<32x32xf32>
    %314 = arith.extui %313 : vector<32x32xi1> to vector<32x32xi32>
    %315 = arith.sitofp %314 : vector<32x32xi32> to vector<32x32xf32>
    %316 = arith.truncf %315 : vector<32x32xf32> to vector<32x32xbf16>
    %cst_117 = arith.constant dense<0.000000e+00> : vector<32x16xf32>
    %317 = tpu.matmul %316, %233, %cst_117 {dimension_numbers = #tpu.dot_dimension_numbers<[1], [0], [0], [1], [0, 0, 1, 1], [], []>} : vector<32x32xbf16>, vector<32x16xbf16>, vector<32x16xf32> -> vector<32x16xf32>
    %318 = arith.maximumf %307, %317 : vector<32x16xf32>
    %319 = arith.addf %231, %318 : vector<32x16xf32>
    %cst_118 = arith.constant 0.000000e+00 : f32
    %320 = vector.broadcast %cst_118 : f32 to vector<32x16xf32>
    %321 = arith.maximumf %319, %320 : vector<32x16xf32>
    %c0_119 = arith.constant 0 : index
    %c0_120 = arith.constant 0 : index
    %322 = vector.load %arg17[%c0_119, %c0_120] : memref<16x64xf32, #tpu.memory_space<vmem>>, vector<16x64xf32>
    %cst_121 = arith.constant dense<0.000000e+00> : vector<32x64xf32>
    %323 = tpu.matmul %321, %322, %cst_121 {dimension_numbers = #tpu.dot_dimension_numbers<[1], [0], [0], [1], [0, 0, 1, 1], [], []>} : vector<32x16xf32>, vector<16x64xf32>, vector<32x64xf32> -> vector<32x64xf32>
    %324 = arith.addf %217, %323 : vector<32x64xf32>
    %c0_122 = arith.constant 0 : index
    %c0_123 = arith.constant 0 : index
    %325 = vector.load %arg12[%c0_122, %c0_123] : memref<16x32xf32, #tpu.memory_space<vmem>>, vector<16x32xf32>
    %c0_124 = arith.constant 0 : index
    %c0_125 = arith.constant 0 : index
    %326 = vector.load %arg13[%c0_124, %c0_125] : memref<16x32xf32, #tpu.memory_space<vmem>>, vector<16x32xf32>
    %c0_126 = arith.constant 0 : index
    %c0_127 = arith.constant 0 : index
    %327 = vector.load %arg14[%c0_126, %c0_127] : memref<1x32xf32, #tpu.memory_space<vmem>>, vector<1x32xf32>
    %cst_128 = arith.constant dense<0.000000e+00> : vector<32x32xf32>
    %328 = tpu.matmul %321, %321, %cst_128 {dimension_numbers = #tpu.dot_dimension_numbers<[1], [1], [0], [0], [0, 0, 1, 0], [], []>} : vector<32x16xf32>, vector<32x16xf32>, vector<32x32xf32> -> vector<32x32xf32>
    %cst_129 = arith.constant 1.000000e+00 : f32
    %329 = vector.broadcast %cst_129 : f32 to vector<1x16xf32>
    %330 = arith.mulf %321, %321 : vector<32x16xf32>
    %cst_130 = arith.constant dense<0.000000e+00> : vector<1x32xf32>
    %331 = tpu.matmul %329, %330, %cst_130 {dimension_numbers = #tpu.dot_dimension_numbers<[1], [1], [0], [0], [0, 0, 1, 0], [], []>} : vector<1x16xf32>, vector<32x16xf32>, vector<1x32xf32> -> vector<1x32xf32>
    %cst_131 = arith.constant 2.000000e+00 : f32
    %332 = vector.broadcast %cst_131 : f32 to vector<32x32xf32>
    %333 = arith.mulf %332, %328 : vector<32x32xf32>
    %334 = vector.broadcast %331 : vector<1x32xf32> to vector<32x32xf32>
    %335 = arith.subf %334, %333 : vector<32x32xf32>
    %cst_132 = arith.constant dense<0.000000e+00> : vector<32x32xf32>
    %336 = tpu.matmul %321, %325, %cst_132 {dimension_numbers = #tpu.dot_dimension_numbers<[1], [0], [0], [1], [0, 0, 1, 1], [], []>} : vector<32x16xf32>, vector<16x32xf32>, vector<32x32xf32> -> vector<32x32xf32>
    %337 = vector.broadcast %327 : vector<1x32xf32> to vector<32x32xf32>
    %338 = arith.addf %336, %337 : vector<32x32xf32>
    %cst_133 = arith.constant dense<0.000000e+00> : vector<32x32xf32>
    %339 = tpu.matmul %321, %326, %cst_133 {dimension_numbers = #tpu.dot_dimension_numbers<[1], [0], [0], [1], [0, 0, 1, 1], [], []>} : vector<32x16xf32>, vector<16x32xf32>, vector<32x32xf32> -> vector<32x32xf32>
    %340 = arith.truncf %339 : vector<32x32xf32> to vector<32x32xbf16>
    %cst_134 = arith.constant dense<0x7F800000> : vector<32xf32>
    %341 = vector.multi_reduction <minimumf>, %335, %cst_134 [1] : vector<32x32xf32> to vector<32xf32>
    %342 = vector.shape_cast %341 : vector<32xf32> to vector<32x1xf32>
    %343 = vector.broadcast %342 : vector<32x1xf32> to vector<32x32xf32>
    %344 = arith.cmpf ole, %335, %343 : vector<32x32xf32>
    %345 = arith.extui %344 : vector<32x32xi1> to vector<32x32xi32>
    %346 = arith.sitofp %345 : vector<32x32xi32> to vector<32x32xf32>
    %347 = arith.truncf %346 : vector<32x32xf32> to vector<32x32xbf16>
    %cst_135 = arith.constant dense<0.000000e+00> : vector<32x32xf32>
    %348 = tpu.matmul %347, %340, %cst_135 {dimension_numbers = #tpu.dot_dimension_numbers<[1], [0], [0], [1], [0, 0, 1, 1], [], []>} : vector<32x32xbf16>, vector<32x32xbf16>, vector<32x32xf32> -> vector<32x32xf32>
    %cst_136 = arith.constant 0x7F800000 : f32
    %349 = vector.broadcast %cst_136 : f32 to vector<32x32xf32>
    %350 = arith.select %344, %349, %335 : vector<32x32xi1>, vector<32x32xf32>
    %cst_137 = arith.constant dense<0x7F800000> : vector<32xf32>
    %351 = vector.multi_reduction <minimumf>, %350, %cst_137 [1] : vector<32x32xf32> to vector<32xf32>
    %352 = vector.shape_cast %351 : vector<32xf32> to vector<32x1xf32>
    %353 = vector.broadcast %352 : vector<32x1xf32> to vector<32x32xf32>
    %354 = arith.cmpf ole, %350, %353 : vector<32x32xf32>
    %355 = arith.extui %354 : vector<32x32xi1> to vector<32x32xi32>
    %356 = arith.sitofp %355 : vector<32x32xi32> to vector<32x32xf32>
    %357 = arith.truncf %356 : vector<32x32xf32> to vector<32x32xbf16>
    %cst_138 = arith.constant dense<0.000000e+00> : vector<32x32xf32>
    %358 = tpu.matmul %357, %340, %cst_138 {dimension_numbers = #tpu.dot_dimension_numbers<[1], [0], [0], [1], [0, 0, 1, 1], [], []>} : vector<32x32xbf16>, vector<32x32xbf16>, vector<32x32xf32> -> vector<32x32xf32>
    %359 = arith.maximumf %348, %358 : vector<32x32xf32>
    %cst_139 = arith.constant 0x7F800000 : f32
    %360 = vector.broadcast %cst_139 : f32 to vector<32x32xf32>
    %361 = arith.select %354, %360, %350 : vector<32x32xi1>, vector<32x32xf32>
    %cst_140 = arith.constant dense<0x7F800000> : vector<32xf32>
    %362 = vector.multi_reduction <minimumf>, %361, %cst_140 [1] : vector<32x32xf32> to vector<32xf32>
    %363 = vector.shape_cast %362 : vector<32xf32> to vector<32x1xf32>
    %364 = vector.broadcast %363 : vector<32x1xf32> to vector<32x32xf32>
    %365 = arith.cmpf ole, %361, %364 : vector<32x32xf32>
    %366 = arith.extui %365 : vector<32x32xi1> to vector<32x32xi32>
    %367 = arith.sitofp %366 : vector<32x32xi32> to vector<32x32xf32>
    %368 = arith.truncf %367 : vector<32x32xf32> to vector<32x32xbf16>
    %cst_141 = arith.constant dense<0.000000e+00> : vector<32x32xf32>
    %369 = tpu.matmul %368, %340, %cst_141 {dimension_numbers = #tpu.dot_dimension_numbers<[1], [0], [0], [1], [0, 0, 1, 1], [], []>} : vector<32x32xbf16>, vector<32x32xbf16>, vector<32x32xf32> -> vector<32x32xf32>
    %370 = arith.maximumf %359, %369 : vector<32x32xf32>
    %cst_142 = arith.constant 0x7F800000 : f32
    %371 = vector.broadcast %cst_142 : f32 to vector<32x32xf32>
    %372 = arith.select %365, %371, %361 : vector<32x32xi1>, vector<32x32xf32>
    %cst_143 = arith.constant dense<0x7F800000> : vector<32xf32>
    %373 = vector.multi_reduction <minimumf>, %372, %cst_143 [1] : vector<32x32xf32> to vector<32xf32>
    %374 = vector.shape_cast %373 : vector<32xf32> to vector<32x1xf32>
    %375 = vector.broadcast %374 : vector<32x1xf32> to vector<32x32xf32>
    %376 = arith.cmpf ole, %372, %375 : vector<32x32xf32>
    %377 = arith.extui %376 : vector<32x32xi1> to vector<32x32xi32>
    %378 = arith.sitofp %377 : vector<32x32xi32> to vector<32x32xf32>
    %379 = arith.truncf %378 : vector<32x32xf32> to vector<32x32xbf16>
    %cst_144 = arith.constant dense<0.000000e+00> : vector<32x32xf32>
    %380 = tpu.matmul %379, %340, %cst_144 {dimension_numbers = #tpu.dot_dimension_numbers<[1], [0], [0], [1], [0, 0, 1, 1], [], []>} : vector<32x32xbf16>, vector<32x32xbf16>, vector<32x32xf32> -> vector<32x32xf32>
    %381 = arith.maximumf %370, %380 : vector<32x32xf32>
    %cst_145 = arith.constant 0x7F800000 : f32
    %382 = vector.broadcast %cst_145 : f32 to vector<32x32xf32>
    %383 = arith.select %376, %382, %372 : vector<32x32xi1>, vector<32x32xf32>
    %cst_146 = arith.constant dense<0x7F800000> : vector<32xf32>
    %384 = vector.multi_reduction <minimumf>, %383, %cst_146 [1] : vector<32x32xf32> to vector<32xf32>
    %385 = vector.shape_cast %384 : vector<32xf32> to vector<32x1xf32>
    %386 = vector.broadcast %385 : vector<32x1xf32> to vector<32x32xf32>
    %387 = arith.cmpf ole, %383, %386 : vector<32x32xf32>
    %388 = arith.extui %387 : vector<32x32xi1> to vector<32x32xi32>
    %389 = arith.sitofp %388 : vector<32x32xi32> to vector<32x32xf32>
    %390 = arith.truncf %389 : vector<32x32xf32> to vector<32x32xbf16>
    %cst_147 = arith.constant dense<0.000000e+00> : vector<32x32xf32>
    %391 = tpu.matmul %390, %340, %cst_147 {dimension_numbers = #tpu.dot_dimension_numbers<[1], [0], [0], [1], [0, 0, 1, 1], [], []>} : vector<32x32xbf16>, vector<32x32xbf16>, vector<32x32xf32> -> vector<32x32xf32>
    %392 = arith.maximumf %381, %391 : vector<32x32xf32>
    %cst_148 = arith.constant 0x7F800000 : f32
    %393 = vector.broadcast %cst_148 : f32 to vector<32x32xf32>
    %394 = arith.select %387, %393, %383 : vector<32x32xi1>, vector<32x32xf32>
    %cst_149 = arith.constant dense<0x7F800000> : vector<32xf32>
    %395 = vector.multi_reduction <minimumf>, %394, %cst_149 [1] : vector<32x32xf32> to vector<32xf32>
    %396 = vector.shape_cast %395 : vector<32xf32> to vector<32x1xf32>
    %397 = vector.broadcast %396 : vector<32x1xf32> to vector<32x32xf32>
    %398 = arith.cmpf ole, %394, %397 : vector<32x32xf32>
    %399 = arith.extui %398 : vector<32x32xi1> to vector<32x32xi32>
    %400 = arith.sitofp %399 : vector<32x32xi32> to vector<32x32xf32>
    %401 = arith.truncf %400 : vector<32x32xf32> to vector<32x32xbf16>
    %cst_150 = arith.constant dense<0.000000e+00> : vector<32x32xf32>
    %402 = tpu.matmul %401, %340, %cst_150 {dimension_numbers = #tpu.dot_dimension_numbers<[1], [0], [0], [1], [0, 0, 1, 1], [], []>} : vector<32x32xbf16>, vector<32x32xbf16>, vector<32x32xf32> -> vector<32x32xf32>
    %403 = arith.maximumf %392, %402 : vector<32x32xf32>
    %cst_151 = arith.constant 0x7F800000 : f32
    %404 = vector.broadcast %cst_151 : f32 to vector<32x32xf32>
    %405 = arith.select %398, %404, %394 : vector<32x32xi1>, vector<32x32xf32>
    %cst_152 = arith.constant dense<0x7F800000> : vector<32xf32>
    %406 = vector.multi_reduction <minimumf>, %405, %cst_152 [1] : vector<32x32xf32> to vector<32xf32>
    %407 = vector.shape_cast %406 : vector<32xf32> to vector<32x1xf32>
    %408 = vector.broadcast %407 : vector<32x1xf32> to vector<32x32xf32>
    %409 = arith.cmpf ole, %405, %408 : vector<32x32xf32>
    %410 = arith.extui %409 : vector<32x32xi1> to vector<32x32xi32>
    %411 = arith.sitofp %410 : vector<32x32xi32> to vector<32x32xf32>
    %412 = arith.truncf %411 : vector<32x32xf32> to vector<32x32xbf16>
    %cst_153 = arith.constant dense<0.000000e+00> : vector<32x32xf32>
    %413 = tpu.matmul %412, %340, %cst_153 {dimension_numbers = #tpu.dot_dimension_numbers<[1], [0], [0], [1], [0, 0, 1, 1], [], []>} : vector<32x32xbf16>, vector<32x32xbf16>, vector<32x32xf32> -> vector<32x32xf32>
    %414 = arith.maximumf %403, %413 : vector<32x32xf32>
    %cst_154 = arith.constant 0x7F800000 : f32
    %415 = vector.broadcast %cst_154 : f32 to vector<32x32xf32>
    %416 = arith.select %409, %415, %405 : vector<32x32xi1>, vector<32x32xf32>
    %cst_155 = arith.constant dense<0x7F800000> : vector<32xf32>
    %417 = vector.multi_reduction <minimumf>, %416, %cst_155 [1] : vector<32x32xf32> to vector<32xf32>
    %418 = vector.shape_cast %417 : vector<32xf32> to vector<32x1xf32>
    %419 = vector.broadcast %418 : vector<32x1xf32> to vector<32x32xf32>
    %420 = arith.cmpf ole, %416, %419 : vector<32x32xf32>
    %421 = arith.extui %420 : vector<32x32xi1> to vector<32x32xi32>
    %422 = arith.sitofp %421 : vector<32x32xi32> to vector<32x32xf32>
    %423 = arith.truncf %422 : vector<32x32xf32> to vector<32x32xbf16>
    %cst_156 = arith.constant dense<0.000000e+00> : vector<32x32xf32>
    %424 = tpu.matmul %423, %340, %cst_156 {dimension_numbers = #tpu.dot_dimension_numbers<[1], [0], [0], [1], [0, 0, 1, 1], [], []>} : vector<32x32xbf16>, vector<32x32xbf16>, vector<32x32xf32> -> vector<32x32xf32>
    %425 = arith.maximumf %414, %424 : vector<32x32xf32>
    %426 = arith.addf %338, %425 : vector<32x32xf32>
    %cst_157 = arith.constant 0.000000e+00 : f32
    %427 = vector.broadcast %cst_157 : f32 to vector<32x32xf32>
    %428 = arith.maximumf %426, %427 : vector<32x32xf32>
    %c0_158 = arith.constant 0 : index
    %c0_159 = arith.constant 0 : index
    %429 = vector.load %arg18[%c0_158, %c0_159] : memref<32x64xf32, #tpu.memory_space<vmem>>, vector<32x64xf32>
    %cst_160 = arith.constant dense<0.000000e+00> : vector<32x64xf32>
    %430 = tpu.matmul %428, %429, %cst_160 {dimension_numbers = #tpu.dot_dimension_numbers<[1], [0], [0], [1], [0, 0, 1, 1], [], []>} : vector<32x32xf32>, vector<32x64xf32>, vector<32x64xf32> -> vector<32x64xf32>
    %431 = arith.addf %324, %430 : vector<32x64xf32>
    %c0_161 = arith.constant 0 : index
    %c0_162 = arith.constant 0 : index
    %432 = vector.load %arg19[%c0_161, %c0_162] : memref<1x64xf32, #tpu.memory_space<vmem>>, vector<1x64xf32>
    %433 = vector.broadcast %432 : vector<1x64xf32> to vector<32x64xf32>
    %434 = arith.addf %431, %433 : vector<32x64xf32>
    %cst_163 = arith.constant 0.000000e+00 : f32
    %435 = vector.broadcast %cst_163 : f32 to vector<32x64xf32>
    %436 = arith.maximumf %434, %435 : vector<32x64xf32>
    %cst_164 = arith.constant dense<0xFF800000> : vector<64xf32>
    %437 = vector.multi_reduction <maximumf>, %436, %cst_164 [0] : vector<32x64xf32> to vector<64xf32>
    %438 = vector.shape_cast %437 : vector<64xf32> to vector<1x64xf32>
    %439 = tpu.iota {dimensions = array<i32: 0>} : vector<32x64xi32>
    %440 = vector.broadcast %438 : vector<1x64xf32> to vector<32x64xf32>
    %441 = arith.cmpf oge, %436, %440 : vector<32x64xf32>
    %c32_i32 = arith.constant 32 : i32
    %442 = vector.broadcast %c32_i32 : i32 to vector<32x64xi32>
    %443 = arith.select %441, %439, %442 : vector<32x64xi1>, vector<32x64xi32>
    %cst_165 = arith.constant dense<2147483647> : vector<64xi32>
    %444 = vector.multi_reduction <minsi>, %443, %cst_165 [0] : vector<32x64xi32> to vector<64xi32>
    %445 = vector.shape_cast %444 : vector<64xi32> to vector<1x64xi32>
    %c0_166 = arith.constant 0 : index
    %c0_167 = arith.constant 0 : index
    %446 = vector.load %arg20[%c0_166, %c0_167] : memref<64x32xf32, #tpu.memory_space<vmem>>, vector<64x32xf32>
    %cst_168 = arith.constant dense<0.000000e+00> : vector<1x32xf32>
    %447 = tpu.matmul %438, %446, %cst_168 {dimension_numbers = #tpu.dot_dimension_numbers<[1], [0], [0], [1], [0, 0, 1, 1], [], []>} : vector<1x64xf32>, vector<64x32xf32>, vector<1x32xf32> -> vector<1x32xf32>
    %c0_169 = arith.constant 0 : index
    %c0_170 = arith.constant 0 : index
    %448 = vector.load %arg21[%c0_169, %c0_170] : memref<1x32xf32, #tpu.memory_space<vmem>>, vector<1x32xf32>
    %449 = arith.addf %447, %448 : vector<1x32xf32>
    %cst_171 = arith.constant 0.000000e+00 : f32
    %450 = vector.broadcast %cst_171 : f32 to vector<1x32xf32>
    %451 = arith.maximumf %449, %450 : vector<1x32xf32>
    %c0_172 = arith.constant 0 : index
    %c0_173 = arith.constant 0 : index
    %452 = vector.load %arg22[%c0_172, %c0_173] : memref<32x16xf32, #tpu.memory_space<vmem>>, vector<32x16xf32>
    %cst_174 = arith.constant dense<0.000000e+00> : vector<1x16xf32>
    %453 = tpu.matmul %451, %452, %cst_174 {dimension_numbers = #tpu.dot_dimension_numbers<[1], [0], [0], [1], [0, 0, 1, 1], [], []>} : vector<1x32xf32>, vector<32x16xf32>, vector<1x16xf32> -> vector<1x16xf32>
    %c0_175 = arith.constant 0 : index
    %c0_176 = arith.constant 0 : index
    %454 = vector.load %arg23[%c0_175, %c0_176] : memref<1x16xf32, #tpu.memory_space<vmem>>, vector<1x16xf32>
    %455 = arith.addf %453, %454 : vector<1x16xf32>
    %cst_177 = arith.constant 0.000000e+00 : f32
    %456 = vector.broadcast %cst_177 : f32 to vector<1x16xf32>
    %457 = arith.maximumf %455, %456 : vector<1x16xf32>
    %c0_178 = arith.constant 0 : index
    %c0_179 = arith.constant 0 : index
    %458 = vector.load %arg24[%c0_178, %c0_179] : memref<16x10xf32, #tpu.memory_space<vmem>>, vector<16x10xf32>
    %cst_180 = arith.constant dense<0.000000e+00> : vector<1x10xf32>
    %459 = tpu.matmul %457, %458, %cst_180 {dimension_numbers = #tpu.dot_dimension_numbers<[1], [0], [0], [1], [0, 0, 1, 1], [], []>} : vector<1x16xf32>, vector<16x10xf32>, vector<1x10xf32> -> vector<1x10xf32>
    %c0_181 = arith.constant 0 : index
    %c0_182 = arith.constant 0 : index
    %460 = vector.load %arg25[%c0_181, %c0_182] : memref<1x10xf32, #tpu.memory_space<vmem>>, vector<1x10xf32>
    %461 = arith.addf %459, %460 : vector<1x10xf32>
    %c0_183 = arith.constant 0 : index
    %c0_184 = arith.constant 0 : index
    %c0_185 = arith.constant 0 : index
    %462 = vector.load %arg26[%c0_183, %c0_184, %c0_185] : memref<1x1x10xf32, #tpu.memory_space<vmem>>, vector<1x1x10xf32>
    %463 = vector.shape_cast %462 : vector<1x1x10xf32> to vector<1x10xf32>
    %464 = vector.shape_cast %461 : vector<1x10xf32> to vector<1x1x10xf32>
    tpu.vector_store %arg26[%c0_183, %c0_184, %c0_185], %464 {strides = array<i32>} : memref<1x1x10xf32, #tpu.memory_space<vmem>>, vector<1x1x10xf32>,
    %c0_186 = arith.constant 0 : index
    %c0_187 = arith.constant 0 : index
    %c0_188 = arith.constant 0 : index
    %465 = vector.load %arg27[%c0_186, %c0_187, %c0_188] : memref<1x1x64xi32, #tpu.memory_space<vmem>>, vector<1x1x64xi32>
    %466 = vector.shape_cast %465 : vector<1x1x64xi32> to vector<1x64xi32>
    %467 = vector.shape_cast %445 : vector<1x64xi32> to vector<1x1x64xi32>
    tpu.vector_store %arg27[%c0_186, %c0_187, %c0_188], %467 {strides = array<i32>} : memref<1x1x64xi32, #tpu.memory_space<vmem>>, vector<1x1x64xi32>,
    return
  }
  func.func @transform_0(%arg0: i32) -> (i32, i32, i32) {
    %c0_i32 = arith.constant 0 : i32
    %c0_i32_0 = arith.constant 0 : i32
    %c0_i32_1 = arith.constant 0 : i32
    return %arg0, %c0_i32, %c0_i32_0 : i32, i32, i32
  }
  func.func @transform_1(%arg0: i32) -> (i32, i32, i32) {
    %c0_i32 = arith.constant 0 : i32
    %c0_i32_0 = arith.constant 0 : i32
    %c0_i32_1 = arith.constant 0 : i32
    return %arg0, %c0_i32, %c0_i32_0 : i32, i32, i32
  }
  func.func @transform_2(%arg0: i32) -> (i32, i32) {
    %c0_i32 = arith.constant 0 : i32
    %c0_i32_0 = arith.constant 0 : i32
    %c0_i32_1 = arith.constant 0 : i32
    return %c0_i32, %c0_i32_0 : i32, i32
  }
  func.func @transform_3(%arg0: i32) -> (i32, i32) {
    %c0_i32 = arith.constant 0 : i32
    %c0_i32_0 = arith.constant 0 : i32
    %c0_i32_1 = arith.constant 0 : i32
    return %c0_i32, %c0_i32_0 : i32, i32
  }
  func.func @transform_4(%arg0: i32) -> (i32, i32) {
    %c0_i32 = arith.constant 0 : i32
    %c0_i32_0 = arith.constant 0 : i32
    %c0_i32_1 = arith.constant 0 : i32
    return %c0_i32, %c0_i32_0 : i32, i32
  }
  func.func @transform_5(%arg0: i32) -> (i32, i32) {
    %c0_i32 = arith.constant 0 : i32
    %c0_i32_0 = arith.constant 0 : i32
    %c0_i32_1 = arith.constant 0 : i32
    return %c0_i32, %c0_i32_0 : i32, i32
  }
  func.func @transform_6(%arg0: i32) -> (i32, i32) {
    %c0_i32 = arith.constant 0 : i32
    %c0_i32_0 = arith.constant 0 : i32
    %c0_i32_1 = arith.constant 0 : i32
    return %c0_i32, %c0_i32_0 : i32, i32
  }
  func.func @transform_7(%arg0: i32) -> (i32, i32) {
    %c0_i32 = arith.constant 0 : i32
    %c0_i32_0 = arith.constant 0 : i32
    %c0_i32_1 = arith.constant 0 : i32
    return %c0_i32, %c0_i32_0 : i32, i32
  }
  func.func @transform_8(%arg0: i32) -> (i32, i32) {
    %c0_i32 = arith.constant 0 : i32
    %c0_i32_0 = arith.constant 0 : i32
    %c0_i32_1 = arith.constant 0 : i32
    return %c0_i32, %c0_i32_0 : i32, i32
  }
  func.func @transform_9(%arg0: i32) -> (i32, i32) {
    %c0_i32 = arith.constant 0 : i32
    %c0_i32_0 = arith.constant 0 : i32
    %c0_i32_1 = arith.constant 0 : i32
    return %c0_i32, %c0_i32_0 : i32, i32
  }
  func.func @transform_10(%arg0: i32) -> (i32, i32) {
    %c0_i32 = arith.constant 0 : i32
    %c0_i32_0 = arith.constant 0 : i32
    %c0_i32_1 = arith.constant 0 : i32
    return %c0_i32, %c0_i32_0 : i32, i32
  }
  func.func @transform_11(%arg0: i32) -> (i32, i32) {
    %c0_i32 = arith.constant 0 : i32
    %c0_i32_0 = arith.constant 0 : i32
    %c0_i32_1 = arith.constant 0 : i32
    return %c0_i32, %c0_i32_0 : i32, i32
  }
  func.func @transform_12(%arg0: i32) -> (i32, i32) {
    %c0_i32 = arith.constant 0 : i32
    %c0_i32_0 = arith.constant 0 : i32
    %c0_i32_1 = arith.constant 0 : i32
    return %c0_i32, %c0_i32_0 : i32, i32
  }
  func.func @transform_13(%arg0: i32) -> (i32, i32) {
    %c0_i32 = arith.constant 0 : i32
    %c0_i32_0 = arith.constant 0 : i32
    %c0_i32_1 = arith.constant 0 : i32
    return %c0_i32, %c0_i32_0 : i32, i32
  }
  func.func @transform_14(%arg0: i32) -> (i32, i32) {
    %c0_i32 = arith.constant 0 : i32
    %c0_i32_0 = arith.constant 0 : i32
    %c0_i32_1 = arith.constant 0 : i32
    return %c0_i32, %c0_i32_0 : i32, i32
  }
  func.func @transform_15(%arg0: i32) -> (i32, i32) {
    %c0_i32 = arith.constant 0 : i32
    %c0_i32_0 = arith.constant 0 : i32
    %c0_i32_1 = arith.constant 0 : i32
    return %c0_i32, %c0_i32_0 : i32, i32
  }
  func.func @transform_16(%arg0: i32) -> (i32, i32) {
    %c0_i32 = arith.constant 0 : i32
    %c0_i32_0 = arith.constant 0 : i32
    %c0_i32_1 = arith.constant 0 : i32
    return %c0_i32, %c0_i32_0 : i32, i32
  }
  func.func @transform_17(%arg0: i32) -> (i32, i32) {
    %c0_i32 = arith.constant 0 : i32
    %c0_i32_0 = arith.constant 0 : i32
    %c0_i32_1 = arith.constant 0 : i32
    return %c0_i32, %c0_i32_0 : i32, i32
  }
  func.func @transform_18(%arg0: i32) -> (i32, i32) {
    %c0_i32 = arith.constant 0 : i32
    %c0_i32_0 = arith.constant 0 : i32
    %c0_i32_1 = arith.constant 0 : i32
    return %c0_i32, %c0_i32_0 : i32, i32
  }
  func.func @transform_19(%arg0: i32) -> (i32, i32) {
    %c0_i32 = arith.constant 0 : i32
    %c0_i32_0 = arith.constant 0 : i32
    %c0_i32_1 = arith.constant 0 : i32
    return %c0_i32, %c0_i32_0 : i32, i32
  }
  func.func @transform_20(%arg0: i32) -> (i32, i32) {
    %c0_i32 = arith.constant 0 : i32
    %c0_i32_0 = arith.constant 0 : i32
    %c0_i32_1 = arith.constant 0 : i32
    return %c0_i32, %c0_i32_0 : i32, i32
  }
  func.func @transform_21(%arg0: i32) -> (i32, i32) {
    %c0_i32 = arith.constant 0 : i32
    %c0_i32_0 = arith.constant 0 : i32
    %c0_i32_1 = arith.constant 0 : i32
    return %c0_i32, %c0_i32_0 : i32, i32
  }
  func.func @transform_22(%arg0: i32) -> (i32, i32) {
    %c0_i32 = arith.constant 0 : i32
    %c0_i32_0 = arith.constant 0 : i32
    %c0_i32_1 = arith.constant 0 : i32
    return %c0_i32, %c0_i32_0 : i32, i32
  }
  func.func @transform_23(%arg0: i32) -> (i32, i32) {
    %c0_i32 = arith.constant 0 : i32
    %c0_i32_0 = arith.constant 0 : i32
    %c0_i32_1 = arith.constant 0 : i32
    return %c0_i32, %c0_i32_0 : i32, i32
  }
  func.func @transform_24(%arg0: i32) -> (i32, i32) {
    %c0_i32 = arith.constant 0 : i32
    %c0_i32_0 = arith.constant 0 : i32
    %c0_i32_1 = arith.constant 0 : i32
    return %c0_i32, %c0_i32_0 : i32, i32
  }
  func.func @transform_25(%arg0: i32) -> (i32, i32, i32) {
    %c0_i32 = arith.constant 0 : i32
    %c0_i32_0 = arith.constant 0 : i32
    %c0_i32_1 = arith.constant 0 : i32
    return %arg0, %c0_i32, %c0_i32_0 : i32, i32, i32
  }
  func.func @transform_26(%arg0: i32) -> (i32, i32, i32) {
    %c0_i32 = arith.constant 0 : i32
    %c0_i32_0 = arith.constant 0 : i32
    %c0_i32_1 = arith.constant 0 : i32
    return %arg0, %c0_i32, %c0_i32_0 : i32, i32, i32
  }
}

</mosaic_0001>

<bundles_post_ra>
// kernel: squeeze.3
= control target key start
LH: loop header
LB: loop body
LE: loop exit
PB: predicated region body
PF: predicated region fallthrough
CT: control target
= control target key end

     0   :  { %vm8_vm0 = vcmask 23552   ;;  %s40_s8 = smov 122   ;;  %s60_s0 = inlined_call_operand.vmem [shape: f32[2,9], index: 0, kind: input, shape index: {}]   ;;  %s61_s1 = inlined_call_operand.vmem [shape: f32[2,3,3], index: 1, kind: output, shape index: {}]  }
   0x1   :  { %v5_v0 = vld [vmem:[%s60_s0] sm:$0x3]  ;;  %s39_s0 = smov 125  }
   0x2   :  { %6 = vst [vmem:[#allocation1] sm:$0x3] %v5_v0 }
   0x9   :  { %v10_v1 = vld [vmem:[#allocation1] sm:$0x3]  }
   0xa   :  { %v7_v2 = vld [vmem:[#allocation1] sm:$0x3]   ;;  %11 = vrot.lane.b32.xlu0 %v10_v1, %s39_s0 }
   0xb   :  { %9 = vst.msk [vmem:[#allocation0] ss:$8 sm:$0x3] %vm8_vm0, %v7_v2   ;;  %v16_v3 = vld [vmem:[#allocation1] sm:$0x3]  }
   0xe   :  { %17 = vrot.lane.b32.xlu0 %v16_v3, %s40_s8 }
  0x7c   :  { %v12_v4 = vpop.permute.xlu0 %11  }
  0x7d   :  { %15 = vst.msk [vmem:[#allocation0 + $0x1] ss:$8 sm:$0x3] %vm8_vm0, %v12_v4  }
  0x80   :  { %v18_v5 = vpop.permute.xlu0 %17  }
  0x81   :  { %21 = vst.msk [vmem:[#allocation0 + $0x2] ss:$8 sm:$0x3] %vm8_vm0, %v18_v5  }
  0x88   :  { %v26_v6 = vld [vmem:[#allocation0] sm:$0xf]  ;;  %v31_v7 = vld [vmem:[#allocation0 + $0x8] sm:$0xf] }
  0x89   :  { %29 = vst [vmem:[%s61_s1] sm:$0xf] %v26_v6  ;;  %36 = vst [vmem:[%s61_s1 + $0x4] sm:$0xf] %v31_v7 }

// kernel: dgcnn_forward.2
= control target key start
LH: loop header
LB: loop body
LE: loop exit
PB: predicated region body
PF: predicated region fallthrough
CT: control target
= control target key end

     0   :  { %s3440_s29 = smov 0   ;;  %s3924_s0 = inlined_call_operand.vmem [shape: f32[2,32,3], index: 0, kind: input, shape index: {}]   ;;  %s3925_s1 = inlined_call_operand.vmem [shape: f32[3,16], index: 1, kind: input, shape index: {}]   ;;  %s3926_s2 = inlined_call_operand.vmem [shape: f32[3,16], index: 2, kind: input, shape index: {}]   ;;  %s3927_s3 = inlined_call_operand.vmem [shape: f32[1,16], index: 3, kind: input, shape index: {}]   ;;  %s3928_s4 = inlined_call_operand.vmem [shape: f32[16,32], index: 4, kind: input, shape index: {}]   ;;  %s3929_s5 = inlined_call_operand.vmem [shape: f32[1,32], index: 5, kind: input, shape index: {}]   ;;  %s3930_s6 = inlined_call_operand.vmem [shape: f32[32,64], index: 6, kind: input, shape index: {}]   ;;  %s3931_s7 = inlined_call_operand.vmem [shape: f32[1,64], index: 7, kind: input, shape index: {}]   ;;  %s3932_s8 = inlined_call_operand.vmem [shape: f32[64,32], index: 8, kind: input, shape index: {}]   ;;  %s3933_s9 = inlined_call_operand.vmem [shape: f32[1,32], index: 9, kind: input, shape index: {}]   ;;  %s3934_s10 = inlined_call_operand.vmem [shape: f32[32,16], index: 10, kind: input, shape index: {}]   ;;  %s3935_s11 = inlined_call_operand.vmem [shape: f32[1,16], index: 11, kind: input, shape index: {}]   ;;  %s3936_s12 = inlined_call_operand.vmem [shape: f32[16,9], index: 12, kind: input, shape index: {}]   ;;  %s3937_s13 = inlined_call_operand.vmem [shape: f32[1,9], index: 13, kind: input, shape index: {}]   ;;  %s3938_s14 = inlined_call_operand.vmem [shape: f32[2,1,9], index: 14, kind: output, shape index: {}]  }
   0x1 LB: > { %s2856_s30 = sadd.s32 4294967295, %s3360_s29   ;;  %p2860_p0 = scmp.ge.s32.totalorder %s3360_s29, 1  ;;  %s3360_s29 = sphi %s3440_s29, %s24_s29  }
   0x2   : > { %p412_p1 = scmp.lt.s32.totalorder %s3360_s29, 3 }
   0x4   : > { %p413_p2 = pnand %p2860_p0, %p412_p1 }
   0x5   : > { %p456_p3 = scmp.lt.s32.totalorder (!%p413_p2), %s2856_s30, 1 }
   0x6   : > { %416 = sbr.rel (%p413_p2) target bundleno = 2583 (0xa17), region = 76 }
   0xb   : > { %v3362_v0 = vmov 0.0   ;;  %vm3363_vm0 = vmmov 0   ;;  %s3940_s30 = smov (!%p456_p3, %s2856_s30), 1  ;;  %vm475_vm1 = vcmask 23552   ;;  %v470_v9 = vld [vmem:[%s3926_s2] sm:$0x7]  ;;  %v666_v11 = vlaneseq }
   0xc   : > { %3121 = vmatprep.subr.mxu1 %v3362_v0  ;;  %3129 = vmatprep.mubr.msk.f32.mxu1 %vm3363_vm0, %v3362_v0  ;;  %s2978_s15 = sshll.u32 %s3940_s30, 5  ;;  %vm680_vm2 = vcmask 1042432   ;;  %v3364_v10 = vmov 1.0   ;;  %vm859_vm3 = vcmask 261120   ;;  %v469_v36 = vld [vmem:[%s3925_s1] sm:$0x7]  ;;  %s463_s21 = scalar_lea.vmem %s3938_s14, %s3940_s30 }
   0xd   : > { %s460_s18 = scalar_lea.vmem %s3924_s0, %s2978_s15  ;;  %v667_v12 = vshrl.u32 %v666_v11, 7  ;;  %v3552_v58 = vld [vmem:[%s3928_s4 + $0x8] sm:$0xff]  ;;  %v3559_v59 = vld [vmem:[%s3928_s4] sm:$0xff]  ;;  %vm955_vm12 = vcmask 130048  }
   0xe   : > { %v3457_v1 = vld [vmem:[%s460_s18 + $0x18] sm:$0xff]  ;;  %v3459_v2 = vld [vmem:[%s460_s18 + $0x10] sm:$0xff]  ;;  %v465_v4 = vld [vmem:[%s460_s18] sm:$0xff] }
   0xf   : > { %3107 = vmatprep.subr.msk.mxu0 %vm475_vm1, %v3457_v1  ;;  %v576_v3 = vmul.f32 %v3457_v1, %v3457_v1  ;;  %3115 = vmatprep.mubr.msk.f32.mxu0 %vm475_vm1, %v465_v4  ;;  %v575_v5 = vmul.f32 %v3459_v2, %v3459_v2  ;;  %v3474_v6 = vld [vmem:[%s460_s18 + $0x8] sm:$0xff]  ;;  %v573_v8 = vmul.f32 %v465_v4, %v465_v4  ;;  %v668_v13 = vsub.s32 0, %v667_v12 }
  0x10   : > { %3108 = vmatpush3.xpose.msk.msra.mxu0 %vm475_vm1, %v3457_v1  ;;  %v574_v7 = vmul.f32 %v3474_v6, %v3474_v6 }
  0x11   : > { %3122 = vmatpush3.xpose.msk.msra.mxu1 %vm475_vm1, %v576_v3  ;;  %3109 = vmatprep.subr.msk.mxu0 %vm475_vm1, %v3459_v2 }
  0x12   : > { %3123 = vmatprep.subr.mxu1 %v3362_v0 }
  0x14   : > { %3110 = vmatpush3.xpose.msk.msra.mxu0 %vm475_vm1, %v3459_v2 }
  0x15   : > { %3124 = vmatpush3.xpose.msk.msra.mxu1 %vm475_vm1, %v575_v5  ;;  %3111 = vmatprep.subr.msk.mxu0 %vm475_vm1, %v3474_v6 }
  0x16   : > { %3125 = vmatprep.subr.mxu1 %v3362_v0 }
  0x18   : > { %3112 = vmatpush3.xpose.msk.msra.mxu0 %vm475_vm1, %v3474_v6 }
  0x19   : > { %3126 = vmatpush3.xpose.msk.msra.mxu1 %vm475_vm1, %v574_v7  ;;  %3113 = vmatprep.subr.msk.mxu0 %vm475_vm1, %v465_v4 }
  0x1a   : > { %3127 = vmatprep.subr.mxu1 %v3362_v0 }
  0x1c   : > { %3114 = vmatpush3.xpose.msk.msra.mxu0 %vm475_vm1, %v465_v4 }
  0x1d   : > { %3128 = vmatpush3.xpose.msk.msra.mxu1 %vm475_vm1, %v573_v8  ;;  %3140 = vmatprep.subr.msk.mxu0 %vm680_vm2, %v470_v9 }
  0x1e   : > { %3132 = vmatprep.subr.msk.mxu1 %vm680_vm2, %v469_v36 }
  0x1f   : > { %3116 = vmatmul.mubr.msk.f32.vlgmr.msra.gmra.mxu0 %vm475_vm1, %v3474_v6 }
  0x20   : > { %3130 = vmatmul.mubr.msk.f32.vlgmr.msra.gmra.mxu1 %vm475_vm1, %v3364_v10  ;;  %3118 = vmatprep.mubr.msk.f32.mxu0 %vm475_vm1, %v3459_v2 }
  0x21   : > { %3141 = vmatpush3.msk.msra.mxu0 %vm680_vm2, %v470_v9  ;;  %3134 = vmatprep.mubr.msk.f32.mxu1 %vm475_vm1, %v465_v4 }
  0x22   : > { %3133 = vmatpush3.msk.msra.mxu1 %vm680_vm2, %v469_v36  ;;  %3156 = vmatprep.subr.mxu0 %v3552_v58 }
  0x23   : > { %3119 = vmatmul.mubr.msk.f32.gmra.mxu0 %vm475_vm1, %v3457_v1 }
  0x24   : > { %3142 = vmatprep.mubr.msk.f32.mxu0 %vm475_vm1, %v465_v4  ;;  %3135 = vmatmul.mubr.msk.f32.vlgmr.msra.gmra.mxu1 %vm475_vm1, %v3474_v6 }
  0x25   : > { %3137 = vmatprep.mubr.msk.f32.mxu1 %vm475_vm1, %v3459_v2 }
  0x27   : > { %3143 = vmatmul.mubr.msk.f32.vlgmr.msra.gmra.mxu0 %vm475_vm1, %v3474_v6 }
  0x28   : > { %3145 = vmatprep.mubr.msk.f32.mxu0 %vm475_vm1, %v3459_v2  ;;  %3138 = vmatmul.mubr.msk.f32.gmra.mxu1 %vm475_vm1, %v3457_v1 }
  0x29   : > { %3157 = vmatpush3.msra.mxu0 %v3552_v58 }
  0x2a   : > { %3158 = vmatprep.subr.mxu0 %v3559_v59 }
  0x2b   : > { %3146 = vmatmul.mubr.msk.f32.gmra.mxu0 %vm475_vm1, %v3457_v1 }
  0x2c   : > { %3159 = vmatpush3.msra.mxu0 %v3559_v59 }
  0x2d   : > { %3174 = vmatprep.subr.mxu0 %v3552_v58 }
  0xdf   : > { %v3117_v14 = vpop.f32.mrf.mxu0 }
  0xe0   : > { %v658_v15 = vpop.f32.mrf.mxu1  ;;  %v663_v18 = vmul.f32 2.0, %v3117_v14 }
  0xe1   : > { %v669_v16 = vrot.slane %v658_v15, %v668_v13  ;;  %v554_v17 = vpop.f32.mrf.mxu0 }
  0xe2   : > { %v662_v19 = vmul.f32 2.0, %v554_v17  ;;  %v3131_v20 = vpop.f32.mrf.mxu1 }
  0xe3   : > { %v3120_v21 = vpop.f32.mrf.mxu0  ;;  %v671_v27 = vsub.f32 %v669_v16, %v663_v18 }
  0xe4   : > { %v670_v22 = vsub.f32 %v669_v16, %v662_v19  ;;  %v665_v24 = vmul.f32 2.0, %v3120_v21  ;;  %v3136_v15 = vpop.f32.mrf.mxu1  ;;  %v2876_v19 = vld [vmem:[%s3927_s3] ss:$0 sm:$0xff] }
  0xe5   : > { %v564_v23 = vpop.f32.mrf.mxu0  ;;  %v863_v31 = vsel %vm859_vm3, %v671_v27, inf }
  0xe6   : > { %v664_v25 = vmul.f32 2.0, %v564_v23  ;;  %v860_v26 = vsel %vm859_vm3, %v670_v22, inf  ;;  %v673_v30 = vsub.f32 %v669_v16, %v665_v24  ;;  %v3591_v24 = vadd.f32 %v3136_v15, %v2876_v19 }
  0xe7   : > { %861 = vmin.xlane.f32.xlu0 %v860_v26  ;;  %v3144_v29 = vpop.f32.mrf.mxu0 }
  0xe8   : > { %v672_v28 = vsub.f32 %v669_v16, %v664_v25  ;;  %v869_v34 = vsel %vm859_vm3, %v673_v30, inf  ;;  %v750_v16 = vpop.f32.mrf.mxu1 }
  0xe9   : > { %v838_v33 = vpop.f32.mrf.mxu0  ;;  %v3587_v20 = vadd.f32 %v2876_v19, %v750_v16 }
  0xea   : > { %v866_v32 = vsel %vm859_vm3, %v672_v28, inf  ;;  %v3519_v38 = vpack.c.bf16 %v3144_v29, %v838_v33  ;;  %v3139_v17 = vpop.f32.mrf.mxu1 }
  0xeb   : > { %864 = vmin.xlane.f32.xlu0 %v863_v31  ;;  %867 = vmin.xlane.f32.xlu1 %v866_v32  ;;  %v3147_v35 = vpop.f32.mrf.mxu0 }
  0xec   : > { %v760_v18 = vpop.f32.mrf.mxu1 }
  0xed   : > { %v848_v37 = vpop.f32.mrf.mxu0 }
  0xee   : > { %v3521_v39 = vpack.c.bf16 %v3147_v35, %v848_v37 }
  0xef   : > { %870 = vmin.xlane.f32.xlu1 %v869_v34 }
  0xf0   : > { %3148 = vmatprep.subr.bf16.mxu1 %v3521_v39 }
  0xf1   : > { %3149 = vmatpush3.bf16.msra.mxu1 %v3521_v39 }
  0xf2   : > { %3150 = vmatprep.subr.bf16.mxu1 %v3519_v38 }
  0xf5   : > { %3151 = vmatpush3.bf16.msra.mxu1 %v3519_v38 }
  0xf6   : > { %3166 = vmatprep.subr.bf16.mxu1 %v3521_v39 }
 0x170   : > { %v862_v40 = vpop.xlane.xlu0 %861 }
 0x171   : > { %vm872_vm4 = vcmp.le.f32.partialorder %v670_v22, %v862_v40 }
 0x172   : > { %v1057_v41 = vsel %vm872_vm4, inf, %v670_v22  ;;  %v2887_v45 = vsel %vm872_vm4, 1.0, %v3362_v0  ;;  %v3589_v22 = vadd.f32 %v2876_v19, %v760_v18 }
 0x173   : > { %v1061_v42 = vsel %vm859_vm3, %v1057_v41, inf }
 0x174   : > { %1062 = vmin.xlane.f32.xlu0 %v1061_v42  ;;  %v865_v43 = vpop.xlane.xlu0 %864  ;;  %v868_v44 = vpop.xlane.xlu1 %867 }
 0x175   : > { %vm873_vm5 = vcmp.le.f32.partialorder %v671_v27, %v865_v43  ;;  %vm874_vm6 = vcmp.le.f32.partialorder %v672_v28, %v868_v44 }
 0x176   : > { %v2888_v46 = vsel %vm873_vm5, 1.0, %v3362_v0  ;;  %v1058_v47 = vsel %vm873_vm5, inf, %v671_v27  ;;  %v1059_v48 = vsel %vm874_vm6, inf, %v672_v28  ;;  %v2889_v53 = vsel %vm874_vm6, 1.0, %v3362_v0 }
 0x177   : > { %v884_v49 = vpack.c.bf16 %v2888_v46, %v2887_v45  ;;  %v1064_v50 = vsel %vm859_vm3, %v1058_v47, inf  ;;  %v1067_v51 = vsel %vm859_vm3, %v1059_v48, inf  ;;  %v3594_v27 = vadd.f32 %v3139_v17, %v2876_v19 }
 0x178   : > { %1065 = vmin.xlane.f32.xlu1 %v1064_v50  ;;  %1068 = vmin.xlane.f32.xlu0 %v1067_v51  ;;  %v871_v52 = vpop.xlane.xlu1 %870 }
 0x179   : > { %vm875_vm7 = vcmp.le.f32.partialorder %v673_v30, %v871_v52  ;;  %3152 = vmatprep.mubr.msk.bf16.mxu1 %vm859_vm3, %v884_v49 }
 0x17a   : > { %v2890_v54 = vsel %vm875_vm7, 1.0, %v3362_v0  ;;  %v1060_v55 = vsel %vm875_vm7, inf, %v673_v30 }
 0x17b   : > { %v885_v56 = vpack.c.bf16 %v2890_v54, %v2889_v53  ;;  %v1070_v57 = vsel %vm859_vm3, %v1060_v55, inf }
 0x17c   : > { %1071 = vmin.xlane.f32.xlu1 %v1070_v57 }
 0x17d   : > { %3153 = vmatmul.mubr.msk.bf16.vlgmr.msra.gmra.mxu1 %vm859_vm3, %v885_v56 }
 0x17e   : > { %3167 = vmatpush3.bf16.msra.mxu1 %v3521_v39 }
 0x17f   : > { %3168 = vmatprep.subr.bf16.mxu1 %v3519_v38 }
 0x182   : > { %3169 = vmatpush3.bf16.msra.mxu1 %v3519_v38 }
 0x183   : > { %3184 = vmatprep.subr.bf16.mxu1 %v3521_v39 }
 0x1fd   : > { %v1063_v60 = vpop.xlane.xlu0 %1062 }
 0x1fe   : > { %vm1073_vm8 = vcmp.le.f32.partialorder %v1057_v41, %v1063_v60 }
 0x1ff   : > { %v3564_v61 = vsel %vm1073_vm8, inf, %v1057_v41  ;;  %v2898_v2 = vsel %vm1073_vm8, 1.0, %v3362_v0 }
 0x200   : > { %v1259_v62 = vsel %vm859_vm3, %v3564_v61, inf }
 0x201   : > { %1260 = vmin.xlane.f32.xlu0 %v1259_v62  ;;  %v1069_v63 = vpop.xlane.xlu0 %1068  ;;  %v1066_v1 = vpop.xlane.xlu1 %1065 }
 0x202   : > { %vm1075_vm9 = vcmp.le.f32.partialorder %v1059_v48, %v1069_v63  ;;  %vm1074_vm10 = vcmp.le.f32.partialorder %v1058_v47, %v1066_v1 }
 0x203   : > { %v3569_v3 = vsel %vm1075_vm9, inf, %v1059_v48  ;;  %v2899_v4 = vsel %vm1074_vm10, 1.0, %v3362_v0  ;;  %v1256_v5 = vsel %vm1074_vm10, inf, %v1058_v47  ;;  %v2900_v10 = vsel %vm1075_vm9, 1.0, %v3362_v0 }
 0x204   : > { %v1085_v6 = vpack.c.bf16 %v2899_v4, %v2898_v2  ;;  %v1265_v7 = vsel %vm859_vm3, %v3569_v3, inf  ;;  %v1262_v8 = vsel %vm859_vm3, %v1256_v5, inf }
 0x205   : > { %1266 = vmin.xlane.f32.xlu0 %v1265_v7  ;;  %1263 = vmin.xlane.f32.xlu1 %v1262_v8  ;;  %v1072_v9 = vpop.xlane.xlu1 %1071 }
 0x206   : > { %vm1076_vm11 = vcmp.le.f32.partialorder %v1060_v55, %v1072_v9  ;;  %3170 = vmatprep.mubr.msk.bf16.mxu1 %vm859_vm3, %v1085_v6 }
 0x207   : > { %v2901_v11 = vsel %vm1076_vm11, 1.0, %v3362_v0  ;;  %v1258_v12 = vsel %vm1076_vm11, inf, %v1060_v55 }
 0x208   : > { %v1086_v13 = vpack.c.bf16 %v2901_v11, %v2900_v10  ;;  %v1268_v14 = vsel %vm859_vm3, %v1258_v12, inf }
 0x209   : > { %1269 = vmin.xlane.f32.xlu1 %v1268_v14 }
 0x20a   : > { %3171 = vmatmul.mubr.msk.bf16.vlgmr.msra.gmra.mxu1 %vm859_vm3, %v1086_v13 }
 0x20b   : > { %3185 = vmatpush3.bf16.msra.mxu1 %v3521_v39 }
 0x20c   : > { %3186 = vmatprep.subr.bf16.mxu1 %v3519_v38 }
 0x20f   : > { %3187 = vmatpush3.bf16.msra.mxu1 %v3519_v38 }
 0x210   : > { %3202 = vmatprep.subr.bf16.mxu1 %v3521_v39 }
 0x23d   : > { %v3154_v21 = vpop.f32.mrf.mxu1 }
 0x23e   : > { %v943_v29 = vadd.f32 %v3154_v21, %v3589_v22 }
 0x23f   : > { %v926_v23 = vpop.f32.mrf.mxu1 }
 0x240   : > { %v941_v25 = vadd.f32 %v926_v23, %v3587_v20  ;;  %v947_v34 = vmax.f32 %v943_v29, 0.0 }
 0x241   : > { %v3155_v26 = vpop.f32.mrf.mxu1 }
 0x242   : > { %v945_v28 = vmax.f32 %v941_v25, 0.0  ;;  %v944_v32 = vadd.f32 %v3155_v26, %v3594_v27 }
 0x243   : > { %v929_v30 = vpop.f32.mrf.mxu1 }
 0x244   : > { %v942_v31 = vadd.f32 %v929_v30, %v3591_v24  ;;  %3160 = vmatprep.mubr.msk.f32.mxu0 %vm955_vm12, %v945_v28  ;;  %v948_v35 = vmax.f32 %v944_v32, 0.0 }
 0x246   : > { %v946_v33 = vmax.f32 %v942_v31, 0.0 }
 0x248   : > { %3161 = vmatmul.mubr.msk.f32.vlgmr.msra.gmra.mxu0 %vm955_vm12, %v946_v33 }
 0x249   : > { %3163 = vmatprep.mubr.msk.f32.mxu0 %vm955_vm12, %v947_v34  ;;  %3175 = vmatpush3.msra.mxu0 %v3552_v58 }
 0x24a   : > { %3176 = vmatprep.subr.mxu0 %v3559_v59 }
 0x24b   : > { %3177 = vmatpush3.msra.mxu0 %v3559_v59 }
 0x24c   : > { %3164 = vmatmul.mubr.msk.f32.gmra.mxu0 %vm955_vm12, %v948_v35  ;;  %3192 = vmatprep.subr.mxu0 %v3552_v58 }
 0x28a   : > { %v1261_v36 = vpop.xlane.xlu0 %1260 }
 0x28b   : > { %vm1271_vm13 = vcmp.le.f32.partialorder %v3564_v61, %v1261_v36 }
 0x28c   : > { %v1453_v37 = vsel %vm1271_vm13, inf, %v3564_v61  ;;  %v2908_v43 = vsel %vm1271_vm13, 1.0, %v3362_v0 }
 0x28d   : > { %v1457_v40 = vsel %vm859_vm3, %v1453_v37, inf }
 0x28e   : > { %1458 = vmin.xlane.f32.xlu0 %v1457_v40  ;;  %v1267_v41 = vpop.xlane.xlu0 %1266  ;;  %v1264_v42 = vpop.xlane.xlu1 %1263 }
 0x28f   : > { %vm1273_vm14 = vcmp.le.f32.partialorder %v3569_v3, %v1267_v41  ;;  %vm1272_vm15 = vcmp.le.f32.partialorder %v1256_v5, %v1264_v42 }
 0x290   : > { %v3613_v44 = vsel %vm1273_vm14, inf, %v3569_v3  ;;  %v2909_v45 = vsel %vm1272_vm15, 1.0, %v3362_v0  ;;  %v1454_v46 = vsel %vm1272_vm15, inf, %v1256_v5  ;;  %v2910_v51 = vsel %vm1273_vm14, 1.0, %v3362_v0 }
 0x291   : > { %v1283_v47 = vpack.c.bf16 %v2909_v45, %v2908_v43  ;;  %v1463_v48 = vsel %vm859_vm3, %v3613_v44, inf  ;;  %v1460_v49 = vsel %vm859_vm3, %v1454_v46, inf }
 0x292   : > { %1464 = vmin.xlane.f32.xlu0 %v1463_v48  ;;  %1461 = vmin.xlane.f32.xlu1 %v1460_v49  ;;  %v1270_v50 = vpop.xlane.xlu1 %1269 }
 0x293   : > { %vm1274_vm1 = vcmp.le.f32.partialorder %v1258_v12, %v1270_v50  ;;  %3188 = vmatprep.mubr.msk.bf16.mxu1 %vm859_vm3, %v1283_v47 }
 0x294   : > { %v2911_v52 = vsel %vm1274_vm1, 1.0, %v3362_v0  ;;  %v1456_v53 = vsel %vm1274_vm1, inf, %v1258_v12 }
 0x295   : > { %v1284_v54 = vpack.c.bf16 %v2911_v52, %v2910_v51  ;;  %v1466_v55 = vsel %vm859_vm3, %v1456_v53, inf }
 0x296   : > { %1467 = vmin.xlane.f32.xlu1 %v1466_v55 }
 0x297   : > { %3189 = vmatmul.mubr.msk.bf16.vlgmr.msra.gmra.mxu1 %vm859_vm3, %v1284_v54 }
 0x298   : > { %3203 = vmatpush3.bf16.msra.mxu1 %v3521_v39 }
 0x299   : > { %3204 = vmatprep.subr.bf16.mxu1 %v3519_v38 }
 0x29c   : > { %3205 = vmatpush3.bf16.msra.mxu1 %v3519_v38 }
 0x29d   : > { %3220 = vmatprep.subr.bf16.mxu1 %v3521_v39 }
 0x2ca   : > { %v3172_v56 = vpop.f32.mrf.mxu1 }
 0x2cb   : > { %v1144_v63 = vadd.f32 %v3172_v56, %v3589_v22 }
 0x2cc   : > { %v1127_v57 = vpop.f32.mrf.mxu1 }
 0x2cd   : > { %v1142_v60 = vadd.f32 %v1127_v57, %v3587_v20  ;;  %v1148_v5 = vmax.f32 %v1144_v63, 0.0 }
 0x2ce   : > { %v3173_v61 = vpop.f32.mrf.mxu1 }
 0x2cf   : > { %v1146_v62 = vmax.f32 %v1142_v60, 0.0  ;;  %v1145_v3 = vadd.f32 %v3173_v61, %v3594_v27 }
 0x2d0   : > { %v1130_v1 = vpop.f32.mrf.mxu1 }
 0x2d1   : > { %v1143_v2 = vadd.f32 %v1130_v1, %v3591_v24  ;;  %3178 = vmatprep.mubr.msk.f32.mxu0 %vm955_vm12, %v1146_v62  ;;  %v1149_v6 = vmax.f32 %v1145_v3, 0.0 }
 0x2d3   : > { %v1147_v4 = vmax.f32 %v1143_v2, 0.0 }
 0x2d5   : > { %3179 = vmatmul.mubr.msk.f32.vlgmr.msra.gmra.mxu0 %vm955_vm12, %v1147_v4 }
 0x2d6   : > { %3181 = vmatprep.mubr.msk.f32.mxu0 %vm955_vm12, %v1148_v5  ;;  %3193 = vmatpush3.msra.mxu0 %v3552_v58 }
 0x2d7   : > { %3194 = vmatprep.subr.mxu0 %v3559_v59 }
 0x2d8   : > { %3195 = vmatpush3.msra.mxu0 %v3559_v59 }
 0x2d9   : > { %3182 = vmatmul.mubr.msk.f32.gmra.mxu0 %vm955_vm12, %v1149_v6  ;;  %3210 = vmatprep.subr.mxu0 %v3552_v58 }
 0x317   : > { %v1459_v7 = vpop.xlane.xlu0 %1458 }
 0x318   : > { %vm1469_vm2 = vcmp.le.f32.partialorder %v1453_v37, %v1459_v7 }
 0x319   : > { %v1651_v8 = vsel %vm1469_vm2, inf, %v1453_v37  ;;  %v2918_v12 = vsel %vm1469_vm2, 1.0, %v3362_v0 }
 0x31a   : > { %v1655_v9 = vsel %vm859_vm3, %v1651_v8, inf }
 0x31b   : > { %1656 = vmin.xlane.f32.xlu0 %v1655_v9  ;;  %v1465_v10 = vpop.xlane.xlu0 %1464  ;;  %v1462_v11 = vpop.xlane.xlu1 %1461 }
 0x31c   : > { %vm1471_vm4 = vcmp.le.f32.partialorder %v3613_v44, %v1465_v10  ;;  %vm1470_vm5 = vcmp.le.f32.partialorder %v1454_v46, %v1462_v11 }
 0x31d   : > { %v3644_v13 = vsel %vm1471_vm4, inf, %v3613_v44  ;;  %v2919_v14 = vsel %vm1470_vm5, 1.0, %v3362_v0  ;;  %v1652_v15 = vsel %vm1470_vm5, inf, %v1454_v46  ;;  %v2920_v21 = vsel %vm1471_vm4, 1.0, %v3362_v0 }
 0x31e   : > { %v1481_v16 = vpack.c.bf16 %v2919_v14, %v2918_v12  ;;  %v1661_v17 = vsel %vm859_vm3, %v3644_v13, inf  ;;  %v1658_v18 = vsel %vm859_vm3, %v1652_v15, inf }
 0x31f   : > { %1662 = vmin.xlane.f32.xlu0 %v1661_v17  ;;  %1659 = vmin.xlane.f32.xlu1 %v1658_v18  ;;  %v1468_v19 = vpop.xlane.xlu1 %1467 }
 0x320   : > { %vm1472_vm6 = vcmp.le.f32.partialorder %v1456_v53, %v1468_v19  ;;  %3206 = vmatprep.mubr.msk.bf16.mxu1 %vm859_vm3, %v1481_v16 }
 0x321   : > { %v2921_v23 = vsel %vm1472_vm6, 1.0, %v3362_v0  ;;  %v1654_v25 = vsel %vm1472_vm6, inf, %v1456_v53 }
 0x322   : > { %v1482_v26 = vpack.c.bf16 %v2921_v23, %v2920_v21  ;;  %v1664_v28 = vsel %vm859_vm3, %v1654_v25, inf }
 0x323   : > { %1665 = vmin.xlane.f32.xlu1 %v1664_v28 }
 0x324   : > { %3207 = vmatmul.mubr.msk.bf16.vlgmr.msra.gmra.mxu1 %vm859_vm3, %v1482_v26 }
 0x325   : > { %3221 = vmatpush3.bf16.msra.mxu1 %v3521_v39 }
 0x326   : > { %3222 = vmatprep.subr.bf16.mxu1 %v3519_v38 }
 0x329   : > { %3223 = vmatpush3.bf16.msra.mxu1 %v3519_v38 }
 0x32a   : > { %3238 = vmatprep.subr.bf16.mxu1 %v3521_v39 }
 0x357   : > { %v3190_v29 = vpop.f32.mrf.mxu1 }
 0x358   : > { %v1342_v34 = vadd.f32 %v3190_v29, %v3589_v22 }
 0x359   : > { %v1325_v30 = vpop.f32.mrf.mxu1 }
 0x35a   : > { %v1340_v31 = vadd.f32 %v1325_v30, %v3587_v20  ;;  %v1346_v41 = vmax.f32 %v1342_v34, 0.0 }
 0x35b   : > { %v3191_v32 = vpop.f32.mrf.mxu1 }
 0x35c   : > { %v1344_v33 = vmax.f32 %v1340_v31, 0.0  ;;  %v1343_v37 = vadd.f32 %v3191_v32, %v3594_v27 }
 0x35d   : > { %v1328_v35 = vpop.f32.mrf.mxu1 }
 0x35e   : > { %v1341_v36 = vadd.f32 %v1328_v35, %v3591_v24  ;;  %3196 = vmatprep.mubr.msk.f32.mxu0 %vm955_vm12, %v1344_v33  ;;  %v1347_v42 = vmax.f32 %v1343_v37, 0.0 }
 0x360   : > { %v1345_v40 = vmax.f32 %v1341_v36, 0.0 }
 0x362   : > { %3197 = vmatmul.mubr.msk.f32.vlgmr.msra.gmra.mxu0 %vm955_vm12, %v1345_v40 }
 0x363   : > { %3199 = vmatprep.mubr.msk.f32.mxu0 %vm955_vm12, %v1346_v41  ;;  %3211 = vmatpush3.msra.mxu0 %v3552_v58 }
 0x364   : > { %3212 = vmatprep.subr.mxu0 %v3559_v59 }
 0x365   : > { %3213 = vmatpush3.msra.mxu0 %v3559_v59 }
 0x366   : > { %3200 = vmatmul.mubr.msk.f32.gmra.mxu0 %vm955_vm12, %v1347_v42  ;;  %3228 = vmatprep.subr.mxu0 %v3552_v58 }
 0x3a4   : > { %v1657_v43 = vpop.xlane.xlu0 %1656 }
 0x3a5   : > { %vm1667_vm7 = vcmp.le.f32.partialorder %v1651_v8, %v1657_v43 }
 0x3a6   : > { %v1849_v44 = vsel %vm1667_vm7, inf, %v1651_v8  ;;  %v2928_v48 = vsel %vm1667_vm7, 1.0, %v3362_v0 }
 0x3a7   : > { %v1853_v45 = vsel %vm859_vm3, %v1849_v44, inf }
 0x3a8   : > { %1854 = vmin.xlane.f32.xlu0 %v1853_v45  ;;  %v1663_v46 = vpop.xlane.xlu0 %1662  ;;  %v1660_v47 = vpop.xlane.xlu1 %1659 }
 0x3a9   : > { %vm1669_vm8 = vcmp.le.f32.partialorder %v3644_v13, %v1663_v46  ;;  %vm1668_vm9 = vcmp.le.f32.partialorder %v1652_v15, %v1660_v47 }
 0x3aa   : > { %v3675_v49 = vsel %vm1669_vm8, inf, %v3644_v13  ;;  %v2929_v50 = vsel %vm1668_vm9, 1.0, %v3362_v0  ;;  %v1850_v51 = vsel %vm1668_vm9, inf, %v1652_v15  ;;  %v2930_v56 = vsel %vm1669_vm8, 1.0, %v3362_v0 }
 0x3ab   : > { %v1679_v52 = vpack.c.bf16 %v2929_v50, %v2928_v48  ;;  %v1859_v53 = vsel %vm859_vm3, %v3675_v49, inf  ;;  %v1856_v54 = vsel %vm859_vm3, %v1850_v51, inf }
 0x3ac   : > { %1860 = vmin.xlane.f32.xlu0 %v1859_v53  ;;  %1857 = vmin.xlane.f32.xlu1 %v1856_v54  ;;  %v1666_v55 = vpop.xlane.xlu1 %1665 }
 0x3ad   : > { %vm1670_vm10 = vcmp.le.f32.partialorder %v1654_v25, %v1666_v55  ;;  %3224 = vmatprep.mubr.msk.bf16.mxu1 %vm859_vm3, %v1679_v52 }
 0x3ae   : > { %v2931_v57 = vsel %vm1670_vm10, 1.0, %v3362_v0  ;;  %v1852_v60 = vsel %vm1670_vm10, inf, %v1654_v25  ;;  %vm2555_vm10 = vcmask 523264  }
 0x3af   : > { %v1680_v61 = vpack.c.bf16 %v2931_v57, %v2930_v56  ;;  %v1862_v62 = vsel %vm859_vm3, %v1852_v60, inf }
 0x3b0   : > { %1863 = vmin.xlane.f32.xlu1 %v1862_v62 }
 0x3b1   : > { %3225 = vmatmul.mubr.msk.bf16.vlgmr.msra.gmra.mxu1 %vm859_vm3, %v1680_v61 }
 0x3b2   : > { %3239 = vmatpush3.bf16.msra.mxu1 %v3521_v39 }
 0x3b3   : > { %3240 = vmatprep.subr.bf16.mxu1 %v3519_v38 }
 0x3b6   : > { %3241 = vmatpush3.bf16.msra.mxu1 %v3519_v38 }
 0x3b7   : > { %3256 = vmatprep.subr.bf16.mxu1 %v3521_v39 }
 0x3e4   : > { %v3208_v63 = vpop.f32.mrf.mxu1 }
 0x3e5   : > { %v1540_v5 = vadd.f32 %v3208_v63, %v3589_v22 }
 0x3e6   : > { %v1523_v1 = vpop.f32.mrf.mxu1 }
 0x3e7   : > { %v1538_v2 = vadd.f32 %v1523_v1, %v3587_v20  ;;  %v1544_v10 = vmax.f32 %v1540_v5, 0.0 }
 0x3e8   : > { %v3209_v3 = vpop.f32.mrf.mxu1 }
 0x3e9   : > { %v1542_v4 = vmax.f32 %v1538_v2, 0.0  ;;  %v1541_v8 = vadd.f32 %v3209_v3, %v3594_v27 }
 0x3ea   : > { %v1526_v6 = vpop.f32.mrf.mxu1 }
 0x3eb   : > { %v1539_v7 = vadd.f32 %v1526_v6, %v3591_v24  ;;  %3214 = vmatprep.mubr.msk.f32.mxu0 %vm955_vm12, %v1542_v4  ;;  %v1545_v11 = vmax.f32 %v1541_v8, 0.0 }
 0x3ed   : > { %v1543_v9 = vmax.f32 %v1539_v7, 0.0 }
 0x3ef   : > { %3215 = vmatmul.mubr.msk.f32.vlgmr.msra.gmra.mxu0 %vm955_vm12, %v1543_v9 }
 0x3f0   : > { %3217 = vmatprep.mubr.msk.f32.mxu0 %vm955_vm12, %v1544_v10  ;;  %3229 = vmatpush3.msra.mxu0 %v3552_v58 }
 0x3f1   : > { %3230 = vmatprep.subr.mxu0 %v3559_v59 }
 0x3f2   : > { %3231 = vmatpush3.msra.mxu0 %v3559_v59 }
 0x3f3   : > { %3218 = vmatmul.mubr.msk.f32.gmra.mxu0 %vm955_vm12, %v1545_v11  ;;  %3246 = vmatprep.subr.mxu0 %v3552_v58 }
 0x431   : > { %v1855_v12 = vpop.xlane.xlu0 %1854 }
 0x432   : > { %vm1865_vm11 = vcmp.le.f32.partialorder %v1849_v44, %v1855_v12 }
 0x433   : > { %v2047_v13 = vsel %vm1865_vm11, inf, %v1849_v44  ;;  %v2938_v17 = vsel %vm1865_vm11, 1.0, %v3362_v0 }
 0x434   : > { %v2051_v14 = vsel %vm859_vm3, %v2047_v13, inf }
 0x435   : > { %2052 = vmin.xlane.f32.xlu0 %v2051_v14  ;;  %v1861_v15 = vpop.xlane.xlu0 %1860  ;;  %v1858_v16 = vpop.xlane.xlu1 %1857 }
 0x436   : > { %vm1867_vm13 = vcmp.le.f32.partialorder %v3675_v49, %v1861_v15  ;;  %vm1866_vm14 = vcmp.le.f32.partialorder %v1850_v51, %v1858_v16 }
 0x437   : > { %v3706_v18 = vsel %vm1867_vm13, inf, %v3675_v49  ;;  %v2939_v19 = vsel %vm1866_vm14, 1.0, %v3362_v0  ;;  %v2048_v21 = vsel %vm1866_vm14, inf, %v1850_v51  ;;  %v2940_v29 = vsel %vm1867_vm13, 1.0, %v3362_v0 }
 0x438   : > { %v1877_v23 = vpack.c.bf16 %v2939_v19, %v2938_v17  ;;  %v2057_v25 = vsel %vm859_vm3, %v3706_v18, inf  ;;  %v2054_v26 = vsel %vm859_vm3, %v2048_v21, inf }
 0x439   : > { %2058 = vmin.xlane.f32.xlu0 %v2057_v25  ;;  %2055 = vmin.xlane.f32.xlu1 %v2054_v26  ;;  %v1864_v28 = vpop.xlane.xlu1 %1863 }
 0x43a   : > { %vm1868_vm15 = vcmp.le.f32.partialorder %v1852_v60, %v1864_v28  ;;  %3242 = vmatprep.mubr.msk.bf16.mxu1 %vm859_vm3, %v1877_v23 }
 0x43b   : > { %v2941_v30 = vsel %vm1868_vm15, 1.0, %v3362_v0  ;;  %v2050_v31 = vsel %vm1868_vm15, inf, %v1852_v60 }
 0x43c   : > { %v1878_v32 = vpack.c.bf16 %v2941_v30, %v2940_v29  ;;  %v2060_v33 = vsel %vm859_vm3, %v2050_v31, inf }
 0x43d   : > { %2061 = vmin.xlane.f32.xlu1 %v2060_v33 }
 0x43e   : > { %3243 = vmatmul.mubr.msk.bf16.vlgmr.msra.gmra.mxu1 %vm859_vm3, %v1878_v32 }
 0x43f   : > { %3257 = vmatpush3.bf16.msra.mxu1 %v3521_v39 }
 0x440   : > { %3258 = vmatprep.subr.bf16.mxu1 %v3519_v38 }
 0x443   : > { %3259 = vmatpush3.bf16.msra.mxu1 %v3519_v38 }
 0x444   : > { %3274 = vmatprep.subr.bf16.mxu1 %v3521_v39 }
 0x471   : > { %v3226_v34 = vpop.f32.mrf.mxu1 }
 0x472   : > { %v1738_v41 = vadd.f32 %v3226_v34, %v3589_v22 }
 0x473   : > { %v1721_v35 = vpop.f32.mrf.mxu1 }
 0x474   : > { %v1736_v36 = vadd.f32 %v1721_v35, %v3587_v20  ;;  %v1742_v46 = vmax.f32 %v1738_v41, 0.0 }
 0x475   : > { %v3227_v37 = vpop.f32.mrf.mxu1 }
 0x476   : > { %v1740_v40 = vmax.f32 %v1736_v36, 0.0  ;;  %v1739_v44 = vadd.f32 %v3227_v37, %v3594_v27 }
 0x477   : > { %v1724_v42 = vpop.f32.mrf.mxu1 }
 0x478   : > { %v1737_v43 = vadd.f32 %v1724_v42, %v3591_v24  ;;  %3232 = vmatprep.mubr.msk.f32.mxu0 %vm955_vm12, %v1740_v40  ;;  %v1743_v47 = vmax.f32 %v1739_v44, 0.0 }
 0x47a   : > { %v1741_v45 = vmax.f32 %v1737_v43, 0.0 }
 0x47c   : > { %3233 = vmatmul.mubr.msk.f32.vlgmr.msra.gmra.mxu0 %vm955_vm12, %v1741_v45 }
 0x47d   : > { %3235 = vmatprep.mubr.msk.f32.mxu0 %vm955_vm12, %v1742_v46  ;;  %3247 = vmatpush3.msra.mxu0 %v3552_v58 }
 0x47e   : > { %3248 = vmatprep.subr.mxu0 %v3559_v59 }
 0x47f   : > { %3249 = vmatpush3.msra.mxu0 %v3559_v59 }
 0x480   : > { %3236 = vmatmul.mubr.msk.f32.gmra.mxu0 %vm955_vm12, %v1743_v47  ;;  %3264 = vmatprep.subr.mxu0 %v3552_v58 }
 0x4be   : > { %v2053_v48 = vpop.xlane.xlu0 %2052 }
 0x4bf   : > { %vm2063_vm1 = vcmp.le.f32.partialorder %v2047_v13, %v2053_v48 }
 0x4c0   : > { %v2245_v49 = vsel %vm2063_vm1, inf, %v2047_v13  ;;  %v2948_v53 = vsel %vm2063_vm1, 1.0, %v3362_v0 }
 0x4c1   : > { %v2249_v50 = vsel %vm859_vm3, %v2245_v49, inf }
 0x4c2   : > { %2250 = vmin.xlane.f32.xlu0 %v2249_v50  ;;  %v2059_v51 = vpop.xlane.xlu0 %2058  ;;  %v2056_v52 = vpop.xlane.xlu1 %2055 }
 0x4c3   : > { %vm2065_vm2 = vcmp.le.f32.partialorder %v3706_v18, %v2059_v51  ;;  %vm2064_vm4 = vcmp.le.f32.partialorder %v2048_v21, %v2056_v52 }
 0x4c4   : > { %v2949_v54 = vsel %vm2064_vm4, 1.0, %v3362_v0  ;;  %v2247_v55 = vsel %vm2065_vm2, inf, %v3706_v18  ;;  %v2246_v56 = vsel %vm2064_vm4, inf, %v2048_v21  ;;  %v2950_v63 = vsel %vm2065_vm2, 1.0, %v3362_v0 }
 0x4c5   : > { %v2075_v57 = vpack.c.bf16 %v2949_v54, %v2948_v53  ;;  %v2255_v60 = vsel %vm859_vm3, %v2247_v55, inf  ;;  %v2252_v61 = vsel %vm859_vm3, %v2246_v56, inf  ;;  %v3162_v53 = vpop.f32.mrf.mxu0 }
 0x4c6   : > { %2256 = vmin.xlane.f32.xlu0 %v2255_v60  ;;  %2253 = vmin.xlane.f32.xlu1 %v2252_v61  ;;  %v2062_v62 = vpop.xlane.xlu1 %2061 }
 0x4c7   : > { %vm2066_vm5 = vcmp.le.f32.partialorder %v2050_v31, %v2062_v62  ;;  %3260 = vmatprep.mubr.msk.bf16.mxu1 %vm859_vm3, %v2075_v57  ;;  %v1034_v54 = vpop.f32.mrf.mxu0 }
 0x4c8   : > { %v2951_v1 = vsel %vm2066_vm5, 1.0, %v3362_v0  ;;  %v2248_v2 = vsel %vm2066_vm5, inf, %v2050_v31 }
 0x4c9   : > { %v2076_v3 = vpack.c.bf16 %v2951_v1, %v2950_v63  ;;  %v2258_v4 = vsel %vm859_vm3, %v2248_v2, inf }
 0x4ca   : > { %2259 = vmin.xlane.f32.xlu1 %v2258_v4 }
 0x4cb   : > { %3261 = vmatmul.mubr.msk.bf16.vlgmr.msra.gmra.mxu1 %vm859_vm3, %v2076_v3 }
 0x4cc   : > { %3275 = vmatpush3.bf16.msra.mxu1 %v3521_v39 }
 0x4cd   : > { %3276 = vmatprep.subr.bf16.mxu1 %v3519_v38 }
 0x4d0   : > { %3277 = vmatpush3.bf16.msra.mxu1 %v3519_v38 }
 0x4fe   : > { %v3244_v5 = vpop.f32.mrf.mxu1 }
 0x4ff   : > { %v1936_v10 = vadd.f32 %v3244_v5, %v3589_v22 }
 0x500   : > { %v1919_v6 = vpop.f32.mrf.mxu1 }
 0x501   : > { %v1934_v7 = vadd.f32 %v1919_v6, %v3587_v20  ;;  %v1940_v14 = vmax.f32 %v1936_v10, 0.0 }
 0x502   : > { %v3245_v8 = vpop.f32.mrf.mxu1 }
 0x503   : > { %v1938_v9 = vmax.f32 %v1934_v7, 0.0  ;;  %v1937_v13 = vadd.f32 %v3245_v8, %v3594_v27 }
 0x504   : > { %v1922_v11 = vpop.f32.mrf.mxu1 }
 0x505   : > { %v1935_v12 = vadd.f32 %v1922_v11, %v3591_v24  ;;  %3250 = vmatprep.mubr.msk.f32.mxu0 %vm955_vm12, %v1938_v9  ;;  %v1941_v38 = vmax.f32 %v1937_v13, 0.0 }
 0x507   : > { %v1939_v39 = vmax.f32 %v1935_v12, 0.0 }
 0x509   : > { %3251 = vmatmul.mubr.msk.f32.vlgmr.msra.gmra.mxu0 %vm955_vm12, %v1939_v39 }
 0x50a   : > { %3253 = vmatprep.mubr.msk.f32.mxu0 %vm955_vm12, %v1940_v14  ;;  %3265 = vmatpush3.msra.mxu0 %v3552_v58  ;;  %v3806_v14 = vld [vmem:[%s3929_s5] ss:$0 sm:$0xff] }
 0x50b   : > { %3266 = vmatprep.subr.mxu0 %v3559_v59 }
 0x50c   : > { %3267 = vmatpush3.msra.mxu0 %v3559_v59 }
 0x50d   : > { %3254 = vmatmul.mubr.msk.f32.gmra.mxu0 %vm955_vm12, %v1941_v38  ;;  %3282 = vmatprep.subr.mxu0 %v3552_v58 }
 0x54b   : > { %v2251_v15 = vpop.xlane.xlu0 %2250 }
 0x54c   : > { %vm2261_vm6 = vcmp.le.f32.partialorder %v2245_v49, %v2251_v15 }
 0x54d   : > { %v2958_v18 = vsel %vm2261_vm6, 1.0, %v3362_v0 }
 0x54f   : > { %v2257_v16 = vpop.xlane.xlu0 %2256  ;;  %v2254_v17 = vpop.xlane.xlu1 %2253 }
 0x550   : > { %vm2262_vm7 = vcmp.le.f32.partialorder %v2246_v56, %v2254_v17  ;;  %vm2263_vm8 = vcmp.le.f32.partialorder %v2247_v55, %v2257_v16  ;;  %v3165_v55 = vpop.f32.mrf.mxu0  ;;  %v1040_v17 = vadd.f32 %v3162_v53, %v3806_v14 }
 0x551   : > { %v2959_v19 = vsel %vm2262_vm7, 1.0, %v3362_v0  ;;  %v2960_v25 = vsel %vm2263_vm8, 1.0, %v3362_v0 }
 0x552   : > { %v2273_v21 = vpack.c.bf16 %v2959_v19, %v2958_v18  ;;  %v1044_v56 = vpop.f32.mrf.mxu0 }
 0x553   : > { %v2260_v23 = vpop.xlane.xlu1 %2259 }
 0x554   : > { %vm2264_vm9 = vcmp.le.f32.partialorder %v2248_v2, %v2260_v23  ;;  %3278 = vmatprep.mubr.msk.bf16.mxu1 %vm859_vm3, %v2273_v21  ;;  %v3180_v57 = vpop.f32.mrf.mxu0  ;;  %v1035_v23 = vadd.f32 %v3806_v14, %v1034_v54 }
 0x555   : > { %v2961_v26 = vsel %vm2264_vm9, 1.0, %v3362_v0  ;;  %v1234_v38 = vadd.f32 %v3180_v57, %v3806_v14 }
 0x556   : > { %v2274_v28 = vpack.c.bf16 %v2961_v26, %v2960_v25  ;;  %v1228_v60 = vpop.f32.mrf.mxu0  ;;  %v1050_v25 = vadd.f32 %v3165_v55, %v3806_v14 }
 0x557   : > { %v1229_v16 = vadd.f32 %v3806_v14, %v1228_v60 }
 0x558   : > { %3279 = vmatmul.mubr.msk.bf16.vlgmr.msra.gmra.mxu1 %vm859_vm3, %v2274_v28  ;;  %v3183_v61 = vpop.f32.mrf.mxu0  ;;  %v1045_v28 = vadd.f32 %v3806_v14, %v1044_v56 }
 0x559   : > { %v1244_v18 = vadd.f32 %v3183_v61, %v3806_v14 }
 0x55a   : > { %v1238_v62 = vpop.f32.mrf.mxu0 }
 0x55b   : > { %v1239_v19 = vadd.f32 %v3806_v14, %v1238_v62 }
 0x55c   : > { %v3198_v63 = vpop.f32.mrf.mxu0 }
 0x55d   : > { %v1432_v26 = vadd.f32 %v3198_v63, %v3806_v14 }
 0x55e   : > { %v1426_v1 = vpop.f32.mrf.mxu0 }
 0x560   : > { %v3201_v2 = vpop.f32.mrf.mxu0 }
 0x562   : > { %v1436_v3 = vpop.f32.mrf.mxu0 }
 0x564   : > { %v3216_v4 = vpop.f32.mrf.mxu0 }
 0x566   : > { %v1624_v5 = vpop.f32.mrf.mxu0 }
 0x568   : > { %v3219_v6 = vpop.f32.mrf.mxu0 }
 0x569   : > { %v1640_v54 = vadd.f32 %v3219_v6, %v3806_v14 }
 0x56a   : > { %v1634_v7 = vpop.f32.mrf.mxu0 }
 0x56c   : > { %v3234_v8 = vpop.f32.mrf.mxu0 }
 0x56e   : > { %v1822_v9 = vpop.f32.mrf.mxu0 }
 0x570   : > { %v3237_v10 = vpop.f32.mrf.mxu0 }
 0x572   : > { %v1832_v11 = vpop.f32.mrf.mxu0 }
 0x573   : > { %v1833_v60 = vadd.f32 %v3806_v14, %v1832_v11 }
 0x58b   : > { %v3262_v29 = vpop.f32.mrf.mxu1 }
 0x58c   : > { %v2134_v34 = vadd.f32 %v3262_v29, %v3589_v22  ;;  %v1248_v29 = vmax.f32 %v1234_v38, 0.0 }
 0x58d   : > { %v2117_v30 = vpop.f32.mrf.mxu1 }
 0x58e   : > { %v2132_v31 = vadd.f32 %v2117_v30, %v3587_v20  ;;  %v2138_v41 = vmax.f32 %v2134_v34, 0.0  ;;  %v1427_v30 = vadd.f32 %v3806_v14, %v1426_v1  ;;  %v1054_v34 = vmax.f32 %v1040_v17, 0.0 }
 0x58f   : > { %v3263_v32 = vpop.f32.mrf.mxu1 }
 0x590   : > { %v2136_v33 = vmax.f32 %v2132_v31, 0.0  ;;  %v2135_v37 = vadd.f32 %v3263_v32, %v3594_v27  ;;  %v1247_v31 = vmax.f32 %v1229_v16, 0.0  ;;  %v1442_v32 = vadd.f32 %v3201_v2, %v3806_v14 }
 0x591   : > { %v2120_v35 = vpop.f32.mrf.mxu1  ;;  %v1843_v16 = vmax.f32 %v1833_v60, 0.0  ;;  %v2570_v60 = vld [vmem:[%s3932_s8 + $0x8] sm:$0xff] }
 0x592   : > { %v2133_v36 = vadd.f32 %v2120_v35, %v3591_v24  ;;  %3268 = vmatprep.mubr.msk.f32.mxu0 %vm955_vm12, %v2136_v33  ;;  %v2139_v42 = vmax.f32 %v2135_v37, 0.0  ;;  %v1437_v33 = vadd.f32 %v3806_v14, %v1436_v3  ;;  %v1250_v35 = vmax.f32 %v1244_v18, 0.0 }
 0x593   : > { %v1630_v37 = vadd.f32 %v3216_v4, %v3806_v14 }
 0x594   : > { %v2137_v40 = vmax.f32 %v2133_v36, 0.0  ;;  %v1249_v36 = vmax.f32 %v1239_v19, 0.0 }
 0x596   : > { %3269 = vmatmul.mubr.msk.f32.vlgmr.msra.gmra.mxu0 %vm955_vm12, %v2137_v40 }
 0x597   : > { %3271 = vmatprep.mubr.msk.f32.mxu0 %vm955_vm12, %v2138_v41  ;;  %3283 = vmatpush3.msra.mxu0 %v3552_v58  ;;  %v1053_v41 = vmax.f32 %v1035_v23, 0.0 }
 0x598   : > { %3284 = vmatprep.subr.mxu0 %v3559_v59 }
 0x599   : > { %3285 = vmatpush3.msra.mxu0 %v3559_v59 }
 0x59a   : > { %3272 = vmatmul.mubr.msk.f32.gmra.mxu0 %vm955_vm12, %v2139_v42  ;;  %3306 = vmatprep.subr.mxu0 %v3362_v0  ;;  %v1056_v42 = vmax.f32 %v1050_v25, 0.0 }
 0x5c9   : > { %v3252_v12 = vpop.f32.mrf.mxu0 }
 0x5ca   : > { %v2026_v61 = vadd.f32 %v3252_v12, %v3806_v14 }
 0x5cb   : > { %v2020_v13 = vpop.f32.mrf.mxu0 }
 0x5cc   : > { %v2021_v55 = vadd.f32 %v3806_v14, %v2020_v13  ;;  %v2040_v12 = vmax.f32 %v2026_v61, 0.0  ;;  %v2569_v61 = vld [vmem:[%s3932_s8] sm:$0xff] }
 0x5cd   : > { %v3801_v39 = vpop.f32.mrf.mxu0 }
 0x5ce   : > { %v2039_v13 = vmax.f32 %v2021_v55, 0.0  ;;  %v2036_v17 = vadd.f32 %v3801_v39, %v3806_v14  ;;  %v2573_v55 = vld [vmem:[%s3932_s8 + $0x20] sm:$0xff] }
 0x5cf   : > { %v2030_v15 = vpop.f32.mrf.mxu0 }
 0x5d0   : > { %v2031_v38 = vadd.f32 %v3806_v14, %v2030_v15 }
 0x618   : > { %v3280_v43 = vpop.f32.mrf.mxu1 }
 0x619   : > { %v2332_v48 = vadd.f32 %v3280_v43, %v3589_v22  ;;  %v2445_v22 = vld [vmem:[%s3930_s6 + $0x10] sm:$0xff]  ;;  %v1446_v43 = vmax.f32 %v1432_v26, 0.0 }
 0x61a   : > { %v2315_v44 = vpop.f32.mrf.mxu1 }
 0x61b   : > { %v2330_v45 = vadd.f32 %v2315_v44, %v3587_v20  ;;  %v2336_v51 = vmax.f32 %v2332_v48, 0.0  ;;  %v2446_v20 = vld [vmem:[%s3930_s6 + $0x18] sm:$0xff]  ;;  %v1625_v44 = vadd.f32 %v3806_v14, %v1624_v5  ;;  %v1635_v48 = vadd.f32 %v3806_v14, %v1634_v7 }
 0x61c   : > { %v3281_v46 = vpop.f32.mrf.mxu1  ;;  %3292 = vmatprep.subr.mxu1 %v2446_v20  ;;  %v1838_v5 = vadd.f32 %v3237_v10, %v3806_v14 }
 0x61d   : > { %v2334_v47 = vmax.f32 %v2330_v45, 0.0  ;;  %v2333_v50 = vadd.f32 %v3281_v46, %v3594_v27  ;;  %3293 = vmatpush3.msra.mxu1 %v2446_v20  ;;  %v2443_v27 = vld [vmem:[%s3930_s6] sm:$0xff]  ;;  %v1055_v45 = vmax.f32 %v1045_v28, 0.0  ;;  %v1252_v46 = vmax.f32 %v1054_v34, %v1248_v29 }
 0x61e   : > { %v2318_v49 = vpop.f32.mrf.mxu1  ;;  %3294 = vmatprep.subr.mxu1 %v2445_v22  ;;  %v1644_v20 = vmax.f32 %v1630_v37, 0.0  ;;  %v1643_v53 = vmax.f32 %v1625_v44, 0.0  ;;  %v1645_v57 = vmax.f32 %v1635_v48, 0.0  ;;  %v1844_v26 = vmax.f32 %v1838_v5, 0.0 }
 0x61f   : > { %v2331_v58 = vadd.f32 %v2318_v49, %v3591_v24  ;;  %3286 = vmatprep.mubr.msk.f32.mxu0 %vm955_vm12, %v2334_v47  ;;  %v2337_v52 = vmax.f32 %v2333_v50, 0.0  ;;  %3295 = vmatpush3.msra.mxu1 %v2445_v22  ;;  %v2444_v24 = vld [vmem:[%s3930_s6 + $0x8] sm:$0xff]  ;;  %v1445_v47 = vmax.f32 %v1427_v30, 0.0  ;;  %v1251_v49 = vmax.f32 %v1053_v41, %v1247_v31 }
 0x620   : > { %3296 = vmatprep.subr.mxu1 %v2444_v24  ;;  %v1447_v50 = vmax.f32 %v1437_v33, 0.0  ;;  %v1828_v22 = vadd.f32 %v3234_v8, %v3806_v14 }
 0x621   : > { %v2335_v59 = vmax.f32 %v2331_v58, 0.0  ;;  %3297 = vmatpush3.msra.mxu1 %v2444_v24  ;;  %v1448_v58 = vmax.f32 %v1442_v32, 0.0  ;;  %v1449_v56 = vmax.f32 %v1251_v49, %v1445_v47  ;;  %v2041_v32 = vmax.f32 %v2031_v38, 0.0 }
 0x622   : > { %3298 = vmatprep.subr.mxu1 %v2443_v27  ;;  %v1842_v4 = vmax.f32 %v1828_v22, 0.0 }
 0x623   : > { %3287 = vmatmul.mubr.msk.f32.vlgmr.msra.gmra.mxu0 %vm955_vm12, %v2335_v59  ;;  %3299 = vmatpush3.msra.mxu1 %v2443_v27  ;;  %v1823_v59 = vadd.f32 %v3806_v14, %v1822_v9  ;;  %v1450_v27 = vmax.f32 %v1252_v46, %v1446_v43  ;;  %v1647_v8 = vmax.f32 %v1449_v56, %v1643_v53  ;;  %v1646_v9 = vmax.f32 %v1640_v54, 0.0  ;;  %v2575_v53 = vld [vmem:[%s3932_s8 + $0x30] sm:$0xff]  ;;  %v2574_v54 = vld [vmem:[%s3932_s8 + $0x28] sm:$0xff]  ;;  %v2572_v56 = vld [vmem:[%s3932_s8 + $0x18] sm:$0xff] }
 0x624   : > { %3289 = vmatprep.mubr.msk.f32.mxu0 %vm955_vm12, %v2336_v51  ;;  %3325 = vmatprep.subr.mxu1 %v3362_v0  ;;  %v1254_v51 = vmax.f32 %v1056_v42, %v1250_v35  ;;  %v2042_v35 = vmax.f32 %v2036_v17, 0.0 }
 0x625   : > { %v1841_v1 = vmax.f32 %v1823_v59, 0.0  ;;  %v1648_v3 = vmax.f32 %v1450_v27, %v1644_v20 }
 0x626   : > { %v1452_v62 = vmax.f32 %v1254_v51, %v1448_v58 }
 0x627   : > { %3290 = vmatmul.mubr.msk.f32.gmra.mxu0 %vm955_vm12, %v2337_v52  ;;  %v1253_v52 = vmax.f32 %v1055_v45, %v1249_v36  ;;  %v1845_v19 = vmax.f32 %v1647_v8, %v1841_v1 }
 0x628   : > { %3322 = vmatprep.mubr.msk.f32.mxu0 %vm3363_vm0, %v3362_v0  ;;  %v1650_v15 = vmax.f32 %v1452_v62, %v1646_v9  ;;  %v2655_v62 = vld [vmem:[%s3934_s10 + $0x18] sm:$0xff] }
 0x629   : > { %v1451_v63 = vmax.f32 %v1253_v52, %v1447_v50  ;;  %v2043_v31 = vmax.f32 %v1845_v19, %v2039_v13 }
 0x62a   : > { %v1848_v44 = vmax.f32 %v1650_v15, %v1844_v26 }
 0x62b   : > { %v1649_v11 = vmax.f32 %v1451_v63, %v1645_v57  ;;  %v2571_v57 = vld [vmem:[%s3932_s8 + $0x10] sm:$0xff] }
 0x62c   : > { %v2046_v50 = vmax.f32 %v1848_v44, %v2042_v35  ;;  %v2654_v63 = vld [vmem:[%s3934_s10 + $0x10] sm:$0xff] }
 0x62d   : > { %v1847_v34 = vmax.f32 %v1649_v11, %v1843_v16 }
 0x62f   : > { %v2045_v48 = vmax.f32 %v1847_v34, %v2041_v32  ;;  %v2652_v32 = vld [vmem:[%s3934_s10] sm:$0xff] }
 0x656   : > { %v3270_v21 = vpop.f32.mrf.mxu0 }
 0x657   : > { %v2224_v7 = vadd.f32 %v3270_v21, %v3806_v14  ;;  %v1846_v21 = vmax.f32 %v1648_v3, %v1842_v4 }
 0x658   : > { %v2218_v40 = vpop.f32.mrf.mxu0 }
 0x659   : > { %v2219_v2 = vadd.f32 %v3806_v14, %v2218_v40  ;;  %v2238_v28 = vmax.f32 %v2224_v7, 0.0  ;;  %v2044_v39 = vmax.f32 %v1846_v21, %v2040_v12 }
 0x65a   : > { %v3273_v24 = vpop.f32.mrf.mxu0 }
 0x65b   : > { %v2237_v23 = vmax.f32 %v2219_v2, 0.0  ;;  %v2234_v29 = vadd.f32 %v3273_v24, %v3806_v14  ;;  %v2242_v45 = vmax.f32 %v2044_v39, %v2238_v28  ;;  %v2968_v2 = vld [vmem:[%s3931_s7] ss:$0 sm:$0xff] }
 0x65c   : > { %v2228_v6 = vpop.f32.mrf.mxu0 }
 0x65d   : > { %v2229_v25 = vadd.f32 %v3806_v14, %v2228_v6  ;;  %v2241_v40 = vmax.f32 %v2043_v31, %v2237_v23  ;;  %v2240_v46 = vmax.f32 %v2234_v29, 0.0  ;;  %v2653_v31 = vld [vmem:[%s3934_s10 + $0x8] sm:$0xff] }
 0x65f   : > { %v2239_v41 = vmax.f32 %v2229_v25, 0.0  ;;  %v2244_v22 = vmax.f32 %v2046_v50, %v2240_v46  ;;  %v2733_v46 = vld [vmem:[%s3937_s13] sm:$0x1] }
 0x661   : > { %v2243_v52 = vmax.f32 %v2045_v48, %v2239_v41  ;;  %v2656_v41 = vld [vmem:[%s3935_s11] sm:$0x1] }
 0x6e3   : > { %v3288_v18 = vpop.f32.mrf.mxu0 }
 0x6e4   : > { %v2422_v10 = vadd.f32 %v3288_v18, %v3806_v14 }
 0x6e5   : > { %v2416_v30 = vpop.f32.mrf.mxu0 }
 0x6e6   : > { %v2417_v33 = vadd.f32 %v3806_v14, %v2416_v30  ;;  %v2436_v36 = vmax.f32 %v2422_v10, 0.0 }
 0x6e7   : > { %v3291_v37 = vpop.f32.mrf.mxu0 }
 0x6e8   : > { %v2435_v42 = vmax.f32 %v2417_v33, 0.0  ;;  %v2432_v43 = vadd.f32 %v3291_v37, %v3806_v14  ;;  %v2440_v59 = vmax.f32 %v2242_v45, %v2436_v36  ;;  %v2577_v33 = vld [vmem:[%s3933_s9] sm:$0x1]  ;;  %v2732_v37 = vld [vmem:[%s3936_s12 + $0x8] sm:$0xff] }
 0x6e9   : > { %v2426_v47 = vpop.f32.mrf.mxu0 }
 0x6ea   : > { %v2439_v49 = vmax.f32 %v2241_v40, %v2435_v42  ;;  %v2427_v58 = vadd.f32 %v3806_v14, %v2426_v47  ;;  %v2438_v51 = vmax.f32 %v2432_v43, 0.0  ;;  %v2576_v14 = vld [vmem:[%s3932_s8 + $0x38] sm:$0xff]  ;;  %v2731_v40 = vld [vmem:[%s3936_s12] sm:$0xff] }
 0x6eb   : > { %3307 = vmatpush3.msra.mxu0 %v2576_v14 }
 0x6ec   : > { %v2437_v20 = vmax.f32 %v2427_v58, 0.0  ;;  %3300 = vmatprep.mubr.msk.f32.mxu1 %vm859_vm3, %v2439_v49  ;;  %v2442_v27 = vmax.f32 %v2244_v22, %v2438_v51  ;;  %3308 = vmatprep.subr.mxu0 %v3362_v0 }
 0x6ed   : > { %3301 = vmatmul.mubr.msk.f32.vlgmr.msra.gmra.mxu1 %vm859_vm3, %v2440_v59  ;;  %3309 = vmatpush3.msra.mxu0 %v2575_v53 }
 0x6ee   : > { %v2441_v24 = vmax.f32 %v2243_v52, %v2437_v20  ;;  %3310 = vmatprep.subr.mxu0 %v3362_v0  ;;  %3326 = vmatpush3.msra.mxu1 %v2655_v62 }
 0x6ef   : > { %3311 = vmatpush3.msra.mxu0 %v2574_v54  ;;  %3327 = vmatprep.subr.mxu1 %v3362_v0 }
 0x6f0   : > { %3303 = vmatprep.mubr.msk.f32.mxu1 %vm859_vm3, %v2441_v24  ;;  %3312 = vmatprep.subr.mxu0 %v3362_v0 }
 0x6f1   : > { %3304 = vmatmul.mubr.msk.f32.gmra.mxu1 %vm859_vm3, %v2442_v27  ;;  %3313 = vmatpush3.msra.mxu0 %v2573_v55 }
 0x6f2   : > { %3333 = vmatprep.mubr.msk.f32.mxu1 %vm3363_vm0, %v3362_v0  ;;  %3314 = vmatprep.subr.mxu0 %v3362_v0 }
 0x6f3   : > { %3315 = vmatpush3.msra.mxu0 %v2572_v56  ;;  %3328 = vmatpush3.msra.mxu1 %v2654_v63 }
 0x6f4   : > { %3316 = vmatprep.subr.mxu0 %v3362_v0  ;;  %3329 = vmatprep.subr.mxu1 %v3362_v0 }
 0x6f5   : > { %3317 = vmatpush3.msra.mxu0 %v2571_v57  ;;  %3330 = vmatpush3.msra.mxu1 %v2653_v31 }
 0x6f6   : > { %3318 = vmatprep.subr.mxu0 %v3362_v0  ;;  %3331 = vmatprep.subr.mxu1 %v3362_v0 }
 0x6f7   : > { %3319 = vmatpush3.msra.mxu0 %v2570_v60  ;;  %3332 = vmatpush3.msra.mxu1 %v2652_v32 }
 0x6f8   : > { %3320 = vmatprep.subr.mxu0 %v3362_v0  ;;  %3336 = vmatprep.subr.mxu1 %v3362_v0 }
 0x6f9   : > { %3321 = vmatpush3.msra.mxu0 %v2569_v61 }
 0x7ad   : > { %v3302_v1 = vpop.f32.mrf.mxu1 }
 0x7ae   : > { %v2538_v4 = vadd.f32 %v3302_v1, %v2968_v2 }
 0x7af   : > { %v2532_v3 = vpop.f32.mrf.mxu1 }
 0x7b0   : > { %v2533_v5 = vadd.f32 %v2968_v2, %v2532_v3  ;;  %v2552_v13 = vmax.f32 %v2538_v4, 0.0 }
 0x7b1   : > { %v3305_v7 = vpop.f32.mrf.mxu1 }
 0x7b2   : > { %v2551_v6 = vmax.f32 %v2533_v5, 0.0  ;;  %v2548_v8 = vadd.f32 %v3305_v7, %v2968_v2  ;;  %v2557_v17 = vsel %vm2555_vm10, %v2552_v13, -inf }
 0x7b3   : > { %v2542_v9 = vpop.f32.mrf.mxu1 }
 0x7b4   : > { %v2554_v38 = vmax.f32 %v2548_v8, 0.0  ;;  %v2543_v11 = vadd.f32 %v2968_v2, %v2542_v9  ;;  %v2556_v16 = vsel %vm2555_vm10, %v2551_v6, -inf }
 0x7b5   : > { %v2560_v23 = vmax.f32 %v2556_v16, %v2557_v17 }
 0x7b6   : > { %v2553_v12 = vmax.f32 %v2543_v11, 0.0  ;;  %v2559_v18 = vsel %vm2555_vm10, %v2554_v38, -inf }
 0x7b8   : > { %v2558_v19 = vsel %vm2555_vm10, %v2553_v12, -inf }
 0x7b9   : > { %v2561_v25 = vmax.f32 %v2558_v19, %v2559_v18 }
 0x7bb   : > { %v2562_v10 = vmax.f32 %v2560_v23, %v2561_v25 }
 0x7bd   : > { %v2563_v21 = vrot.slane %v2562_v10, 4 }
 0x7bf   : > { %v2564_v26 = vmax.f32 %v2562_v10, %v2563_v21 }
 0x7c1   : > { %v2565_v28 = vrot.slane %v2564_v26, 2 }
 0x7c3   : > { %v2566_v29 = vmax.f32 %v2564_v26, %v2565_v28 }
 0x7c5   : > { %v2567_v30 = vrot.slane %v2566_v29, 1 }
 0x7c7   : > { %v2568_v15 = vmax.f32 %v2566_v29, %v2567_v30 }
 0x7c9   : > { %3323 = vmatmul.mubr.msk.f32.vlgmr.msra.gmra.mxu0 %vm2555_vm10, %v2568_v15 }
 0x889   : > { %v2647_v34 = vpop.f32.mrf.mxu0 }
 0x88a   : > { %v2648_v39 = vadd.f32 %v2647_v34, %v2577_v33 }
 0x88b   : > { %v3324_v35 = vpop.f32.mrf.mxu0 }
 0x88c   : > { %v2651_v36 = vmax.f32 %v2648_v39, 0.0 }
 0x88e   : > { %3334 = vmatmul.mubr.msk.f32.vlgmr.msra.gmra.mxu1 %vm859_vm3, %v2651_v36 }
 0x88f   : > { %3340 = vmatprep.mubr.msk.f32.mxu1 %vm3363_vm0, %v3362_v0  ;;  %3337 = vmatpush3.msra.mxu1 %v2732_v37  ;;  %vm2807_vm0 = vcmask 65536  }
 0x890   : > { %3338 = vmatprep.subr.mxu1 %v3362_v0 }
 0x891   : > { %3339 = vmatpush3.msra.mxu1 %v2731_v40 }
 0x94e   : > { %v2726_v42 = vpop.f32.mrf.mxu1 }
 0x94f   : > { %v2727_v43 = vadd.f32 %v2726_v42, %v2656_v41 }
 0x950   : > { %v3335_v44 = vpop.f32.mrf.mxu1 }
 0x951   : > { %v2730_v45 = vmax.f32 %v2727_v43, 0.0 }
 0x953   : > { %3341 = vmatmul.mubr.msk.f32.vlgmr.msra.gmra.mxu1 %vm955_vm12, %v2730_v45 }
 0xa13   : > { %v2803_v0 = vpop.f32.mrf.mxu1 }
 0xa14   : > { %v2804_v47 = vadd.f32 %v2803_v0, %v2733_v46 }
 0xa15   : > { %v3342_v48 = vpop.f32.mrf.mxu1 }
 0xa16   : > { %2808 = vst.msk [vmem:[%s463_s21] sm:$0x1] %vm2807_vm0, %v2804_v47 }
 0xa17 PF: > { %s24_s29 = sadd.s32 1, %s3360_s29  }
 0xa18   : > { %p21_p4 = scmp.ge.s32.totalorder %s24_s29, 4  }
 0xa1a   :  { %23 = sbr.rel (!%p21_p4) target bundleno = 1 (0x1), region = 106 }

// kernel: dgcnn_forward.3
= control target key start
LH: loop header
LB: loop body
LE: loop exit
PB: predicated region body
PF: predicated region fallthrough
CT: control target
= control target key end

     0   :  { %s8495_s0 = inlined_call_operand.vmem [shape: f32[2,3,3], index: 0, kind: input, shape index: {}]   ;;  %s8496_s1 = inlined_call_operand.vmem [shape: f32[2,32,3], index: 1, kind: input, shape index: {}]   ;;  %s8497_s2 = inlined_call_operand.vmem [shape: f32[3,16], index: 2, kind: input, shape index: {}]   ;;  %s8498_s3 = inlined_call_operand.vmem [shape: f32[3,16], index: 3, kind: input, shape index: {}]   ;;  %s8499_s4 = inlined_call_operand.vmem [shape: f32[1,16], index: 4, kind: input, shape index: {}]   ;;  %s8500_s5 = inlined_call_operand.vmem [shape: f32[16,16], index: 5, kind: input, shape index: {}]   ;;  %s8501_s6 = inlined_call_operand.vmem [shape: f32[16,16], index: 6, kind: input, shape index: {}]   ;;  %s8502_s7 = inlined_call_operand.vmem [shape: f32[1,16], index: 7, kind: input, shape index: {}]   ;;  %s8503_s8 = inlined_call_operand.vmem [shape: f32[16,16], index: 8, kind: input, shape index: {}]   ;;  %s8504_s9 = inlined_call_operand.vmem [shape: f32[16,16], index: 9, kind: input, shape index: {}]   ;;  %s8505_s10 = inlined_call_operand.vmem [shape: f32[1,16], index: 10, kind: input, shape index: {}]   ;;  %s8506_s11 = inlined_call_operand.vmem [shape: f32[16,32], index: 11, kind: input, shape index: {}]   ;;  %s8507_s12 = inlined_call_operand.vmem [shape: f32[16,32], index: 12, kind: input, shape index: {}]   ;;  %s8508_s13 = inlined_call_operand.vmem [shape: f32[1,32], index: 13, kind: input, shape index: {}]   ;;  %s8509_s14 = inlined_call_operand.vmem [shape: f32[16,64], index: 14, kind: input, shape index: {}]   ;;  %s8510_s15 = inlined_call_operand.vmem [shape: f32[16,64], index: 15, kind: input, shape index: {}]   ;;  %s8511_s16 = inlined_call_operand.vmem [shape: f32[16,64], index: 16, kind: input, shape index: {}]   ;;  %s8512_s17 = inlined_call_operand.vmem [shape: f32[32,64], index: 17, kind: input, shape index: {}]   ;;  %s8513_s18 = inlined_call_operand.vmem [shape: f32[1,64], index: 18, kind: input, shape index: {}]   ;;  %s8514_s19 = inlined_call_operand.vmem [shape: f32[64,32], index: 19, kind: input, shape index: {}]   ;;  %s8515_s20 = inlined_call_operand.vmem [shape: f32[1,32], index: 20, kind: input, shape index: {}]   ;;  %s8516_s21 = inlined_call_operand.vmem [shape: f32[32,16], index: 21, kind: input, shape index: {}]   ;;  %s8517_s22 = inlined_call_operand.vmem [shape: f32[1,16], index: 22, kind: input, shape index: {}]   ;;  %s8518_s23 = inlined_call_operand.vmem [shape: f32[16,10], index: 23, kind: input, shape index: {}]   ;;  %s8519_s24 = inlined_call_operand.vmem [shape: f32[1,10], index: 24, kind: input, shape index: {}]   ;;  %s8520_s25 = inlined_call_operand.hbm [shape: f32[2,1,10], index: 25, kind: output, shape index: {0}]   ;;  %s8521_s26 = inlined_call_operand.hbm [shape: s32[2,1,64], index: 26, kind: output, shape index: {1}]  }
   0x1   :  { %8534 = sst [smem:[#allocation13_spill]] %s8495_s0 }
   0x2   :  { %8535 = sst [smem:[#allocation14_spill]] %s8496_s1 }
   0x3   :  { %8536 = sst [smem:[#allocation15_spill]] %s8497_s2 }
   0x4   :  { %8537 = sst [smem:[#allocation16_spill]] %s8498_s3 }
   0x5   :  { %8538 = sst [smem:[#allocation17_spill]] %s8499_s4 }
   0x6   :  { %8539 = sst [smem:[#allocation18_spill]] %s8500_s5 }
   0x7   :  { %8540 = sst [smem:[#allocation19_spill]] %s8501_s6 }
   0x8   :  { %8541 = sst [smem:[#allocation20_spill]] %s8502_s7 }
   0x9   :  { %8542 = sst [smem:[#allocation21_spill]] %s8503_s8 }
   0xa   :  { %8543 = sst [smem:[#allocation22_spill]] %s8504_s9 }
   0xb   :  { %8544 = sst [smem:[#allocation23_spill]] %s8505_s10 }
   0xc   :  { %8545 = sst [smem:[#allocation24_spill]] %s8506_s11 }
   0xd   :  { %8546 = sst [smem:[#allocation25_spill]] %s8507_s12 }
   0xe   :  { %8547 = sst [smem:[#allocation26_spill]] %s8508_s13 }
   0xf   :  { %8548 = sst [smem:[#allocation27_spill]] %s8509_s14 }
  0x10   :  { %8549 = sst [smem:[#allocation28_spill]] %s8510_s15 }
  0x11   :  { %32 = vsyncpa [#allocation3], 0 }
  0x12   :  { %34 = vsyncpa [#allocation3 + $0x1], 0 }
  0x13   :  { %35 = vsyncpa [#allocation5], 0 }
  0x14   :  { %37 = vsyncpa [#allocation5 + $0x1], 0  ;;  %s7486_s27 = smov 0   ;;  %s7488_s3 = smov 0  }
  0x15   :  { %s7490_s7 = smov 0   ;;  %s7492_s28 = smov 0  }
  0x16 LB: > { %8550 = sst [smem:[#allocation8_spill]] %s7332_s27  ;;  %s7507_s8 = sadd.s32 4294967295, %s7344_s28   ;;  %s7344_s28 = sphi %s7492_s28, %s8577_s28   ;;  %s7340_s7 = sphi %s7490_s7, %s8579_s7   ;;  %s7336_s3 = sphi %s7488_s3, %s8581_s3   ;;  %s7332_s27 = sphi %s7486_s27, %s8580_s27  }
  0x17   : > { %8551 = sst [smem:[#allocation9_spill]] %s7340_s7  ;;  %s6093_s4 = sadd.s32 4294967294, %s7344_s28  }
  0x18   : > { %s7511_s29 = sadd.s32 1, %s7344_s28   ;;  %s585_s0 = sadd.s32 1, %s7340_s7 }
  0x19   : > { %8552 = sst [smem:[#allocation10_spill]] %s7511_s29  ;;  %s582_s9 = ssub.s32 %s7344_s28, %s7511_s29 }
  0x1a   : > { %p595_p0 = scmp.ne.s32.totalorder %s7340_s7, %s7336_s3  ;;  %p583_p1 = scmp.eq.s32.totalorder %s582_s9, 0 }
  0x1b   : > { %p596_p2 = scmp.eq.s32.totalorder %s7507_s8, 1  ;;  %p601_p3 = scmp.ne.s32.totalorder %s7336_s3, %s7332_s27 }
  0x1c   : > { %p602_p4 = scmp.eq.s32.totalorder %s6093_s4, 1  ;;  %p6096_p7 = scmp.ge.s32.totalorder %s7344_s28, 1 }
  0x1d   : > { %s7522_s30 = scalar_select %p583_p1, %s7340_s7, %s585_s0  }
  0x1e   : > { %p7524_p5 = por %p596_p2, %p595_p0  ;;  %p7528_p6 = por %p602_p4, %p601_p3 }
  0x1f   : > { %8553 = sst [smem:[#allocation11_spill]] %s7522_s30  ;;  %p730_p8 = scmp.lt.s32.totalorder %s7344_s28, 3 }
  0x20   : > { %s8555_s5 = scalar_select %p7528_p6, 1, 0 }
  0x21   : > { %p731_p9 = pnand %p6096_p7, %p730_p8 }
  0x22   : > { %8556 = sst [smem:[#allocation12_spill]] %s8555_s5  ;;  %p807_p10 = scmp.lt.s32.totalorder (!%p731_p9), %s7507_s8, 1 }
  0x23   : > { %734 = sbr.rel (%p731_p9) target bundleno = 7284 (0x1c74), region = 120  ;;  %s8557_s9 = sld [smem:[#allocation13_spill]] (!%p731_p9) }
  0x24   : > { %s8558_s27 = sld [smem:[#allocation14_spill]] (!%p731_p9) }
  0x25   : > { %s8559_s29 = sld [smem:[#allocation16_spill]] (!%p731_p9) }
  0x26   : > { %s8561_s4 = sld [smem:[#allocation17_spill]] (!%p731_p9) }
  0x27   : > { %s8565_s14 = sld [smem:[#allocation27_spill]] (!%p731_p9) }
  0x28   : > { %s808_s10 = scalar_select %p807_p10, %s7507_s8, 1  ;;  %vm835_vm0 = vcmask 1042432   ;;  %vm822_vm1 = vcmask 23552   ;;  %v7346_v5 = vmov 0.0   ;;  %vm7347_vm2 = vmmov 0  }
  0x29   : > { %v7348_v16 = vmov 1.0   ;;  %v1117_v17 = vlaneseq  ;;  %vm1309_vm3 = vcmask 261120   ;;  %s8566_s15 = sld [smem:[#allocation28_spill]] }
  0x2a   : > { %s6097_s6 = sshll.u32 %s808_s10, 2  ;;  %s6411_s1 = sshll.u32 %s808_s10, 5 }
  0x2b   : > { %s810_s30 = scalar_lea.vmem %s8557_s9, %s6097_s6  ;;  %s815_s5 = scalar_lea.vmem %s8558_s27, %s6411_s1  ;;  %v925_v13 = vld [vmem:[%s8559_s29] sm:$0x7]  ;;  %v7590_v18 = vshrl.u32 %v1117_v17, 7 }
  0x2c   : > { %v821_v0 = vld [vmem:[%s810_s30] sm:$0x7]  ;;  %v818_v2 = vld [vmem:[%s815_s5 + $0x8] sm:$0xff]  ;;  %v819_v3 = vld [vmem:[%s815_s5 + $0x10] sm:$0xff]  ;;  %s8560_s10 = sld [smem:[#allocation15_spill]]  ;;  %s8533_s6 = sshll.u32 %s7507_s8, 4 }
  0x2d   : > { %v817_v1 = vld [vmem:[%s815_s5] sm:$0xff]  ;;  %6686 = vmatprep.subr.msk.mxu0 %vm835_vm0, %v821_v0  ;;  %v820_v4 = vld [vmem:[%s815_s5 + $0x18] sm:$0xff]  ;;  %v7593_v19 = vsub.s32 0, %v7590_v18  ;;  %s8562_s27 = sld [smem:[#allocation19_spill]]  ;;  %s5996_s0 = scalar_lea.hbm %s8521_s26, %s8533_s6 }
  0x2e   : > { %6688 = vmatprep.mubr.msk.f32.mxu0 %vm822_vm1, %v817_v1  ;;  %6687 = vmatpush3.msk.msra.mxu0 %vm835_vm0, %v821_v0  ;;  %s8564_s5 = sld [smem:[#allocation18_spill]] }
  0x2f   : > { %6689 = vmatmul.mubr.msk.f32.vlgmr.msra.gmra.mxu0 %vm822_vm1, %v818_v2  ;;  %6708 = vmatprep.subr.mxu0 %v7346_v5  ;;  %s8567_s9 = sld [smem:[#allocation20_spill]] }
  0x30   : > { %6691 = vmatprep.mubr.msk.f32.mxu0 %vm822_vm1, %v819_v3  ;;  %s8568_s30 = sld [smem:[#allocation21_spill]] }
  0x31   : > { %s8569_s1 = sld [smem:[#allocation22_spill]] }
  0x32   : > { %v924_v15 = vld [vmem:[%s8560_s10] sm:$0x7]  ;;  %s8571_s11 = sld [smem:[#allocation24_spill]] }
  0x33   : > { %6692 = vmatmul.mubr.msk.f32.gmra.mxu0 %vm822_vm1, %v820_v4  ;;  %s8563_s29 = smov %s8562_s27  ;;  %s8572_s12 = sld [smem:[#allocation25_spill]] }
  0x34   : > { %6716 = vmatprep.mubr.msk.f32.mxu0 %vm7347_vm2, %v7346_v5  ;;  %s8573_s13 = sld [smem:[#allocation26_spill]] }
  0xef   : > { %v6690_v6 = vpop.f32.mrf.mxu0 }
  0xf0   : > { %v1025_v12 = vmul.f32 %v6690_v6, %v6690_v6 }
  0xf1   : > { %v905_v7 = vpop.f32.mrf.mxu0 }
  0xf2   : > { %6702 = vmatprep.mubr.msk.f32.mxu1 %vm822_vm1, %v905_v7  ;;  %v1024_v14 = vmul.f32 %v905_v7, %v905_v7 }
  0xf3   : > { %v6693_v8 = vpop.f32.mrf.mxu0 }
  0xf4   : > { %v1027_v9 = vmul.f32 %v6693_v8, %v6693_v8  ;;  %6694 = vmatprep.subr.msk.mxu1 %vm822_vm1, %v6693_v8 }
  0xf5   : > { %v915_v10 = vpop.f32.mrf.mxu0  ;;  %6695 = vmatpush3.xpose.msk.msra.mxu1 %vm822_vm1, %v6693_v8 }
  0xf6   : > { %6696 = vmatprep.subr.msk.mxu1 %vm822_vm1, %v915_v10  ;;  %6709 = vmatpush3.xpose.msk.msra.mxu0 %vm822_vm1, %v1027_v9  ;;  %v1026_v11 = vmul.f32 %v915_v10, %v915_v10 }
  0xf7   : > { %6710 = vmatprep.subr.mxu0 %v7346_v5 }
  0xf9   : > { %6697 = vmatpush3.xpose.msk.msra.mxu1 %vm822_vm1, %v915_v10 }
  0xfa   : > { %6698 = vmatprep.subr.msk.mxu1 %vm822_vm1, %v6690_v6  ;;  %6711 = vmatpush3.xpose.msk.msra.mxu0 %vm822_vm1, %v1026_v11 }
  0xfb   : > { %6712 = vmatprep.subr.mxu0 %v7346_v5 }
  0xfd   : > { %6699 = vmatpush3.xpose.msk.msra.mxu1 %vm822_vm1, %v6690_v6 }
  0xfe   : > { %6700 = vmatprep.subr.msk.mxu1 %vm822_vm1, %v905_v7  ;;  %6713 = vmatpush3.xpose.msk.msra.mxu0 %vm822_vm1, %v1025_v12 }
  0xff   : > { %6714 = vmatprep.subr.mxu0 %v7346_v5 }
 0x101   : > { %6701 = vmatpush3.xpose.msk.msra.mxu1 %vm822_vm1, %v905_v7 }
 0x102   : > { %6715 = vmatpush3.xpose.msk.msra.mxu0 %vm822_vm1, %v1024_v14  ;;  %6727 = vmatprep.subr.msk.mxu1 %vm835_vm0, %v925_v13 }
 0x103   : > { %6719 = vmatprep.subr.msk.mxu0 %vm835_vm0, %v924_v15 }
 0x104   : > { %6703 = vmatmul.mubr.msk.f32.vlgmr.msra.gmra.mxu1 %vm822_vm1, %v6690_v6 }
 0x105   : > { %6705 = vmatprep.mubr.msk.f32.mxu1 %vm822_vm1, %v915_v10  ;;  %6717 = vmatmul.mubr.msk.f32.vlgmr.msra.gmra.mxu0 %vm822_vm1, %v7348_v16 }
 0x106   : > { %6721 = vmatprep.mubr.msk.f32.mxu0 %vm822_vm1, %v905_v7  ;;  %6720 = vmatpush3.msk.msra.mxu0 %vm835_vm0, %v924_v15 }
 0x107   : > { %6728 = vmatpush3.msk.msra.mxu1 %vm835_vm0, %v925_v13 }
 0x108   : > { %6706 = vmatmul.mubr.msk.f32.gmra.mxu1 %vm822_vm1, %v6693_v8 }
 0x109   : > { %6722 = vmatmul.mubr.msk.f32.vlgmr.msra.gmra.mxu0 %vm822_vm1, %v6690_v6  ;;  %6729 = vmatprep.mubr.msk.f32.mxu1 %vm822_vm1, %v905_v7 }
 0x10a   : > { %6724 = vmatprep.mubr.msk.f32.mxu0 %vm822_vm1, %v915_v10 }
 0x10c   : > { %6730 = vmatmul.mubr.msk.f32.vlgmr.msra.gmra.mxu1 %vm822_vm1, %v6690_v6 }
 0x10d   : > { %6725 = vmatmul.mubr.msk.f32.gmra.mxu0 %vm822_vm1, %v6693_v8  ;;  %6732 = vmatprep.mubr.msk.f32.mxu1 %vm822_vm1, %v915_v10 }
 0x110   : > { %6733 = vmatmul.mubr.msk.f32.gmra.mxu1 %vm822_vm1, %v6693_v8 }
 0x1c4   : > { %v6704_v20 = vpop.f32.mrf.mxu1 }
 0x1c5   : > { %v1109_v21 = vpop.f32.mrf.mxu0  ;;  %v1114_v24 = vmul.f32 2.0, %v6704_v20 }
 0x1c6   : > { %v1120_v22 = vrot.slane %v1109_v21, %v7593_v19  ;;  %v1005_v23 = vpop.f32.mrf.mxu1 }
 0x1c7   : > { %v1113_v25 = vmul.f32 2.0, %v1005_v23  ;;  %v6718_v26 = vpop.f32.mrf.mxu0 }
 0x1c8   : > { %v6707_v27 = vpop.f32.mrf.mxu1  ;;  %v1122_v33 = vsub.f32 %v1120_v22, %v1114_v24 }
 0x1c9   : > { %v1121_v28 = vsub.f32 %v1120_v22, %v1113_v25  ;;  %v1116_v30 = vmul.f32 2.0, %v6707_v27 }
 0x1ca   : > { %v1015_v29 = vpop.f32.mrf.mxu1  ;;  %v1313_v38 = vsel %vm1309_vm3, %v1122_v33, inf }
 0x1cb   : > { %v1115_v31 = vmul.f32 2.0, %v1015_v29  ;;  %v1310_v32 = vsel %vm1309_vm3, %v1121_v28, inf  ;;  %v1124_v37 = vsub.f32 %v1120_v22, %v1116_v30 }
 0x1cc   : > { %1311 = vmin.xlane.f32.xlu0 %v1310_v32  ;;  %v6731_v34 = vpop.f32.mrf.mxu1 }
 0x1cd   : > { %v1123_v35 = vsub.f32 %v1120_v22, %v1115_v31  ;;  %v1319_v43 = vsel %vm1309_vm3, %v1124_v37, inf }
 0x1ce   : > { %v1288_v36 = vpop.f32.mrf.mxu1 }
 0x1cf   : > { %v1316_v39 = vsel %vm1309_vm3, %v1123_v35, inf  ;;  %v7602_v44 = vpack.c.bf16 %v6731_v34, %v1288_v36 }
 0x1d0   : > { %1314 = vmin.xlane.f32.xlu0 %v1313_v38  ;;  %v6734_v40 = vpop.f32.mrf.mxu1  ;;  %1317 = vmin.xlane.f32.xlu1 %v1316_v39 }
 0x1d2   : > { %v1298_v41 = vpop.f32.mrf.mxu1 }
 0x1d3   : > { %v7599_v42 = vpack.c.bf16 %v6734_v40, %v1298_v41 }
 0x1d4   : > { %1320 = vmin.xlane.f32.xlu1 %v1319_v43 }
 0x1d5   : > { %6735 = vmatprep.subr.bf16.mxu0 %v7599_v42  ;;  %6743 = vmatprep.subr.bf16.mxu1 %v7599_v42 }
 0x1d6   : > { %6736 = vmatpush3.bf16.msra.mxu0 %v7599_v42  ;;  %6744 = vmatpush3.bf16.msra.mxu1 %v7599_v42 }
 0x1d7   : > { %6737 = vmatprep.subr.bf16.mxu0 %v7602_v44  ;;  %6745 = vmatprep.subr.bf16.mxu1 %v7602_v44 }
 0x1da   : > { %6738 = vmatpush3.bf16.msra.mxu0 %v7602_v44  ;;  %6746 = vmatpush3.bf16.msra.mxu1 %v7602_v44 }
 0x1db   : > { %6751 = vmatprep.subr.bf16.mxu0 %v7599_v42  ;;  %6759 = vmatprep.subr.bf16.mxu1 %v7599_v42 }
 0x255   : > { %v1312_v45 = vpop.xlane.xlu0 %1311 }
 0x256   : > { %vm1322_vm4 = vcmp.le.f32.partialorder %v1121_v28, %v1312_v45 }
 0x257   : > { %v1391_v46 = vsel %vm1322_vm4, inf, %v1121_v28  ;;  %v6129_v50 = vsel %vm1322_vm4, 1.0, %v7346_v5 }
 0x258   : > { %v1395_v47 = vsel %vm1309_vm3, %v1391_v46, inf }
 0x259   : > { %1396 = vmin.xlane.f32.xlu0 %v1395_v47  ;;  %v1315_v48 = vpop.xlane.xlu0 %1314  ;;  %v1318_v49 = vpop.xlane.xlu1 %1317 }
 0x25a   : > { %vm1323_vm5 = vcmp.le.f32.partialorder %v1122_v33, %v1315_v48  ;;  %vm1324_vm6 = vcmp.le.f32.partialorder %v1123_v35, %v1318_v49 }
 0x25b   : > { %v6130_v51 = vsel %vm1323_vm5, 1.0, %v7346_v5  ;;  %v1392_v52 = vsel %vm1323_vm5, inf, %v1122_v33  ;;  %v1393_v53 = vsel %vm1324_vm6, inf, %v1123_v35  ;;  %v6131_v58 = vsel %vm1324_vm6, 1.0, %v7346_v5 }
 0x25c   : > { %v1334_v54 = vpack.c.bf16 %v6130_v51, %v6129_v50  ;;  %v1398_v55 = vsel %vm1309_vm3, %v1392_v52, inf  ;;  %v1401_v56 = vsel %vm1309_vm3, %v1393_v53, inf }
 0x25d   : > { %1399 = vmin.xlane.f32.xlu1 %v1398_v55  ;;  %1402 = vmin.xlane.f32.xlu0 %v1401_v56  ;;  %v1321_v57 = vpop.xlane.xlu1 %1320 }
 0x25e   : > { %vm1325_vm7 = vcmp.le.f32.partialorder %v1124_v37, %v1321_v57  ;;  %6739 = vmatprep.mubr.msk.bf16.mxu0 %vm1309_vm3, %v1334_v54 }
 0x25f   : > { %v6132_v59 = vsel %vm1325_vm7, 1.0, %v7346_v5  ;;  %v1394_v60 = vsel %vm1325_vm7, inf, %v1124_v37 }
 0x260   : > { %v1335_v61 = vpack.c.bf16 %v6132_v59, %v6131_v58  ;;  %v1404_v62 = vsel %vm1309_vm3, %v1394_v60, inf }
 0x261   : > { %1405 = vmin.xlane.f32.xlu1 %v1404_v62 }
 0x262   : > { %6740 = vmatmul.mubr.msk.bf16.vlgmr.msra.gmra.mxu0 %vm1309_vm3, %v1335_v61 }
 0x263   : > { %6752 = vmatpush3.bf16.msra.mxu0 %v7599_v42 }
 0x264   : > { %6753 = vmatprep.subr.bf16.mxu0 %v7602_v44 }
 0x267   : > { %6754 = vmatpush3.bf16.msra.mxu0 %v7602_v44 }
 0x268   : > { %6767 = vmatprep.subr.bf16.mxu0 %v7599_v42 }
 0x2e2   : > { %v1397_v63 = vpop.xlane.xlu0 %1396 }
 0x2e3   : > { %vm1407_vm8 = vcmp.le.f32.partialorder %v1391_v46, %v1397_v63 }
 0x2e4   : > { %v1480_v0 = vsel %vm1407_vm8, inf, %v1391_v46  ;;  %v6135_v4 = vsel %vm1407_vm8, 1.0, %v7346_v5 }
 0x2e5   : > { %v1484_v1 = vsel %vm1309_vm3, %v1480_v0, inf }
 0x2e6   : > { %1485 = vmin.xlane.f32.xlu0 %v1484_v1  ;;  %v1403_v2 = vpop.xlane.xlu0 %1402  ;;  %v1400_v3 = vpop.xlane.xlu1 %1399 }
 0x2e7   : > { %vm1409_vm9 = vcmp.le.f32.partialorder %v1393_v53, %v1403_v2  ;;  %vm1408_vm10 = vcmp.le.f32.partialorder %v1392_v52, %v1400_v3 }
 0x2e8   : > { %v6136_v6 = vsel %vm1408_vm10, 1.0, %v7346_v5  ;;  %v1482_v7 = vsel %vm1409_vm9, inf, %v1393_v53  ;;  %v1481_v8 = vsel %vm1408_vm10, inf, %v1392_v52  ;;  %v6137_v13 = vsel %vm1409_vm9, 1.0, %v7346_v5 }
 0x2e9   : > { %v1419_v9 = vpack.c.bf16 %v6136_v6, %v6135_v4  ;;  %v1490_v10 = vsel %vm1309_vm3, %v1482_v7, inf  ;;  %v1487_v11 = vsel %vm1309_vm3, %v1481_v8, inf }
 0x2ea   : > { %1491 = vmin.xlane.f32.xlu0 %v1490_v10  ;;  %1488 = vmin.xlane.f32.xlu1 %v1487_v11  ;;  %v1406_v12 = vpop.xlane.xlu1 %1405 }
 0x2eb   : > { %vm1410_vm11 = vcmp.le.f32.partialorder %v1394_v60, %v1406_v12  ;;  %6747 = vmatprep.mubr.msk.bf16.mxu1 %vm1309_vm3, %v1419_v9 }
 0x2ec   : > { %v6138_v14 = vsel %vm1410_vm11, 1.0, %v7346_v5  ;;  %v1483_v15 = vsel %vm1410_vm11, inf, %v1394_v60 }
 0x2ed   : > { %v1420_v17 = vpack.c.bf16 %v6138_v14, %v6137_v13  ;;  %v1493_v20 = vsel %vm1309_vm3, %v1483_v15, inf }
 0x2ee   : > { %1494 = vmin.xlane.f32.xlu1 %v1493_v20 }
 0x2ef   : > { %6748 = vmatmul.mubr.msk.bf16.vlgmr.msra.gmra.mxu1 %vm1309_vm3, %v1420_v17 }
 0x2f0   : > { %6760 = vmatpush3.bf16.msra.mxu1 %v7599_v42 }
 0x2f1   : > { %6761 = vmatprep.subr.bf16.mxu1 %v7602_v44 }
 0x2f4   : > { %6762 = vmatpush3.bf16.msra.mxu1 %v7602_v44 }
 0x2f5   : > { %6775 = vmatprep.subr.bf16.mxu1 %v7599_v42 }
 0x36f   : > { %v1486_v21 = vpop.xlane.xlu0 %1485 }
 0x370   : > { %vm1496_vm12 = vcmp.le.f32.partialorder %v1480_v0, %v1486_v21 }
 0x371   : > { %v1569_v22 = vsel %vm1496_vm12, inf, %v1480_v0  ;;  %v6141_v26 = vsel %vm1496_vm12, 1.0, %v7346_v5 }
 0x372   : > { %v1573_v23 = vsel %vm1309_vm3, %v1569_v22, inf }
 0x373   : > { %1574 = vmin.xlane.f32.xlu0 %v1573_v23  ;;  %v1492_v24 = vpop.xlane.xlu0 %1491  ;;  %v1489_v25 = vpop.xlane.xlu1 %1488 }
 0x374   : > { %vm1498_vm13 = vcmp.le.f32.partialorder %v1482_v7, %v1492_v24  ;;  %vm1497_vm14 = vcmp.le.f32.partialorder %v1481_v8, %v1489_v25 }
 0x375   : > { %v6142_v27 = vsel %vm1497_vm14, 1.0, %v7346_v5  ;;  %v1571_v28 = vsel %vm1498_vm13, inf, %v1482_v7  ;;  %v1570_v29 = vsel %vm1497_vm14, inf, %v1481_v8  ;;  %v6143_v34 = vsel %vm1498_vm13, 1.0, %v7346_v5 }
 0x376   : > { %v1508_v30 = vpack.c.bf16 %v6142_v27, %v6141_v26  ;;  %v1579_v31 = vsel %vm1309_vm3, %v1571_v28, inf  ;;  %v1576_v32 = vsel %vm1309_vm3, %v1570_v29, inf }
 0x377   : > { %1580 = vmin.xlane.f32.xlu0 %v1579_v31  ;;  %1577 = vmin.xlane.f32.xlu1 %v1576_v32  ;;  %v1495_v33 = vpop.xlane.xlu1 %1494 }
 0x378   : > { %vm1499_vm15 = vcmp.le.f32.partialorder %v1483_v15, %v1495_v33  ;;  %6755 = vmatprep.mubr.msk.bf16.mxu0 %vm1309_vm3, %v1508_v30 }
 0x379   : > { %v6144_v35 = vsel %vm1499_vm15, 1.0, %v7346_v5  ;;  %v1572_v36 = vsel %vm1499_vm15, inf, %v1483_v15 }
 0x37a   : > { %v1509_v37 = vpack.c.bf16 %v6144_v35, %v6143_v34  ;;  %v1582_v38 = vsel %vm1309_vm3, %v1572_v36, inf }
 0x37b   : > { %1583 = vmin.xlane.f32.xlu1 %v1582_v38 }
 0x37c   : > { %6756 = vmatmul.mubr.msk.bf16.vlgmr.msra.gmra.mxu0 %vm1309_vm3, %v1509_v37 }
 0x37d   : > { %6768 = vmatpush3.bf16.msra.mxu0 %v7599_v42 }
 0x37e   : > { %6769 = vmatprep.subr.bf16.mxu0 %v7602_v44 }
 0x381   : > { %6770 = vmatpush3.bf16.msra.mxu0 %v7602_v44 }
 0x382   : > { %6783 = vmatprep.subr.bf16.mxu0 %v7599_v42 }
 0x3fc   : > { %v1575_v39 = vpop.xlane.xlu0 %1574 }
 0x3fd   : > { %vm1585_vm0 = vcmp.le.f32.partialorder %v1569_v22, %v1575_v39 }
 0x3fe   : > { %v1658_v40 = vsel %vm1585_vm0, inf, %v1569_v22  ;;  %v6147_v46 = vsel %vm1585_vm0, 1.0, %v7346_v5 }
 0x3ff   : > { %v1662_v41 = vsel %vm1309_vm3, %v1658_v40, inf }
 0x400   : > { %1663 = vmin.xlane.f32.xlu0 %v1662_v41  ;;  %v1581_v43 = vpop.xlane.xlu0 %1580  ;;  %v1578_v45 = vpop.xlane.xlu1 %1577 }
 0x401   : > { %vm1587_vm1 = vcmp.le.f32.partialorder %v1571_v28, %v1581_v43  ;;  %vm1586_vm4 = vcmp.le.f32.partialorder %v1570_v29, %v1578_v45 }
 0x402   : > { %v6148_v47 = vsel %vm1586_vm4, 1.0, %v7346_v5  ;;  %v1660_v48 = vsel %vm1587_vm1, inf, %v1571_v28  ;;  %v1659_v49 = vsel %vm1586_vm4, inf, %v1570_v29  ;;  %v6149_v54 = vsel %vm1587_vm1, 1.0, %v7346_v5 }
 0x403   : > { %v1597_v50 = vpack.c.bf16 %v6148_v47, %v6147_v46  ;;  %v1668_v51 = vsel %vm1309_vm3, %v1660_v48, inf  ;;  %v1665_v52 = vsel %vm1309_vm3, %v1659_v49, inf }
 0x404   : > { %1669 = vmin.xlane.f32.xlu0 %v1668_v51  ;;  %1666 = vmin.xlane.f32.xlu1 %v1665_v52  ;;  %v1584_v53 = vpop.xlane.xlu1 %1583 }
 0x405   : > { %vm1588_vm5 = vcmp.le.f32.partialorder %v1572_v36, %v1584_v53  ;;  %6763 = vmatprep.mubr.msk.bf16.mxu1 %vm1309_vm3, %v1597_v50 }
 0x406   : > { %v6150_v55 = vsel %vm1588_vm5, 1.0, %v7346_v5  ;;  %v1661_v56 = vsel %vm1588_vm5, inf, %v1572_v36 }
 0x407   : > { %v1598_v57 = vpack.c.bf16 %v6150_v55, %v6149_v54  ;;  %v1671_v58 = vsel %vm1309_vm3, %v1661_v56, inf }
 0x408   : > { %1672 = vmin.xlane.f32.xlu1 %v1671_v58 }
 0x409   : > { %6764 = vmatmul.mubr.msk.bf16.vlgmr.msra.gmra.mxu1 %vm1309_vm3, %v1598_v57 }
 0x40a   : > { %6776 = vmatpush3.bf16.msra.mxu1 %v7599_v42 }
 0x40b   : > { %6777 = vmatprep.subr.bf16.mxu1 %v7602_v44 }
 0x40e   : > { %6778 = vmatpush3.bf16.msra.mxu1 %v7602_v44 }
 0x40f   : > { %6791 = vmatprep.subr.bf16.mxu1 %v7599_v42 }
 0x489   : > { %v1664_v59 = vpop.xlane.xlu0 %1663 }
 0x48a   : > { %vm1674_vm6 = vcmp.le.f32.partialorder %v1658_v40, %v1664_v59 }
 0x48b   : > { %v1747_v60 = vsel %vm1674_vm6, inf, %v1658_v40  ;;  %v6153_v0 = vsel %vm1674_vm6, 1.0, %v7346_v5 }
 0x48c   : > { %v1751_v61 = vsel %vm1309_vm3, %v1747_v60, inf }
 0x48d   : > { %1752 = vmin.xlane.f32.xlu0 %v1751_v61  ;;  %v1670_v62 = vpop.xlane.xlu0 %1669  ;;  %v1667_v63 = vpop.xlane.xlu1 %1666 }
 0x48e   : > { %vm1676_vm7 = vcmp.le.f32.partialorder %v1660_v48, %v1670_v62  ;;  %vm1675_vm8 = vcmp.le.f32.partialorder %v1659_v49, %v1667_v63  ;;  %v7715_v63 = vpop.f32.mrf.mxu0 }
 0x48f   : > { %v6154_v1 = vsel %vm1675_vm8, 1.0, %v7346_v5  ;;  %v1749_v2 = vsel %vm1676_vm7, inf, %v1660_v48  ;;  %v1748_v3 = vsel %vm1675_vm8, inf, %v1659_v49  ;;  %v6155_v9 = vsel %vm1676_vm7, 1.0, %v7346_v5 }
 0x490   : > { %v1686_v4 = vpack.c.bf16 %v6154_v1, %v6153_v0  ;;  %v1757_v6 = vsel %vm1309_vm3, %v1749_v2, inf  ;;  %v1754_v7 = vsel %vm1309_vm3, %v1748_v3, inf  ;;  %v1200_v0 = vpop.f32.mrf.mxu0  ;;  %vm2029_vm8 = vcmask 130048  }
 0x491   : > { %1758 = vmin.xlane.f32.xlu0 %v1757_v6  ;;  %1755 = vmin.xlane.f32.xlu1 %v1754_v7  ;;  %v1673_v8 = vpop.xlane.xlu1 %1672  ;;  %v6749_v7 = vpop.f32.mrf.mxu1 }
 0x492   : > { %vm1677_vm9 = vcmp.le.f32.partialorder %v1661_v56, %v1673_v8  ;;  %6771 = vmatprep.mubr.msk.bf16.mxu0 %vm1309_vm3, %v1686_v4  ;;  %v6726_v1 = vpop.f32.mrf.mxu0 }
 0x493   : > { %v6156_v10 = vsel %vm1677_vm9, 1.0, %v7346_v5  ;;  %v1750_v11 = vsel %vm1677_vm9, inf, %v1661_v56 }
 0x494   : > { %v1687_v12 = vpack.c.bf16 %v6156_v10, %v6155_v9  ;;  %v1760_v13 = vsel %vm1309_vm3, %v1750_v11, inf  ;;  %v1461_v9 = vpop.f32.mrf.mxu1 }
 0x495   : > { %1761 = vmin.xlane.f32.xlu1 %v1760_v13 }
 0x496   : > { %6772 = vmatmul.mubr.msk.bf16.vlgmr.msra.gmra.mxu0 %vm1309_vm3, %v1687_v12 }
 0x497   : > { %6784 = vmatpush3.bf16.msra.mxu0 %v7599_v42 }
 0x498   : > { %6785 = vmatprep.subr.bf16.mxu0 %v7602_v44 }
 0x49b   : > { %6786 = vmatpush3.bf16.msra.mxu0 %v7602_v44 }
 0x516   : > { %v1753_v14 = vpop.xlane.xlu0 %1752 }
 0x517   : > { %vm1763_vm10 = vcmp.le.f32.partialorder %v1747_v60, %v1753_v14 }
 0x518   : > { %v1836_v15 = vsel %vm1763_vm10, inf, %v1747_v60  ;;  %v6159_v22 = vsel %vm1763_vm10, 1.0, %v7346_v5 }
 0x519   : > { %v1840_v17 = vsel %vm1309_vm3, %v1836_v15, inf }
 0x51a   : > { %1841 = vmin.xlane.f32.xlu0 %v1840_v17  ;;  %v1759_v20 = vpop.xlane.xlu0 %1758  ;;  %v1756_v21 = vpop.xlane.xlu1 %1755 }
 0x51b   : > { %vm1765_vm11 = vcmp.le.f32.partialorder %v1749_v2, %v1759_v20  ;;  %vm1764_vm12 = vcmp.le.f32.partialorder %v1748_v3, %v1756_v21 }
 0x51c   : > { %v6160_v23 = vsel %vm1764_vm12, 1.0, %v7346_v5  ;;  %v1838_v24 = vsel %vm1765_vm11, inf, %v1749_v2  ;;  %v1837_v25 = vsel %vm1764_vm12, inf, %v1748_v3  ;;  %v6161_v30 = vsel %vm1765_vm11, 1.0, %v7346_v5  ;;  %v1210_v2 = vpop.f32.mrf.mxu0 }
 0x51d   : > { %v1775_v26 = vpack.c.bf16 %v6160_v23, %v6159_v22  ;;  %v1846_v27 = vsel %vm1309_vm3, %v1838_v24, inf  ;;  %v1843_v28 = vsel %vm1309_vm3, %v1837_v25, inf }
 0x51e   : > { %1847 = vmin.xlane.f32.xlu0 %v1846_v27  ;;  %1844 = vmin.xlane.f32.xlu1 %v1843_v28  ;;  %v1762_v29 = vpop.xlane.xlu1 %1761  ;;  %v6741_v3 = vpop.f32.mrf.mxu0 }
 0x51f   : > { %vm1766_vm13 = vcmp.le.f32.partialorder %v1750_v11, %v1762_v29  ;;  %6779 = vmatprep.mubr.msk.bf16.mxu1 %vm1309_vm3, %v1775_v26 }
 0x520   : > { %v6162_v31 = vsel %vm1766_vm13, 1.0, %v7346_v5  ;;  %v1839_v32 = vsel %vm1766_vm13, inf, %v1750_v11  ;;  %v1376_v4 = vpop.f32.mrf.mxu0  ;;  %v6750_v11 = vpop.f32.mrf.mxu1 }
 0x521   : > { %v1776_v33 = vpack.c.bf16 %v6162_v31, %v6161_v30  ;;  %v1849_v34 = vsel %vm1309_vm3, %v1839_v32, inf  ;;  %v1478_v30 = vmax.f32 %v6741_v3, %v6749_v7  ;;  %v1476_v31 = vmax.f32 %v1376_v4, %v1461_v9 }
 0x522   : > { %1850 = vmin.xlane.f32.xlu1 %v1849_v34  ;;  %v6742_v6 = vpop.f32.mrf.mxu0  ;;  %v1464_v13 = vpop.f32.mrf.mxu1 }
 0x523   : > { %6780 = vmatmul.mubr.msk.bf16.vlgmr.msra.gmra.mxu1 %vm1309_vm3, %v1776_v33 }
 0x524   : > { %6792 = vmatpush3.bf16.msra.mxu1 %v7599_v42  ;;  %v1379_v8 = vpop.f32.mrf.mxu0 }
 0x525   : > { %6793 = vmatprep.subr.bf16.mxu1 %v7602_v44 }
 0x526   : > { %v6757_v10 = vpop.f32.mrf.mxu0 }
 0x527   : > { %v1567_v33 = vmax.f32 %v1478_v30, %v6757_v10 }
 0x528   : > { %6794 = vmatpush3.bf16.msra.mxu1 %v7602_v44  ;;  %v1550_v12 = vpop.f32.mrf.mxu0 }
 0x529   : > { %6813 = vmatprep.subr.mxu1 %v7346_v5  ;;  %v1565_v34 = vmax.f32 %v1476_v31, %v1550_v12 }
 0x52a   : > { %v6758_v14 = vpop.f32.mrf.mxu0 }
 0x52c   : > { %v1553_v17 = vpop.f32.mrf.mxu0 }
 0x556   : > { %v6773_v21 = vpop.f32.mrf.mxu0 }
 0x558   : > { %v1728_v23 = vpop.f32.mrf.mxu0 }
 0x5a3   : > { %v1842_v35 = vpop.xlane.xlu0 %1841 }
 0x5a4   : > { %vm1852_vm14 = vcmp.le.f32.partialorder %v1836_v15, %v1842_v35 }
 0x5a5   : > { %v1925_v36 = vsel %vm1852_vm14, inf, %v1836_v15  ;;  %v6165_v40 = vsel %vm1852_vm14, 1.0, %v7346_v5  ;;  %v6765_v15 = vpop.f32.mrf.mxu1 }
 0x5a6   : > { %v1929_v37 = vsel %vm1309_vm3, %v1925_v36, inf }
 0x5a7   : > { %1930 = vmin.xlane.f32.xlu0 %v1929_v37  ;;  %v1848_v38 = vpop.xlane.xlu0 %1847  ;;  %v1845_v39 = vpop.xlane.xlu1 %1844  ;;  %v1477_v37 = vmax.f32 %v1379_v8, %v1464_v13 }
 0x5a8   : > { %vm1854_vm15 = vcmp.le.f32.partialorder %v1838_v24, %v1848_v38  ;;  %vm1853_vm0 = vcmp.le.f32.partialorder %v1837_v25, %v1845_v39  ;;  %v1639_v20 = vpop.f32.mrf.mxu1  ;;  %v1656_v39 = vmax.f32 %v1567_v33, %v6765_v15 }
 0x5a9   : > { %v6166_v42 = vsel %vm1853_vm0, 1.0, %v7346_v5  ;;  %v1927_v41 = vsel %vm1854_vm15, inf, %v1838_v24  ;;  %v1926_v43 = vsel %vm1853_vm0, inf, %v1837_v25  ;;  %v6167_v48 = vsel %vm1854_vm15, 1.0, %v7346_v5  ;;  %v6774_v25 = vpop.f32.mrf.mxu0 }
 0x5aa   : > { %v1864_v45 = vpack.c.bf16 %v6166_v42, %v6165_v40  ;;  %v1935_v44 = vsel %vm1309_vm3, %v1927_v41, inf  ;;  %v1932_v46 = vsel %vm1309_vm3, %v1926_v43, inf  ;;  %v6766_v22 = vpop.f32.mrf.mxu1  ;;  %v1654_v40 = vmax.f32 %v1565_v34, %v1639_v20 }
 0x5ab   : > { %1936 = vmin.xlane.f32.xlu0 %v1935_v44  ;;  %1933 = vmin.xlane.f32.xlu1 %v1932_v46  ;;  %v1851_v47 = vpop.xlane.xlu1 %1850  ;;  %v1731_v27 = vpop.f32.mrf.mxu0  ;;  %v1566_v42 = vmax.f32 %v1477_v37, %v1553_v17 }
 0x5ac   : > { %vm1855_vm1 = vcmp.le.f32.partialorder %v1839_v32, %v1851_v47  ;;  %6787 = vmatprep.mubr.msk.bf16.mxu0 %vm1309_vm3, %v1864_v45  ;;  %v1642_v24 = vpop.f32.mrf.mxu1  ;;  %v1743_v45 = vmax.f32 %v1654_v40, %v1728_v23  ;;  %v2027_v23 = vld [vmem:[%s8562_s27 + $0x8] sm:$0xff]  ;;  %s8570_s27 = sld [smem:[#allocation23_spill]] }
 0x5ad   : > { %v6168_v49 = vsel %vm1855_vm1, 1.0, %v7346_v5  ;;  %v1928_v50 = vsel %vm1855_vm1, inf, %v1839_v32  ;;  %v1479_v32 = vmax.f32 %v6742_v6, %v6750_v11  ;;  %v1655_v47 = vmax.f32 %v1566_v42, %v1642_v24 }
 0x5ae   : > { %v1865_v51 = vpack.c.bf16 %v6168_v49, %v6167_v48  ;;  %v1938_v52 = vsel %vm1309_vm3, %v1928_v50, inf }
 0x5af   : > { %1939 = vmin.xlane.f32.xlu1 %v1938_v52  ;;  %v1568_v38 = vmax.f32 %v1479_v32, %v6758_v14  ;;  %v6118_v52 = vld [vmem:[%s8561_s4] ss:$0 sm:$0xff] }
 0x5b0   : > { %6788 = vmatmul.mubr.msk.bf16.vlgmr.msra.gmra.mxu0 %vm1309_vm3, %v1865_v51  ;;  %v1216_v4 = vadd.f32 %v6726_v1, %v6118_v52  ;;  %v1211_v7 = vadd.f32 %v6118_v52, %v1210_v2 }
 0x5e3   : > { %v6781_v26 = vpop.f32.mrf.mxu1 }
 0x5e5   : > { %v1817_v28 = vpop.f32.mrf.mxu1 }
 0x5e7   : > { %v6782_v35 = vpop.f32.mrf.mxu1 }
 0x5e9   : > { %v1820_v44 = vpop.f32.mrf.mxu1 }
 0x630   : > { %v1931_v53 = vpop.xlane.xlu0 %1930 }
 0x631   : > { %vm1941_vm4 = vcmp.le.f32.partialorder %v1925_v36, %v1931_v53  ;;  %v1744_v53 = vmax.f32 %v1655_v47, %v1731_v27  ;;  %v2026_v27 = vld [vmem:[%s8563_s29] sm:$0xff] }
 0x632   : > { %v6171_v56 = vsel %vm1941_vm4, 1.0, %v7346_v5 }
 0x634   : > { %v1937_v54 = vpop.xlane.xlu0 %1936  ;;  %v1934_v55 = vpop.xlane.xlu1 %1933 }
 0x635   : > { %vm1942_vm5 = vcmp.le.f32.partialorder %v1926_v43, %v1934_v55  ;;  %vm1943_vm6 = vcmp.le.f32.partialorder %v1927_v41, %v1937_v54  ;;  %v1657_v41 = vmax.f32 %v1568_v38, %v6766_v22  ;;  %v1745_v43 = vmax.f32 %v1656_v39, %v6773_v21 }
 0x636   : > { %v6172_v57 = vsel %vm1942_vm5, 1.0, %v7346_v5  ;;  %v6173_v60 = vsel %vm1943_vm6, 1.0, %v7346_v5 }
 0x637   : > { %v1953_v58 = vpack.c.bf16 %v6172_v57, %v6171_v56  ;;  %v1746_v48 = vmax.f32 %v1657_v41, %v6774_v25  ;;  %v1834_v49 = vmax.f32 %v1745_v43, %v6781_v26  ;;  %v1201_v57 = vadd.f32 %v6118_v52, %v1200_v0  ;;  %v2025_v25 = vld [vmem:[%s8564_s5 + $0x8] sm:$0xff]  ;;  %v2024_v26 = vld [vmem:[%s8564_s5] sm:$0xff] }
 0x638   : > { %v1940_v59 = vpop.xlane.xlu1 %1939  ;;  %v1206_v0 = vadd.f32 %v7715_v63, %v6118_v52 }
 0x639   : > { %vm1944_vm7 = vcmp.le.f32.partialorder %v1928_v50, %v1940_v59  ;;  %6795 = vmatprep.mubr.msk.bf16.mxu1 %vm1309_vm3, %v1953_v58  ;;  %v1832_v50 = vmax.f32 %v1743_v45, %v1817_v28  ;;  %v1835_v54 = vmax.f32 %v1746_v48, %v6782_v35 }
 0x63a   : > { %v6174_v61 = vsel %vm1944_vm7, 1.0, %v7346_v5 }
 0x63b   : > { %v1954_v62 = vpack.c.bf16 %v6174_v61, %v6173_v60  ;;  %v1833_v60 = vmax.f32 %v1744_v53, %v1820_v44 }
 0x63d   : > { %6796 = vmatmul.mubr.msk.bf16.vlgmr.msra.gmra.mxu1 %vm1309_vm3, %v1954_v62 }
 0x63e   : > { %6821 = vmatprep.mubr.msk.f32.mxu1 %vm7347_vm2, %v7346_v5 }
 0x670   : > { %v6789_v29 = vpop.f32.mrf.mxu0 }
 0x671   : > { %v1923_v55 = vmax.f32 %v1834_v49, %v6789_v29 }
 0x672   : > { %v1906_v36 = vpop.f32.mrf.mxu0 }
 0x673   : > { %v1921_v56 = vmax.f32 %v1832_v50, %v1906_v36 }
 0x674   : > { %v6790_v46 = vpop.f32.mrf.mxu0 }
 0x675   : > { %v1924_v61 = vmax.f32 %v1835_v54, %v6790_v46 }
 0x676   : > { %v1909_v58 = vpop.f32.mrf.mxu0 }
 0x677   : > { %v1922_v8 = vmax.f32 %v1833_v60, %v1909_v58 }
 0x6fd   : > { %v6797_v51 = vpop.f32.mrf.mxu1 }
 0x6fe   : > { %v2012_v62 = vmax.f32 %v1923_v55, %v6797_v51 }
 0x6ff   : > { %v1995_v59 = vpop.f32.mrf.mxu1 }
 0x700   : > { %v2010_v3 = vmax.f32 %v1921_v56, %v1995_v59  ;;  %v2016_v12 = vadd.f32 %v2012_v62, %v1211_v7 }
 0x701   : > { %v6798_v6 = vpop.f32.mrf.mxu1 }
 0x702   : > { %v2014_v9 = vadd.f32 %v2010_v3, %v1201_v57  ;;  %v2013_v10 = vmax.f32 %v1924_v61, %v6798_v6  ;;  %v7727_v1 = vmax.f32 %v2016_v12, 0.0 }
 0x703   : > { %v1998_v11 = vpop.f32.mrf.mxu1 }
 0x704   : > { %v7720_v13 = vmax.f32 %v2014_v9, 0.0  ;;  %v2017_v14 = vadd.f32 %v2013_v10, %v1216_v4  ;;  %v2011_v15 = vmax.f32 %v1922_v8, %v1998_v11  ;;  %v2129_v21 = vmul.f32 %v7727_v1, %v7727_v1 }
 0x706   : > { %v7723_v17 = vmax.f32 %v2017_v14, 0.0  ;;  %6807 = vmatprep.mubr.msk.f32.mxu0 %vm2029_vm8, %v7720_v13  ;;  %v2015_v2 = vadd.f32 %v2011_v15, %v1206_v0  ;;  %v2127_v24 = vmul.f32 %v7720_v13, %v7720_v13 }
 0x708   : > { %6799 = vmatprep.subr.msk.mxu0 %vm2029_vm8, %v7723_v17  ;;  %v2130_v20 = vmul.f32 %v7723_v17, %v7723_v17  ;;  %v7739_v63 = vmax.f32 %v2015_v2, 0.0 }
 0x709   : > { %6800 = vmatpush3.xpose.msk.msra.mxu0 %vm2029_vm8, %v7723_v17 }
 0x70a   : > { %6801 = vmatprep.subr.msk.mxu0 %vm2029_vm8, %v7727_v1  ;;  %6814 = vmatpush3.xpose.msk.msra.mxu1 %vm2029_vm8, %v2130_v20  ;;  %v2128_v22 = vmul.f32 %v7739_v63, %v7739_v63 }
 0x70b   : > { %6815 = vmatprep.subr.mxu1 %v7346_v5 }
 0x70d   : > { %6802 = vmatpush3.xpose.msk.msra.mxu0 %vm2029_vm8, %v7727_v1 }
 0x70e   : > { %6803 = vmatprep.subr.msk.mxu0 %vm2029_vm8, %v7739_v63  ;;  %6816 = vmatpush3.xpose.msk.msra.mxu1 %vm2029_vm8, %v2129_v21 }
 0x70f   : > { %6817 = vmatprep.subr.mxu1 %v7346_v5 }
 0x711   : > { %6804 = vmatpush3.xpose.msk.msra.mxu0 %vm2029_vm8, %v7739_v63 }
 0x712   : > { %6805 = vmatprep.subr.msk.mxu0 %vm2029_vm8, %v7720_v13  ;;  %6818 = vmatpush3.xpose.msk.msra.mxu1 %vm2029_vm8, %v2128_v22 }
 0x713   : > { %6819 = vmatprep.subr.mxu1 %v7346_v5 }
 0x715   : > { %6806 = vmatpush3.xpose.msk.msra.mxu0 %vm2029_vm8, %v7720_v13 }
 0x716   : > { %6820 = vmatpush3.xpose.msk.msra.mxu1 %vm2029_vm8, %v2127_v24  ;;  %6834 = vmatprep.subr.mxu0 %v2027_v23 }
 0x717   : > { %6824 = vmatprep.subr.mxu1 %v2025_v25 }
 0x718   : > { %6808 = vmatmul.mubr.msk.f32.vlgmr.msra.gmra.mxu0 %vm2029_vm8, %v7739_v63 }
 0x719   : > { %6810 = vmatprep.mubr.msk.f32.mxu0 %vm2029_vm8, %v7727_v1  ;;  %6822 = vmatmul.mubr.msk.f32.vlgmr.msra.gmra.mxu1 %vm2029_vm8, %v7348_v16 }
 0x71a   : > { %6825 = vmatpush3.msra.mxu1 %v2025_v25  ;;  %6828 = vmatprep.mubr.msk.f32.mxu1 %vm2029_vm8, %v7720_v13 }
 0x71b   : > { %6826 = vmatprep.subr.mxu1 %v2024_v26  ;;  %6835 = vmatpush3.msra.mxu0 %v2027_v23 }
 0x71c   : > { %6811 = vmatmul.mubr.msk.f32.gmra.mxu0 %vm2029_vm8, %v7723_v17  ;;  %6827 = vmatpush3.msra.mxu1 %v2024_v26 }
 0x71d   : > { %6829 = vmatmul.mubr.msk.f32.vlgmr.msra.gmra.mxu1 %vm2029_vm8, %v7739_v63  ;;  %6838 = vmatprep.mubr.msk.f32.mxu0 %vm2029_vm8, %v7720_v13 }
 0x71e   : > { %6831 = vmatprep.mubr.msk.f32.mxu1 %vm2029_vm8, %v7727_v1  ;;  %6836 = vmatprep.subr.mxu0 %v2026_v27 }
 0x71f   : > { %6837 = vmatpush3.msra.mxu0 %v2026_v27 }
 0x720   : > { %6839 = vmatmul.mubr.msk.f32.vlgmr.msra.gmra.mxu0 %vm2029_vm8, %v7739_v63 }
 0x721   : > { %6832 = vmatmul.mubr.msk.f32.gmra.mxu1 %vm2029_vm8, %v7723_v17  ;;  %6841 = vmatprep.mubr.msk.f32.mxu0 %vm2029_vm8, %v7727_v1 }
 0x724   : > { %6842 = vmatmul.mubr.msk.f32.gmra.mxu0 %vm2029_vm8, %v7723_v17 }
 0x7d8   : > { %v6809_v28 = vpop.f32.mrf.mxu0 }
 0x7d9   : > { %v2216_v29 = vmul.f32 2.0, %v6809_v28  ;;  %v2211_v30 = vpop.f32.mrf.mxu1 }
 0x7da   : > { %v2222_v31 = vrot.slane %v2211_v30, %v7593_v19  ;;  %v2108_v32 = vpop.f32.mrf.mxu0 }
 0x7db   : > { %v2215_v33 = vmul.f32 2.0, %v2108_v32  ;;  %v6823_v34 = vpop.f32.mrf.mxu1 }
 0x7dc   : > { %v6812_v35 = vpop.f32.mrf.mxu0  ;;  %v2224_v36 = vsub.f32 %v2222_v31, %v2216_v29 }
 0x7dd   : > { %v2223_v37 = vsub.f32 %v2222_v31, %v2215_v33  ;;  %v2218_v38 = vmul.f32 2.0, %v6812_v35 }
 0x7de   : > { %v2118_v39 = vpop.f32.mrf.mxu0  ;;  %v2408_v40 = vsel %vm1309_vm3, %v2224_v36, inf }
 0x7df   : > { %v2226_v42 = vsub.f32 %v2222_v31, %v2218_v38  ;;  %v2217_v41 = vmul.f32 2.0, %v2118_v39  ;;  %2409 = vmin.xlane.f32.xlu1 %v2408_v40  ;;  %v2405_v43 = vsel %vm1309_vm3, %v2223_v37, inf }
 0x7e0   : > { %2406 = vmin.xlane.f32.xlu0 %v2405_v43  ;;  %v6840_v45 = vpop.f32.mrf.mxu0 }
 0x7e1   : > { %v2225_v44 = vsub.f32 %v2222_v31, %v2217_v41  ;;  %v2414_v46 = vsel %vm1309_vm3, %v2226_v42, inf }
 0x7e2   : > { %v2384_v47 = vpop.f32.mrf.mxu0 }
 0x7e3   : > { %2415 = vmin.xlane.f32.xlu1 %v2414_v46  ;;  %v2411_v48 = vsel %vm1309_vm3, %v2225_v44, inf  ;;  %v7805_v52 = vpack.c.bf16 %v6840_v45, %v2384_v47 }
 0x7e4   : > { %v6843_v49 = vpop.f32.mrf.mxu0  ;;  %2412 = vmin.xlane.f32.xlu0 %v2411_v48 }
 0x7e6   : > { %v2394_v50 = vpop.f32.mrf.mxu0 }
 0x7e7   : > { %v7803_v51 = vpack.c.bf16 %v6843_v49, %v2394_v50 }
 0x7e9   : > { %6844 = vmatprep.subr.bf16.mxu1 %v7803_v51  ;;  %6852 = vmatprep.subr.bf16.mxu0 %v7803_v51 }
 0x7ea   : > { %6845 = vmatpush3.bf16.msra.mxu1 %v7803_v51  ;;  %6853 = vmatpush3.bf16.msra.mxu0 %v7803_v51 }
 0x7eb   : > { %6846 = vmatprep.subr.bf16.mxu1 %v7805_v52  ;;  %6854 = vmatprep.subr.bf16.mxu0 %v7805_v52 }
 0x7ee   : > { %6847 = vmatpush3.bf16.msra.mxu1 %v7805_v52  ;;  %6855 = vmatpush3.bf16.msra.mxu0 %v7805_v52 }
 0x7ef   : > { %6860 = vmatprep.subr.bf16.mxu1 %v7803_v51  ;;  %6868 = vmatprep.subr.bf16.mxu0 %v7803_v51 }
 0x868   : > { %v2410_v53 = vpop.xlane.xlu1 %2409 }
 0x869   : > { %vm2418_vm9 = vcmp.le.f32.partialorder %v2224_v36, %v2410_v53  ;;  %v2407_v54 = vpop.xlane.xlu0 %2406 }
 0x86a   : > { %v6200_v55 = vsel %vm2418_vm9, 1.0, %v7346_v5  ;;  %v2487_v56 = vsel %vm2418_vm9, inf, %v2224_v36  ;;  %vm2417_vm10 = vcmp.le.f32.partialorder %v2223_v37, %v2407_v54 }
 0x86b   : > { %v6199_v57 = vsel %vm2417_vm10, 1.0, %v7346_v5  ;;  %v2486_v58 = vsel %vm2417_vm10, inf, %v2223_v37  ;;  %v2493_v59 = vsel %vm1309_vm3, %v2487_v56, inf }
 0x86c   : > { %v2429_v60 = vpack.c.bf16 %v6200_v55, %v6199_v57  ;;  %2494 = vmin.xlane.f32.xlu1 %v2493_v59  ;;  %v2416_v61 = vpop.xlane.xlu1 %2415  ;;  %v2490_v62 = vsel %vm1309_vm3, %v2486_v58, inf }
 0x86d   : > { %vm2420_vm11 = vcmp.le.f32.partialorder %v2226_v42, %v2416_v61  ;;  %2491 = vmin.xlane.f32.xlu0 %v2490_v62  ;;  %v2413_v3 = vpop.xlane.xlu0 %2412 }
 0x86e   : > { %v6202_v4 = vsel %vm2420_vm11, 1.0, %v7346_v5  ;;  %v2489_v6 = vsel %vm2420_vm11, inf, %v2226_v42  ;;  %vm2419_vm12 = vcmp.le.f32.partialorder %v2225_v44, %v2413_v3  ;;  %6848 = vmatprep.mubr.msk.bf16.mxu1 %vm1309_vm3, %v2429_v60 }
 0x86f   : > { %v6201_v7 = vsel %vm2419_vm12, 1.0, %v7346_v5  ;;  %v2488_v8 = vsel %vm2419_vm12, inf, %v2225_v44  ;;  %v2499_v9 = vsel %vm1309_vm3, %v2489_v6, inf }
 0x870   : > { %v2430_v10 = vpack.c.bf16 %v6202_v4, %v6201_v7  ;;  %2500 = vmin.xlane.f32.xlu1 %v2499_v9  ;;  %v2496_v11 = vsel %vm1309_vm3, %v2488_v8, inf }
 0x871   : > { %2497 = vmin.xlane.f32.xlu0 %v2496_v11 }
 0x872   : > { %6849 = vmatmul.mubr.msk.bf16.vlgmr.msra.gmra.mxu1 %vm1309_vm3, %v2430_v10 }
 0x873   : > { %6861 = vmatpush3.bf16.msra.mxu1 %v7803_v51 }
 0x874   : > { %6862 = vmatprep.subr.bf16.mxu1 %v7805_v52 }
 0x877   : > { %6863 = vmatpush3.bf16.msra.mxu1 %v7805_v52 }
 0x878   : > { %6876 = vmatprep.subr.bf16.mxu1 %v7803_v51 }
 0x8f5   : > { %v2495_v12 = vpop.xlane.xlu1 %2494 }
 0x8f6   : > { %vm2503_vm13 = vcmp.le.f32.partialorder %v2487_v56, %v2495_v12  ;;  %v2492_v14 = vpop.xlane.xlu0 %2491 }
 0x8f7   : > { %v6206_v15 = vsel %vm2503_vm13, 1.0, %v7346_v5  ;;  %v2576_v0 = vsel %vm2503_vm13, inf, %v2487_v56  ;;  %vm2502_vm14 = vcmp.le.f32.partialorder %v2486_v58, %v2492_v14 }
 0x8f8   : > { %v6205_v2 = vsel %vm2502_vm14, 1.0, %v7346_v5  ;;  %v2575_v20 = vsel %vm2502_vm14, inf, %v2486_v58  ;;  %v2582_v21 = vsel %vm1309_vm3, %v2576_v0, inf }
 0x8f9   : > { %v2514_v22 = vpack.c.bf16 %v6206_v15, %v6205_v2  ;;  %2583 = vmin.xlane.f32.xlu1 %v2582_v21  ;;  %v2501_v23 = vpop.xlane.xlu1 %2500  ;;  %v2579_v24 = vsel %vm1309_vm3, %v2575_v20, inf }
 0x8fa   : > { %vm2505_vm15 = vcmp.le.f32.partialorder %v2489_v6, %v2501_v23  ;;  %2580 = vmin.xlane.f32.xlu0 %v2579_v24  ;;  %v2498_v25 = vpop.xlane.xlu0 %2497 }
 0x8fb   : > { %v6208_v26 = vsel %vm2505_vm15, 1.0, %v7346_v5  ;;  %v2578_v27 = vsel %vm2505_vm15, inf, %v2489_v6  ;;  %vm2504_vm0 = vcmp.le.f32.partialorder %v2488_v8, %v2498_v25  ;;  %6856 = vmatprep.mubr.msk.bf16.mxu0 %vm1309_vm3, %v2514_v22 }
 0x8fc   : > { %v6207_v28 = vsel %vm2504_vm0, 1.0, %v7346_v5  ;;  %v2577_v29 = vsel %vm2504_vm0, inf, %v2488_v8  ;;  %v2588_v30 = vsel %vm1309_vm3, %v2578_v27, inf }
 0x8fd   : > { %v2515_v31 = vpack.c.bf16 %v6208_v26, %v6207_v28  ;;  %2589 = vmin.xlane.f32.xlu1 %v2588_v30  ;;  %v2585_v32 = vsel %vm1309_vm3, %v2577_v29, inf }
 0x8fe   : > { %2586 = vmin.xlane.f32.xlu0 %v2585_v32 }
 0x8ff   : > { %6857 = vmatmul.mubr.msk.bf16.vlgmr.msra.gmra.mxu0 %vm1309_vm3, %v2515_v31 }
 0x900   : > { %6869 = vmatpush3.bf16.msra.mxu0 %v7803_v51 }
 0x901   : > { %6870 = vmatprep.subr.bf16.mxu0 %v7805_v52 }
 0x904   : > { %6871 = vmatpush3.bf16.msra.mxu0 %v7805_v52 }
 0x905   : > { %6884 = vmatprep.subr.bf16.mxu0 %v7803_v51 }
 0x982   : > { %v2584_v33 = vpop.xlane.xlu1 %2583 }
 0x983   : > { %vm2592_vm1 = vcmp.le.f32.partialorder %v2576_v0, %v2584_v33  ;;  %v2581_v34 = vpop.xlane.xlu0 %2580 }
 0x984   : > { %v6212_v35 = vsel %vm2592_vm1, 1.0, %v7346_v5  ;;  %v2665_v36 = vsel %vm2592_vm1, inf, %v2576_v0  ;;  %vm2591_vm4 = vcmp.le.f32.partialorder %v2575_v20, %v2581_v34 }
 0x985   : > { %v6211_v37 = vsel %vm2591_vm4, 1.0, %v7346_v5  ;;  %v2664_v38 = vsel %vm2591_vm4, inf, %v2575_v20  ;;  %v2671_v39 = vsel %vm1309_vm3, %v2665_v36, inf }
 0x986   : > { %v2603_v40 = vpack.c.bf16 %v6212_v35, %v6211_v37  ;;  %2672 = vmin.xlane.f32.xlu1 %v2671_v39  ;;  %v2590_v42 = vpop.xlane.xlu1 %2589  ;;  %v2668_v41 = vsel %vm1309_vm3, %v2664_v38, inf }
 0x987   : > { %vm2594_vm5 = vcmp.le.f32.partialorder %v2578_v27, %v2590_v42  ;;  %2669 = vmin.xlane.f32.xlu0 %v2668_v41  ;;  %v2587_v43 = vpop.xlane.xlu0 %2586 }
 0x988   : > { %v6214_v45 = vsel %vm2594_vm5, 1.0, %v7346_v5  ;;  %v2667_v44 = vsel %vm2594_vm5, inf, %v2578_v27  ;;  %vm2593_vm6 = vcmp.le.f32.partialorder %v2577_v29, %v2587_v43  ;;  %6864 = vmatprep.mubr.msk.bf16.mxu1 %vm1309_vm3, %v2603_v40 }
 0x989   : > { %v6213_v46 = vsel %vm2593_vm6, 1.0, %v7346_v5  ;;  %v2666_v47 = vsel %vm2593_vm6, inf, %v2577_v29  ;;  %v2677_v48 = vsel %vm1309_vm3, %v2667_v44, inf }
 0x98a   : > { %v2604_v49 = vpack.c.bf16 %v6214_v45, %v6213_v46  ;;  %2678 = vmin.xlane.f32.xlu1 %v2677_v48  ;;  %v2674_v50 = vsel %vm1309_vm3, %v2666_v47, inf }
 0x98b   : > { %2675 = vmin.xlane.f32.xlu0 %v2674_v50 }
 0x98c   : > { %6865 = vmatmul.mubr.msk.bf16.vlgmr.msra.gmra.mxu1 %vm1309_vm3, %v2604_v49 }
 0x98d   : > { %6877 = vmatpush3.bf16.msra.mxu1 %v7803_v51 }
 0x98e   : > { %6878 = vmatprep.subr.bf16.mxu1 %v7805_v52 }
 0x991   : > { %6879 = vmatpush3.bf16.msra.mxu1 %v7805_v52 }
 0x992   : > { %6892 = vmatprep.subr.bf16.mxu1 %v7803_v51 }
 0xa0f   : > { %v2673_v53 = vpop.xlane.xlu1 %2672 }
 0xa10   : > { %vm2681_vm7 = vcmp.le.f32.partialorder %v2665_v36, %v2673_v53  ;;  %v2670_v54 = vpop.xlane.xlu0 %2669 }
 0xa11   : > { %v6218_v55 = vsel %vm2681_vm7, 1.0, %v7346_v5  ;;  %v2754_v56 = vsel %vm2681_vm7, inf, %v2665_v36  ;;  %vm2680_vm9 = vcmp.le.f32.partialorder %v2664_v38, %v2670_v54 }
 0xa12   : > { %v6217_v57 = vsel %vm2680_vm9, 1.0, %v7346_v5  ;;  %v2753_v58 = vsel %vm2680_vm9, inf, %v2664_v38  ;;  %v2760_v59 = vsel %vm1309_vm3, %v2754_v56, inf }
 0xa13   : > { %v2692_v60 = vpack.c.bf16 %v6218_v55, %v6217_v57  ;;  %2761 = vmin.xlane.f32.xlu1 %v2760_v59  ;;  %v2679_v61 = vpop.xlane.xlu1 %2678  ;;  %v2757_v62 = vsel %vm1309_vm3, %v2753_v58, inf }
 0xa14   : > { %vm2683_vm10 = vcmp.le.f32.partialorder %v2667_v44, %v2679_v61  ;;  %2758 = vmin.xlane.f32.xlu0 %v2757_v62  ;;  %v2676_v3 = vpop.xlane.xlu0 %2675 }
 0xa15   : > { %v6220_v4 = vsel %vm2683_vm10, 1.0, %v7346_v5  ;;  %v2756_v6 = vsel %vm2683_vm10, inf, %v2667_v44  ;;  %vm2682_vm11 = vcmp.le.f32.partialorder %v2666_v47, %v2676_v3  ;;  %6872 = vmatprep.mubr.msk.bf16.mxu0 %vm1309_vm3, %v2692_v60 }
 0xa16   : > { %v6219_v7 = vsel %vm2682_vm11, 1.0, %v7346_v5  ;;  %v2755_v8 = vsel %vm2682_vm11, inf, %v2666_v47  ;;  %v2766_v9 = vsel %vm1309_vm3, %v2756_v6, inf }
 0xa17   : > { %v2693_v10 = vpack.c.bf16 %v6220_v4, %v6219_v7  ;;  %2767 = vmin.xlane.f32.xlu1 %v2766_v9  ;;  %v2763_v11 = vsel %vm1309_vm3, %v2755_v8, inf }
 0xa18   : > { %2764 = vmin.xlane.f32.xlu0 %v2763_v11 }
 0xa19   : > { %6873 = vmatmul.mubr.msk.bf16.vlgmr.msra.gmra.mxu0 %vm1309_vm3, %v2693_v10  ;;  %v2023_v10 = vld [vmem:[%s8565_s14 + $0x8] sm:$0xff] }
 0xa1a   : > { %6885 = vmatpush3.bf16.msra.mxu0 %v7803_v51 }
 0xa1b   : > { %6886 = vmatprep.subr.bf16.mxu0 %v7805_v52 }
 0xa1e   : > { %6887 = vmatpush3.bf16.msra.mxu0 %v7805_v52 }
 0xa1f   : > { %6900 = vmatprep.subr.bf16.mxu0 %v7803_v51 }
 0xa9c   : > { %v2762_v12 = vpop.xlane.xlu1 %2761 }
 0xa9d   : > { %vm2770_vm12 = vcmp.le.f32.partialorder %v2754_v56, %v2762_v12  ;;  %v2759_v14 = vpop.xlane.xlu0 %2758 }
 0xa9e   : > { %v6224_v15 = vsel %vm2770_vm12, 1.0, %v7346_v5  ;;  %v2843_v0 = vsel %vm2770_vm12, inf, %v2754_v56  ;;  %vm2769_vm13 = vcmp.le.f32.partialorder %v2753_v58, %v2759_v14 }
 0xa9f   : > { %v6223_v2 = vsel %vm2769_vm13, 1.0, %v7346_v5  ;;  %v2842_v20 = vsel %vm2769_vm13, inf, %v2753_v58  ;;  %v2849_v21 = vsel %vm1309_vm3, %v2843_v0, inf }
 0xaa0   : > { %v2781_v22 = vpack.c.bf16 %v6224_v15, %v6223_v2  ;;  %2850 = vmin.xlane.f32.xlu1 %v2849_v21  ;;  %v2768_v23 = vpop.xlane.xlu1 %2767  ;;  %v2846_v24 = vsel %vm1309_vm3, %v2842_v20, inf }
 0xaa1   : > { %vm2772_vm14 = vcmp.le.f32.partialorder %v2756_v6, %v2768_v23  ;;  %2847 = vmin.xlane.f32.xlu0 %v2846_v24  ;;  %v2765_v25 = vpop.xlane.xlu0 %2764  ;;  %v2022_v24 = vld [vmem:[%s8565_s14] sm:$0xff] }
 0xaa2   : > { %v6226_v26 = vsel %vm2772_vm14, 1.0, %v7346_v5  ;;  %v2845_v27 = vsel %vm2772_vm14, inf, %v2756_v6  ;;  %vm2771_vm15 = vcmp.le.f32.partialorder %v2755_v8, %v2765_v25  ;;  %6880 = vmatprep.mubr.msk.bf16.mxu1 %vm1309_vm3, %v2781_v22  ;;  %v3117_v25 = vld [vmem:[%s8566_s15] sm:$0xff] }
 0xaa3   : > { %v6225_v28 = vsel %vm2771_vm15, 1.0, %v7346_v5  ;;  %v2844_v29 = vsel %vm2771_vm15, inf, %v2755_v8  ;;  %v2855_v30 = vsel %vm1309_vm3, %v2845_v27, inf }
 0xaa4   : > { %v2782_v31 = vpack.c.bf16 %v6226_v26, %v6225_v28  ;;  %2856 = vmin.xlane.f32.xlu1 %v2855_v30  ;;  %v2852_v32 = vsel %vm1309_vm3, %v2844_v29, inf  ;;  %v6858_v30 = vpop.f32.mrf.mxu0 }
 0xaa5   : > { %2853 = vmin.xlane.f32.xlu0 %v2852_v32 }
 0xaa6   : > { %6881 = vmatmul.mubr.msk.bf16.vlgmr.msra.gmra.mxu1 %vm1309_vm3, %v2782_v31  ;;  %v2556_v32 = vpop.f32.mrf.mxu0 }
 0xaa7   : > { %6893 = vmatpush3.bf16.msra.mxu1 %v7803_v51 }
 0xaa8   : > { %6894 = vmatprep.subr.bf16.mxu1 %v7805_v52 }
 0xaab   : > { %6895 = vmatpush3.bf16.msra.mxu1 %v7805_v52 }
 0xb29   : > { %v2851_v33 = vpop.xlane.xlu1 %2850 }
 0xb2a   : > { %vm2859_vm0 = vcmp.le.f32.partialorder %v2843_v0, %v2851_v33  ;;  %v2848_v34 = vpop.xlane.xlu0 %2847 }
 0xb2b   : > { %v6230_v35 = vsel %vm2859_vm0, 1.0, %v7346_v5  ;;  %v2932_v36 = vsel %vm2859_vm0, inf, %v2843_v0  ;;  %vm2858_vm1 = vcmp.le.f32.partialorder %v2842_v20, %v2848_v34  ;;  %v6859_v34 = vpop.f32.mrf.mxu0 }
 0xb2c   : > { %v6229_v37 = vsel %vm2858_vm1, 1.0, %v7346_v5  ;;  %v2931_v38 = vsel %vm2858_vm1, inf, %v2842_v20  ;;  %v2938_v39 = vsel %vm1309_vm3, %v2932_v36, inf }
 0xb2d   : > { %v2870_v40 = vpack.c.bf16 %v6230_v35, %v6229_v37  ;;  %2939 = vmin.xlane.f32.xlu1 %v2938_v39  ;;  %v2857_v42 = vpop.xlane.xlu1 %2856  ;;  %v2935_v41 = vsel %vm1309_vm3, %v2931_v38, inf }
 0xb2e   : > { %vm2861_vm4 = vcmp.le.f32.partialorder %v2845_v27, %v2857_v42  ;;  %2936 = vmin.xlane.f32.xlu0 %v2935_v41  ;;  %v2854_v43 = vpop.xlane.xlu0 %2853 }
 0xb2f   : > { %v6232_v45 = vsel %vm2861_vm4, 1.0, %v7346_v5  ;;  %v2934_v44 = vsel %vm2861_vm4, inf, %v2845_v27  ;;  %vm2860_vm5 = vcmp.le.f32.partialorder %v2844_v29, %v2854_v43  ;;  %6888 = vmatprep.mubr.msk.bf16.mxu0 %vm1309_vm3, %v2870_v40 }
 0xb30   : > { %v6231_v46 = vsel %vm2860_vm5, 1.0, %v7346_v5  ;;  %v2933_v47 = vsel %vm2860_vm5, inf, %v2844_v29  ;;  %v2944_v48 = vsel %vm1309_vm3, %v2934_v44, inf }
 0xb31   : > { %v2871_v49 = vpack.c.bf16 %v6232_v45, %v6231_v46  ;;  %2945 = vmin.xlane.f32.xlu1 %v2944_v48  ;;  %v2941_v50 = vsel %vm1309_vm3, %v2933_v47, inf }
 0xb32   : > { %2942 = vmin.xlane.f32.xlu0 %v2941_v50 }
 0xb33   : > { %6889 = vmatmul.mubr.msk.bf16.vlgmr.msra.gmra.mxu0 %vm1309_vm3, %v2871_v49 }
 0xb34   : > { %6901 = vmatpush3.bf16.msra.mxu0 %v7803_v51 }
 0xb35   : > { %6902 = vmatprep.subr.bf16.mxu0 %v7805_v52 }
 0xb38   : > { %6903 = vmatpush3.bf16.msra.mxu0 %v7805_v52 }
 0xb39   : > { %6918 = vmatprep.subr.mxu0 %v2023_v10 }
 0xbb6   : > { %v2940_v53 = vpop.xlane.xlu1 %2939 }
 0xbb7   : > { %vm2948_vm6 = vcmp.le.f32.partialorder %v2932_v36, %v2940_v53  ;;  %v2937_v54 = vpop.xlane.xlu0 %2936 }
 0xbb8   : > { %v6236_v55 = vsel %vm2948_vm6, 1.0, %v7346_v5  ;;  %vm2947_vm7 = vcmp.le.f32.partialorder %v2931_v38, %v2937_v54  ;;  %v3021_v56 = vsel %vm2948_vm6, inf, %v2932_v36  ;;  %v2559_v36 = vpop.f32.mrf.mxu0 }
 0xbb9   : > { %v6235_v57 = vsel %vm2947_vm7, 1.0, %v7346_v5  ;;  %v3027_v58 = vsel %vm1309_vm3, %v3021_v56, inf  ;;  %v3020_v59 = vsel %vm2947_vm7, inf, %v2931_v38 }
 0xbba   : > { %v2959_v60 = vpack.c.bf16 %v6236_v55, %v6235_v57  ;;  %3028 = vmin.xlane.f32.xlu1 %v3027_v58  ;;  %v2946_v61 = vpop.xlane.xlu1 %2945  ;;  %v3024_v51 = vsel %vm1309_vm3, %v3020_v59, inf  ;;  %v6874_v38 = vpop.f32.mrf.mxu0 }
 0xbbb   : > { %vm2950_vm9 = vcmp.le.f32.partialorder %v2934_v44, %v2946_v61  ;;  %3025 = vmin.xlane.f32.xlu0 %v3024_v51  ;;  %v2943_v52 = vpop.xlane.xlu0 %2942 }
 0xbbc   : > { %v6238_v62 = vsel %vm2950_vm9, 1.0, %v7346_v5  ;;  %vm2949_vm10 = vcmp.le.f32.partialorder %v2933_v47, %v2943_v52  ;;  %6896 = vmatprep.mubr.msk.bf16.mxu1 %vm1309_vm3, %v2959_v60  ;;  %v3023_v3 = vsel %vm2950_vm9, inf, %v2934_v44  ;;  %v2734_v40 = vpop.f32.mrf.mxu0 }
 0xbbd   : > { %v6237_v4 = vsel %vm2949_vm10, 1.0, %v7346_v5  ;;  %v3033_v6 = vsel %vm1309_vm3, %v3023_v3, inf  ;;  %v3022_v7 = vsel %vm2949_vm10, inf, %v2933_v47 }
 0xbbe   : > { %v2960_v8 = vpack.c.bf16 %v6238_v62, %v6237_v4  ;;  %3034 = vmin.xlane.f32.xlu1 %v3033_v6  ;;  %v3030_v9 = vsel %vm1309_vm3, %v3022_v7, inf  ;;  %v6875_v41 = vpop.f32.mrf.mxu0 }
 0xbbf   : > { %3031 = vmin.xlane.f32.xlu0 %v3030_v9 }
 0xbc0   : > { %6897 = vmatmul.mubr.msk.bf16.vlgmr.msra.gmra.mxu1 %vm1309_vm3, %v2960_v8  ;;  %v2737_v45 = vpop.f32.mrf.mxu0 }
 0xbf3   : > { %v6890_v46 = vpop.f32.mrf.mxu0 }
 0xbf5   : > { %v2912_v48 = vpop.f32.mrf.mxu0 }
 0xbf7   : > { %v6891_v57 = vpop.f32.mrf.mxu0 }
 0xbf9   : > { %v2915_v6 = vpop.f32.mrf.mxu0 }
 0xc43   : > { %v3029_v11 = vpop.xlane.xlu1 %3028 }
 0xc44   : > { %vm3037_vm11 = vcmp.le.f32.partialorder %v3021_v56, %v3029_v11  ;;  %v3026_v12 = vpop.xlane.xlu0 %3025 }
 0xc45   : > { %v6242_v14 = vsel %vm3037_vm11, 1.0, %v7346_v5  ;;  %vm3036_vm12 = vcmp.le.f32.partialorder %v3020_v59, %v3026_v12 }
 0xc46   : > { %v6241_v15 = vsel %vm3036_vm12, 1.0, %v7346_v5 }
 0xc47   : > { %v3048_v0 = vpack.c.bf16 %v6242_v14, %v6241_v15  ;;  %v3035_v2 = vpop.xlane.xlu1 %3034  ;;  %v6190_v14 = vld [vmem:[%s8567_s9] ss:$0 sm:$0xff] }
 0xc48   : > { %vm3039_vm13 = vcmp.le.f32.partialorder %v3023_v3, %v3035_v2  ;;  %v3032_v20 = vpop.xlane.xlu0 %3031 }
 0xc49   : > { %v6244_v21 = vsel %vm3039_vm13, 1.0, %v7346_v5  ;;  %vm3038_vm14 = vcmp.le.f32.partialorder %v3022_v7, %v3032_v20  ;;  %6904 = vmatprep.mubr.msk.bf16.mxu0 %vm1309_vm3, %v3048_v0 }
 0xc4a   : > { %v6243_v22 = vsel %vm3038_vm14, 1.0, %v7346_v5 }
 0xc4b   : > { %v3049_v23 = vpack.c.bf16 %v6244_v21, %v6243_v22 }
 0xc4d   : > { %6905 = vmatmul.mubr.msk.bf16.vlgmr.msra.gmra.mxu0 %vm1309_vm3, %v3049_v23 }
 0xc4e   : > { %6922 = vmatprep.mubr.msk.f32.mxu0 %vm2029_vm8, %v7720_v13  ;;  %6919 = vmatpush3.msra.mxu0 %v2023_v10  ;;  %v3118_v13 = vld [vmem:[%s8566_s15 + $0x8] sm:$0xff] }
 0xc4f   : > { %6920 = vmatprep.subr.mxu0 %v2022_v24  ;;  %6908 = vmatprep.subr.mxu1 %v3118_v13 }
 0xc50   : > { %6921 = vmatpush3.msra.mxu0 %v2022_v24  ;;  %6909 = vmatpush3.msra.mxu1 %v3118_v13 }
 0xc51   : > { %6942 = vmatprep.subr.mxu0 %v7346_v5  ;;  %6910 = vmatprep.subr.mxu1 %v3117_v25 }
 0xc52   : > { %6911 = vmatpush3.msra.mxu1 %v3117_v25 }
 0xc55   : > { %6923 = vmatmul.mubr.msk.f32.vlgmr.msra.gmra.mxu0 %vm2029_vm8, %v7739_v63  ;;  %v7938_v63 = vpop.f32.mrf.mxu1 }
 0xc56   : > { %6925 = vmatprep.mubr.msk.f32.mxu0 %vm2029_vm8, %v7727_v1 }
 0xc57   : > { %v2299_v1 = vpop.f32.mrf.mxu1 }
 0xc58   : > { %v2300_v21 = vadd.f32 %v6190_v14, %v2299_v1 }
 0xc59   : > { %6926 = vmatmul.mubr.msk.f32.gmra.mxu0 %vm2029_vm8, %v7723_v17  ;;  %v6833_v26 = vpop.f32.mrf.mxu1 }
 0xc5a   : > { %6950 = vmatprep.mubr.msk.f32.mxu0 %vm7347_vm2, %v7346_v5 }
 0xc5b   : > { %v2309_v17 = vpop.f32.mrf.mxu1 }
 0xc5d   : > { %v6850_v27 = vpop.f32.mrf.mxu1 }
 0xc5e   : > { %v2573_v50 = vmax.f32 %v6850_v27, %v6858_v30  ;;  %v2310_v30 = vadd.f32 %v6190_v14, %v2309_v17 }
 0xc5f   : > { %v2471_v28 = vpop.f32.mrf.mxu1 }
 0xc60   : > { %v2571_v53 = vmax.f32 %v2471_v28, %v2556_v32  ;;  %v2315_v28 = vadd.f32 %v6833_v26, %v6190_v14 }
 0xc61   : > { %v6851_v29 = vpop.f32.mrf.mxu1 }
 0xc62   : > { %v2574_v54 = vmax.f32 %v6851_v29, %v6859_v34  ;;  %v2305_v34 = vadd.f32 %v7938_v63, %v6190_v14 }
 0xc63   : > { %v2474_v31 = vpop.f32.mrf.mxu1 }
 0xc64   : > { %v2572_v59 = vmax.f32 %v2474_v31, %v2559_v36 }
 0xc65   : > { %v6866_v33 = vpop.f32.mrf.mxu1 }
 0xc66   : > { %v2662_v55 = vmax.f32 %v2573_v50, %v6866_v33 }
 0xc67   : > { %v2645_v35 = vpop.f32.mrf.mxu1 }
 0xc68   : > { %v2660_v56 = vmax.f32 %v2571_v53, %v2645_v35  ;;  %v2751_v61 = vmax.f32 %v2662_v55, %v6874_v38 }
 0xc69   : > { %v6867_v37 = vpop.f32.mrf.mxu1 }
 0xc6a   : > { %v2663_v60 = vmax.f32 %v2574_v54, %v6867_v37  ;;  %v2749_v51 = vmax.f32 %v2660_v56, %v2734_v40 }
 0xc6b   : > { %v2648_v39 = vpop.f32.mrf.mxu1 }
 0xc6c   : > { %v2661_v52 = vmax.f32 %v2572_v59, %v2648_v39  ;;  %v2752_v62 = vmax.f32 %v2663_v60, %v6875_v41 }
 0xc6d   : > { %v6882_v42 = vpop.f32.mrf.mxu1 }
 0xc6e   : > { %v2840_v3 = vmax.f32 %v2751_v61, %v6882_v42  ;;  %v2750_v8 = vmax.f32 %v2661_v52, %v2737_v45  ;;  %v3302_v45 = vld [vmem:[%s8568_s30 + $0x8] sm:$0xff] }
 0xc6f   : > { %v2823_v43 = vpop.f32.mrf.mxu1 }
 0xc70   : > { %v2838_v4 = vmax.f32 %v2749_v51, %v2823_v43  ;;  %v2929_v10 = vmax.f32 %v2840_v3, %v6890_v46  ;;  %v3301_v46 = vld [vmem:[%s8568_s30] sm:$0xff] }
 0xc71   : > { %v6883_v44 = vpop.f32.mrf.mxu1 }
 0xc72   : > { %v2841_v9 = vmax.f32 %v2752_v62, %v6883_v44  ;;  %v2927_v11 = vmax.f32 %v2838_v4, %v2912_v48  ;;  %v3304_v44 = vld [vmem:[%s8569_s1 + $0x8] sm:$0xff] }
 0xc73   : > { %v2826_v47 = vpop.f32.mrf.mxu1 }
 0xc74   : > { %v2839_v15 = vmax.f32 %v2750_v8, %v2826_v47  ;;  %v2930_v0 = vmax.f32 %v2841_v9, %v6891_v57  ;;  %v3303_v47 = vld [vmem:[%s8569_s1] sm:$0xff]  ;;  %s8403_s1 = sand.u32 1, %s7336_s3  }
 0xc75   : > { %s806_s10 = scalar_lea.vmem [#allocation4], %s8403_s1 }
 0xc76   : > { %v2928_v24 = vmax.f32 %v2839_v15, %v2915_v6  ;;  %s5998_s9 = sshll.u32 %s806_s10, 4  ;;  %s5999_s9 = int_to_ptr.vmem [resolvable:$true] %s5998_s9 }
 0xc80   : > { %v6898_v49 = vpop.f32.mrf.mxu1 }
 0xc81   : > { %v3018_v2 = vmax.f32 %v2929_v10, %v6898_v49 }
 0xc82   : > { %v3001_v58 = vpop.f32.mrf.mxu1 }
 0xc83   : > { %v3016_v20 = vmax.f32 %v2927_v11, %v3001_v58 }
 0xc84   : > { %v6899_v7 = vpop.f32.mrf.mxu1 }
 0xc85   : > { %v3019_v13 = vmax.f32 %v2930_v0, %v6899_v7 }
 0xc86   : > { %v3004_v22 = vpop.f32.mrf.mxu1 }
 0xc87   : > { %v3017_v31 = vmax.f32 %v2928_v24, %v3004_v22 }
 0xd0d   : > { %v6906_v12 = vpop.f32.mrf.mxu0 }
 0xd0e   : > { %v3107_v25 = vmax.f32 %v3018_v2, %v6906_v12 }
 0xd0f   : > { %v3090_v23 = vpop.f32.mrf.mxu0 }
 0xd10   : > { %v3105_v27 = vmax.f32 %v3016_v20, %v3090_v23  ;;  %v3111_v36 = vadd.f32 %v3107_v25, %v2310_v30 }
 0xd11   : > { %v6907_v29 = vpop.f32.mrf.mxu0 }
 0xd12   : > { %v3109_v32 = vadd.f32 %v3105_v27, %v2300_v21  ;;  %v3108_v33 = vmax.f32 %v3019_v13, %v6907_v29  ;;  %v3115_v42 = vmax.f32 %v3111_v36, 0.0 }
 0xd13   : > { %v3093_v35 = vpop.f32.mrf.mxu0 }
 0xd14   : > { %v3113_v37 = vmax.f32 %v3109_v32, 0.0  ;;  %v3112_v38 = vadd.f32 %v3108_v33, %v2315_v28  ;;  %v3106_v39 = vmax.f32 %v3017_v31, %v3093_v35  ;;  %v3393_v63 = vmul.f32 %v3115_v42, %v3115_v42 }
 0xd15   : > { %v7989_v48 = vpop.f32.mrf.mxu0 }
 0xd16   : > { %v3116_v1 = vmax.f32 %v3112_v38, 0.0  ;;  %v3110_v40 = vadd.f32 %v3106_v39, %v2305_v34  ;;  %6912 = vmatprep.mubr.msk.f32.mxu1 %vm2029_vm8, %v3113_v37  ;;  %v3391_v43 = vmul.f32 %v3113_v37, %v3113_v37 }
 0xd17   : > { %v7991_v49 = vpop.f32.mrf.mxu0 }
 0xd18   : > { %v3114_v41 = vmax.f32 %v3110_v40, 0.0  ;;  %6928 = vmatprep.subr.msk.mxu1 %vm2029_vm8, %v3116_v1  ;;  %v3394_v26 = vmul.f32 %v3116_v1, %v3116_v1 }
 0xd19   : > { %v7995_v53 = vpop.f32.mrf.mxu0 }
 0xd1a   : > { %6913 = vmatmul.mubr.msk.f32.vlgmr.msra.gmra.mxu1 %vm2029_vm8, %v3114_v41  ;;  %6943 = vmatpush3.xpose.msk.msra.mxu0 %vm2029_vm8, %v3394_v26  ;;  %v3392_v17 = vmul.f32 %v3114_v41, %v3114_v41 }
 0xd1b   : > { %6929 = vmatpush3.xpose.msk.msra.mxu1 %vm2029_vm8, %v3116_v1  ;;  %6915 = vmatprep.mubr.msk.f32.mxu1 %vm2029_vm8, %v3115_v42  ;;  %v3292_v56 = vpop.f32.mrf.mxu0 }
 0xd1c   : > { %6930 = vmatprep.subr.msk.mxu1 %vm2029_vm8, %v3115_v42  ;;  %6944 = vmatprep.subr.mxu0 %v7346_v5 }
 0xd1e   : > { %6916 = vmatmul.mubr.msk.f32.gmra.mxu1 %vm2029_vm8, %v3116_v1  ;;  %6945 = vmatpush3.xpose.msk.msra.mxu0 %vm2029_vm8, %v3393_v63 }
 0xd1f   : > { %6931 = vmatpush3.xpose.msk.msra.mxu1 %vm2029_vm8, %v3115_v42  ;;  %6936 = vmatprep.mubr.msk.f32.mxu1 %vm2029_vm8, %v3113_v37 }
 0xd20   : > { %6932 = vmatprep.subr.msk.mxu1 %vm2029_vm8, %v3114_v41  ;;  %6946 = vmatprep.subr.mxu0 %v7346_v5 }
 0xd22   : > { %6947 = vmatpush3.xpose.msk.msra.mxu0 %vm2029_vm8, %v3392_v17 }
 0xd23   : > { %6933 = vmatpush3.xpose.msk.msra.mxu1 %vm2029_vm8, %v3114_v41  ;;  %6948 = vmatprep.subr.mxu0 %v7346_v5 }
 0xd24   : > { %6934 = vmatprep.subr.msk.mxu1 %vm2029_vm8, %v3113_v37 }
 0xd26   : > { %6949 = vmatpush3.xpose.msk.msra.mxu0 %vm2029_vm8, %v3391_v43 }
 0xd27   : > { %6935 = vmatpush3.xpose.msk.msra.mxu1 %vm2029_vm8, %v3113_v37  ;;  %6953 = vmatprep.subr.mxu0 %v3302_v45 }
 0xd28   : > { %6963 = vmatprep.subr.mxu1 %v3304_v44 }
 0xd29   : > { %6951 = vmatmul.mubr.msk.f32.vlgmr.msra.gmra.mxu0 %vm2029_vm8, %v7348_v16 }
 0xd2a   : > { %6937 = vmatmul.mubr.msk.f32.vlgmr.msra.gmra.mxu1 %vm2029_vm8, %v3114_v41  ;;  %6954 = vmatpush3.msra.mxu0 %v3302_v45 }
 0xd2b   : > { %6939 = vmatprep.mubr.msk.f32.mxu1 %vm2029_vm8, %v3115_v42  ;;  %6957 = vmatprep.mubr.msk.f32.mxu0 %vm2029_vm8, %v3113_v37 }
 0xd2c   : > { %6955 = vmatprep.subr.mxu0 %v3301_v46  ;;  %6964 = vmatpush3.msra.mxu1 %v3304_v44 }
 0xd2d   : > { %6956 = vmatpush3.msra.mxu0 %v3301_v46  ;;  %6965 = vmatprep.subr.mxu1 %v3303_v47 }
 0xd2e   : > { %6940 = vmatmul.mubr.msk.f32.gmra.mxu1 %vm2029_vm8, %v3116_v1  ;;  %6958 = vmatmul.mubr.msk.f32.vlgmr.msra.gmra.mxu0 %vm2029_vm8, %v3114_v41 }
 0xd2f   : > { %6960 = vmatprep.mubr.msk.f32.mxu0 %vm2029_vm8, %v3115_v42  ;;  %6967 = vmatprep.mubr.msk.f32.mxu1 %vm2029_vm8, %v3113_v37 }
 0xd30   : > { %6966 = vmatpush3.msra.mxu1 %v3303_v47 }
 0xd32   : > { %6961 = vmatmul.mubr.msk.f32.gmra.mxu0 %vm2029_vm8, %v3116_v1  ;;  %6968 = vmatmul.mubr.msk.f32.vlgmr.msra.gmra.mxu1 %vm2029_vm8, %v3114_v41 }
 0xd33   : > { %6970 = vmatprep.mubr.msk.f32.mxu1 %vm2029_vm8, %v3115_v42 }
 0xd36   : > { %6971 = vmatmul.mubr.msk.f32.gmra.mxu1 %vm2029_vm8, %v3116_v1 }
 0xdda   : > { %v7993_v50 = vpop.f32.mrf.mxu1 }
 0xddc   : > { %v7997_v54 = vpop.f32.mrf.mxu1 }
 0xdde   : > { %v7999_v55 = vpop.f32.mrf.mxu1 }
 0xde0   : > { %v3207_v57 = vpop.f32.mrf.mxu1 }
 0xde1   : > { %v8001_v58 = vadd.f32 %v3292_v56, %v3207_v57 }
 0xde9   : > { %v3473_v59 = vpop.f32.mrf.mxu0 }
 0xdea   : > { %v6938_v60 = vpop.f32.mrf.mxu1  ;;  %v3484_v61 = vrot.slane %v3473_v59, %v7593_v19 }
 0xdeb   : > { %v3478_v51 = vmul.f32 2.0, %v6938_v60  ;;  %v6952_v52 = vpop.f32.mrf.mxu0 }
 0xdec   : > { %v3372_v62 = vpop.f32.mrf.mxu1 }
 0xded   : > { %v3477_v3 = vmul.f32 2.0, %v3372_v62  ;;  %v3486_v4 = vsub.f32 %v3484_v61, %v3478_v51 }
 0xdee   : > { %v6941_v6 = vpop.f32.mrf.mxu1 }
 0xdef   : > { %v3485_v7 = vsub.f32 %v3484_v61, %v3477_v3  ;;  %v3480_v8 = vmul.f32 2.0, %v6941_v6  ;;  %v3670_v9 = vsel %vm1309_vm3, %v3486_v4, inf }
 0xdf0   : > { %3671 = vmin.xlane.f32.xlu1 %v3670_v9  ;;  %v3382_v10 = vpop.f32.mrf.mxu1 }
 0xdf1   : > { %v3488_v11 = vsub.f32 %v3484_v61, %v3480_v8  ;;  %v3479_v12 = vmul.f32 2.0, %v3382_v10  ;;  %v3667_v14 = vsel %vm1309_vm3, %v3485_v7, inf }
 0xdf2   : > { %3668 = vmin.xlane.f32.xlu0 %v3667_v14  ;;  %v6969_v15 = vpop.f32.mrf.mxu1 }
 0xdf3   : > { %v3487_v0 = vsub.f32 %v3484_v61, %v3479_v12  ;;  %v3676_v2 = vsel %vm1309_vm3, %v3488_v11, inf }
 0xdf4   : > { %3677 = vmin.xlane.f32.xlu1 %v3676_v2  ;;  %v3646_v20 = vpop.f32.mrf.mxu1 }
 0xdf5   : > { %v3673_v21 = vsel %vm1309_vm3, %v3487_v0, inf  ;;  %v8010_v13 = vpack.c.bf16 %v6969_v15, %v3646_v20 }
 0xdf6   : > { %v6972_v22 = vpop.f32.mrf.mxu1  ;;  %3674 = vmin.xlane.f32.xlu0 %v3673_v21 }
 0xdf8   : > { %v3656_v23 = vpop.f32.mrf.mxu1 }
 0xdf9   : > { %v8008_v24 = vpack.c.bf16 %v6972_v22, %v3656_v23 }
 0xdfb   : > { %6973 = vmatprep.subr.bf16.mxu0 %v8008_v24  ;;  %6981 = vmatprep.subr.bf16.mxu1 %v8008_v24 }
 0xdfc   : > { %6974 = vmatpush3.bf16.msra.mxu0 %v8008_v24  ;;  %6982 = vmatpush3.bf16.msra.mxu1 %v8008_v24 }
 0xdfd   : > { %6975 = vmatprep.subr.bf16.mxu0 %v8010_v13  ;;  %6983 = vmatprep.subr.bf16.mxu1 %v8010_v13 }
 0xe00   : > { %6976 = vmatpush3.bf16.msra.mxu0 %v8010_v13  ;;  %6984 = vmatpush3.bf16.msra.mxu1 %v8010_v13 }
 0xe01   : > { %6989 = vmatprep.subr.bf16.mxu0 %v8008_v24  ;;  %6997 = vmatprep.subr.bf16.mxu1 %v8008_v24 }
 0xe79   : > { %v3672_v25 = vpop.xlane.xlu1 %3671 }
 0xe7a   : > { %vm3680_vm15 = vcmp.le.f32.partialorder %v3486_v4, %v3672_v25 }
 0xe7b   : > { %v3749_v27 = vsel %vm3680_vm15, inf, %v3486_v4  ;;  %v3669_v28 = vpop.xlane.xlu0 %3668  ;;  %v6278_v30 = vsel %vm3680_vm15, 1.0, %v7346_v5 }
 0xe7c   : > { %vm3679_vm0 = vcmp.le.f32.partialorder %v3485_v7, %v3669_v28  ;;  %v3755_v29 = vsel %vm1309_vm3, %v3749_v27, inf }
 0xe7d   : > { %v6277_v31 = vsel %vm3679_vm0, 1.0, %v7346_v5  ;;  %v3748_v32 = vsel %vm3679_vm0, inf, %v3485_v7  ;;  %3756 = vmin.xlane.f32.xlu1 %v3755_v29  ;;  %v3678_v33 = vpop.xlane.xlu1 %3677 }
 0xe7e   : > { %v3691_v34 = vpack.c.bf16 %v6278_v30, %v6277_v31  ;;  %vm3682_vm1 = vcmp.le.f32.partialorder %v3488_v11, %v3678_v33  ;;  %v3752_v35 = vsel %vm1309_vm3, %v3748_v32, inf }
 0xe7f   : > { %v3751_v36 = vsel %vm3682_vm1, inf, %v3488_v11  ;;  %3753 = vmin.xlane.f32.xlu0 %v3752_v35  ;;  %v3675_v37 = vpop.xlane.xlu0 %3674  ;;  %v6280_v39 = vsel %vm3682_vm1, 1.0, %v7346_v5 }
 0xe80   : > { %vm3681_vm4 = vcmp.le.f32.partialorder %v3487_v0, %v3675_v37  ;;  %6977 = vmatprep.mubr.msk.bf16.mxu0 %vm1309_vm3, %v3691_v34  ;;  %v3761_v38 = vsel %vm1309_vm3, %v3751_v36, inf }
 0xe81   : > { %v6279_v1 = vsel %vm3681_vm4, 1.0, %v7346_v5  ;;  %v3750_v40 = vsel %vm3681_vm4, inf, %v3487_v0  ;;  %3762 = vmin.xlane.f32.xlu1 %v3761_v38 }
 0xe82   : > { %v3692_v42 = vpack.c.bf16 %v6280_v39, %v6279_v1  ;;  %v3758_v41 = vsel %vm1309_vm3, %v3750_v40, inf }
 0xe83   : > { %3759 = vmin.xlane.f32.xlu0 %v3758_v41 }
 0xe84   : > { %6978 = vmatmul.mubr.msk.bf16.vlgmr.msra.gmra.mxu0 %vm1309_vm3, %v3692_v42 }
 0xe85   : > { %6990 = vmatpush3.bf16.msra.mxu0 %v8008_v24 }
 0xe86   : > { %6991 = vmatprep.subr.bf16.mxu0 %v8010_v13 }
 0xe89   : > { %6992 = vmatpush3.bf16.msra.mxu0 %v8010_v13 }
 0xe8a   : > { %7005 = vmatprep.subr.bf16.mxu0 %v8008_v24 }
 0xf06   : > { %v3757_v26 = vpop.xlane.xlu1 %3756 }
 0xf07   : > { %vm3765_vm5 = vcmp.le.f32.partialorder %v3749_v27, %v3757_v26 }
 0xf08   : > { %v3838_v63 = vsel %vm3765_vm5, inf, %v3749_v27  ;;  %v3754_v17 = vpop.xlane.xlu0 %3753  ;;  %v6284_v45 = vsel %vm3765_vm5, 1.0, %v7346_v5 }
 0xf09   : > { %vm3764_vm6 = vcmp.le.f32.partialorder %v3748_v32, %v3754_v17  ;;  %v3844_v43 = vsel %vm1309_vm3, %v3838_v63, inf }
 0xf0a   : > { %v6283_v44 = vsel %vm3764_vm6, 1.0, %v7346_v5  ;;  %v3837_v46 = vsel %vm3764_vm6, inf, %v3748_v32  ;;  %3845 = vmin.xlane.f32.xlu1 %v3844_v43  ;;  %v3763_v47 = vpop.xlane.xlu1 %3762 }
 0xf0b   : > { %v3776_v56 = vpack.c.bf16 %v6284_v45, %v6283_v44  ;;  %vm3767_vm7 = vcmp.le.f32.partialorder %v3751_v36, %v3763_v47  ;;  %v3841_v57 = vsel %vm1309_vm3, %v3837_v46, inf }
 0xf0c   : > { %v3840_v59 = vsel %vm3767_vm7, inf, %v3751_v36  ;;  %3842 = vmin.xlane.f32.xlu0 %v3841_v57  ;;  %v3760_v60 = vpop.xlane.xlu0 %3759  ;;  %v6286_v51 = vsel %vm3767_vm7, 1.0, %v7346_v5 }
 0xf0d   : > { %vm3766_vm9 = vcmp.le.f32.partialorder %v3750_v40, %v3760_v60  ;;  %6985 = vmatprep.mubr.msk.bf16.mxu1 %vm1309_vm3, %v3776_v56  ;;  %v3850_v61 = vsel %vm1309_vm3, %v3840_v59, inf }
 0xf0e   : > { %v6285_v52 = vsel %vm3766_vm9, 1.0, %v7346_v5  ;;  %v3839_v62 = vsel %vm3766_vm9, inf, %v3750_v40  ;;  %3851 = vmin.xlane.f32.xlu1 %v3850_v61 }
 0xf0f   : > { %v3777_v3 = vpack.c.bf16 %v6286_v51, %v6285_v52  ;;  %v3847_v4 = vsel %vm1309_vm3, %v3839_v62, inf }
 0xf10   : > { %3848 = vmin.xlane.f32.xlu0 %v3847_v4 }
 0xf11   : > { %6986 = vmatmul.mubr.msk.bf16.vlgmr.msra.gmra.mxu1 %vm1309_vm3, %v3777_v3 }
 0xf12   : > { %6998 = vmatpush3.bf16.msra.mxu1 %v8008_v24 }
 0xf13   : > { %6999 = vmatprep.subr.bf16.mxu1 %v8010_v13 }
 0xf16   : > { %7000 = vmatpush3.bf16.msra.mxu1 %v8010_v13 }
 0xf17   : > { %7013 = vmatprep.subr.bf16.mxu1 %v8008_v24 }
 0xf93   : > { %v3846_v6 = vpop.xlane.xlu1 %3845 }
 0xf94   : > { %vm3854_vm10 = vcmp.le.f32.partialorder %v3838_v63, %v3846_v6 }
 0xf95   : > { %v3927_v7 = vsel %vm3854_vm10, inf, %v3838_v63  ;;  %v3843_v8 = vpop.xlane.xlu0 %3842  ;;  %v6290_v10 = vsel %vm3854_vm10, 1.0, %v7346_v5 }
 0xf96   : > { %vm3853_vm11 = vcmp.le.f32.partialorder %v3837_v46, %v3843_v8  ;;  %v3933_v9 = vsel %vm1309_vm3, %v3927_v7, inf }
 0xf97   : > { %v6289_v11 = vsel %vm3853_vm11, 1.0, %v7346_v5  ;;  %v3926_v12 = vsel %vm3853_vm11, inf, %v3837_v46  ;;  %3934 = vmin.xlane.f32.xlu1 %v3933_v9  ;;  %v3852_v14 = vpop.xlane.xlu1 %3851 }
 0xf98   : > { %v3865_v15 = vpack.c.bf16 %v6290_v10, %v6289_v11  ;;  %vm3856_vm12 = vcmp.le.f32.partialorder %v3840_v59, %v3852_v14  ;;  %v3930_v0 = vsel %vm1309_vm3, %v3926_v12, inf }
 0xf99   : > { %v3929_v2 = vsel %vm3856_vm12, inf, %v3840_v59  ;;  %3931 = vmin.xlane.f32.xlu0 %v3930_v0  ;;  %v3849_v20 = vpop.xlane.xlu0 %3848  ;;  %v6292_v22 = vsel %vm3856_vm12, 1.0, %v7346_v5 }
 0xf9a   : > { %vm3855_vm13 = vcmp.le.f32.partialorder %v3839_v62, %v3849_v20  ;;  %6993 = vmatprep.mubr.msk.bf16.mxu0 %vm1309_vm3, %v3865_v15  ;;  %v3939_v21 = vsel %vm1309_vm3, %v3929_v2, inf }
 0xf9b   : > { %v6291_v23 = vsel %vm3855_vm13, 1.0, %v7346_v5  ;;  %v3928_v25 = vsel %vm3855_vm13, inf, %v3839_v62  ;;  %3940 = vmin.xlane.f32.xlu1 %v3939_v21 }
 0xf9c   : > { %v3866_v27 = vpack.c.bf16 %v6292_v22, %v6291_v23  ;;  %v3936_v28 = vsel %vm1309_vm3, %v3928_v25, inf }
 0xf9d   : > { %3937 = vmin.xlane.f32.xlu0 %v3936_v28 }
 0xf9e   : > { %6994 = vmatmul.mubr.msk.bf16.vlgmr.msra.gmra.mxu0 %vm1309_vm3, %v3866_v27 }
 0xf9f   : > { %7006 = vmatpush3.bf16.msra.mxu0 %v8008_v24 }
 0xfa0   : > { %7007 = vmatprep.subr.bf16.mxu0 %v8010_v13 }
 0xfa3   : > { %7008 = vmatpush3.bf16.msra.mxu0 %v8010_v13 }
 0xfa4   : > { %7021 = vmatprep.subr.bf16.mxu0 %v8008_v24 }
0x1020   : > { %v3935_v29 = vpop.xlane.xlu1 %3934 }
0x1021   : > { %vm3943_vm14 = vcmp.le.f32.partialorder %v3927_v7, %v3935_v29 }
0x1022   : > { %v4016_v30 = vsel %vm3943_vm14, inf, %v3927_v7  ;;  %v3932_v31 = vpop.xlane.xlu0 %3931  ;;  %v6296_v33 = vsel %vm3943_vm14, 1.0, %v7346_v5 }
0x1023   : > { %vm3942_vm15 = vcmp.le.f32.partialorder %v3926_v12, %v3932_v31  ;;  %v4022_v32 = vsel %vm1309_vm3, %v4016_v30, inf }
0x1024   : > { %v6295_v34 = vsel %vm3942_vm15, 1.0, %v7346_v5  ;;  %v4015_v35 = vsel %vm3942_vm15, inf, %v3926_v12  ;;  %4023 = vmin.xlane.f32.xlu1 %v4022_v32  ;;  %v3941_v36 = vpop.xlane.xlu1 %3940 }
0x1025   : > { %v3954_v37 = vpack.c.bf16 %v6296_v33, %v6295_v34  ;;  %vm3945_vm0 = vcmp.le.f32.partialorder %v3929_v2, %v3941_v36  ;;  %v4019_v38 = vsel %vm1309_vm3, %v4015_v35, inf }
0x1026   : > { %v4018_v39 = vsel %vm3945_vm0, inf, %v3929_v2  ;;  %4020 = vmin.xlane.f32.xlu0 %v4019_v38  ;;  %v3938_v1 = vpop.xlane.xlu0 %3937  ;;  %v6298_v42 = vsel %vm3945_vm0, 1.0, %v7346_v5 }
0x1027   : > { %vm3944_vm1 = vcmp.le.f32.partialorder %v3928_v25, %v3938_v1  ;;  %7001 = vmatprep.mubr.msk.bf16.mxu1 %vm1309_vm3, %v3954_v37  ;;  %v4028_v40 = vsel %vm1309_vm3, %v4018_v39, inf }
0x1028   : > { %v6297_v41 = vsel %vm3944_vm1, 1.0, %v7346_v5  ;;  %v4017_v26 = vsel %vm3944_vm1, inf, %v3928_v25  ;;  %4029 = vmin.xlane.f32.xlu1 %v4028_v40 }
0x1029   : > { %v3955_v63 = vpack.c.bf16 %v6298_v42, %v6297_v41  ;;  %v4025_v17 = vsel %vm1309_vm3, %v4017_v26, inf }
0x102a   : > { %4026 = vmin.xlane.f32.xlu0 %v4025_v17 }
0x102b   : > { %7002 = vmatmul.mubr.msk.bf16.vlgmr.msra.gmra.mxu1 %vm1309_vm3, %v3955_v63 }
0x102c   : > { %7014 = vmatpush3.bf16.msra.mxu1 %v8008_v24 }
0x102d   : > { %7015 = vmatprep.subr.bf16.mxu1 %v8010_v13 }
0x1030   : > { %7016 = vmatpush3.bf16.msra.mxu1 %v8010_v13 }
0x1031   : > { %7029 = vmatprep.subr.bf16.mxu1 %v8008_v24 }
0x10ad   : > { %v4024_v43 = vpop.xlane.xlu1 %4023 }
0x10ae   : > { %vm4032_vm4 = vcmp.le.f32.partialorder %v4016_v30, %v4024_v43 }
0x10af   : > { %v4105_v45 = vsel %vm4032_vm4, inf, %v4016_v30  ;;  %v4021_v44 = vpop.xlane.xlu0 %4020  ;;  %v6302_v47 = vsel %vm4032_vm4, 1.0, %v7346_v5 }
0x10b0   : > { %vm4031_vm5 = vcmp.le.f32.partialorder %v4015_v35, %v4021_v44  ;;  %v4111_v46 = vsel %vm1309_vm3, %v4105_v45, inf }
0x10b1   : > { %v6301_v56 = vsel %vm4031_vm5, 1.0, %v7346_v5  ;;  %v4104_v57 = vsel %vm4031_vm5, inf, %v4015_v35  ;;  %4112 = vmin.xlane.f32.xlu1 %v4111_v46  ;;  %v4030_v59 = vpop.xlane.xlu1 %4029 }
0x10b2   : > { %v4043_v60 = vpack.c.bf16 %v6302_v47, %v6301_v56  ;;  %vm4034_vm6 = vcmp.le.f32.partialorder %v4018_v39, %v4030_v59  ;;  %v4108_v61 = vsel %vm1309_vm3, %v4104_v57, inf }
0x10b3   : > { %v4107_v51 = vsel %vm4034_vm6, inf, %v4018_v39  ;;  %4109 = vmin.xlane.f32.xlu0 %v4108_v61  ;;  %v4027_v52 = vpop.xlane.xlu0 %4026  ;;  %v6304_v3 = vsel %vm4034_vm6, 1.0, %v7346_v5 }
0x10b4   : > { %vm4033_vm7 = vcmp.le.f32.partialorder %v4017_v26, %v4027_v52  ;;  %7009 = vmatprep.mubr.msk.bf16.mxu0 %vm1309_vm3, %v4043_v60  ;;  %v4117_v62 = vsel %vm1309_vm3, %v4107_v51, inf  ;;  %v4380_v52 = vld [vmem:[%s8511_s16 + $0x8] sm:$0xff] }
0x10b5   : > { %v6303_v4 = vsel %vm4033_vm7, 1.0, %v7346_v5  ;;  %v4106_v6 = vsel %vm4033_vm7, inf, %v4017_v26  ;;  %4118 = vmin.xlane.f32.xlu1 %v4117_v62  ;;  %v4379_v62 = vld [vmem:[%s8511_s16] sm:$0xff] }
0x10b6   : > { %v4044_v7 = vpack.c.bf16 %v6304_v3, %v6303_v4  ;;  %v4114_v8 = vsel %vm1309_vm3, %v4106_v6, inf  ;;  %v8127_v3 = vpop.f32.mrf.mxu0 }
0x10b7   : > { %4115 = vmin.xlane.f32.xlu0 %v4114_v8 }
0x10b8   : > { %7010 = vmatmul.mubr.msk.bf16.vlgmr.msra.gmra.mxu0 %vm1309_vm3, %v4044_v7  ;;  %v3561_v4 = vpop.f32.mrf.mxu0 }
0x10b9   : > { %7022 = vmatpush3.bf16.msra.mxu0 %v8008_v24 }
0x10ba   : > { %7023 = vmatprep.subr.bf16.mxu0 %v8010_v13 }
0x10bd   : > { %7024 = vmatpush3.bf16.msra.mxu0 %v8010_v13 }
0x10be   : > { %7037 = vmatprep.subr.mxu0 %v4380_v52 }
0x113a   : > { %v4113_v9 = vpop.xlane.xlu1 %4112 }
0x113b   : > { %vm4121_vm9 = vcmp.le.f32.partialorder %v4105_v45, %v4113_v9 }
0x113c   : > { %v4194_v10 = vsel %vm4121_vm9, inf, %v4105_v45  ;;  %v4110_v11 = vpop.xlane.xlu0 %4109  ;;  %v6308_v14 = vsel %vm4121_vm9, 1.0, %v7346_v5 }
0x113d   : > { %vm4120_vm10 = vcmp.le.f32.partialorder %v4104_v57, %v4110_v11  ;;  %v4200_v12 = vsel %vm1309_vm3, %v4194_v10, inf  ;;  %v6987_v11 = vpop.f32.mrf.mxu1 }
0x113e   : > { %v6307_v15 = vsel %vm4120_vm10, 1.0, %v7346_v5  ;;  %v4193_v0 = vsel %vm4120_vm10, inf, %v4104_v57  ;;  %4201 = vmin.xlane.f32.xlu1 %v4200_v12  ;;  %v4119_v2 = vpop.xlane.xlu1 %4118 }
0x113f   : > { %v4132_v20 = vpack.c.bf16 %v6308_v14, %v6307_v15  ;;  %vm4123_vm11 = vcmp.le.f32.partialorder %v4107_v51, %v4119_v2  ;;  %v4197_v21 = vsel %vm1309_vm3, %v4193_v0, inf  ;;  %v3818_v14 = vpop.f32.mrf.mxu1 }
0x1140   : > { %v4196_v22 = vsel %vm4123_vm11, inf, %v4107_v51  ;;  %4198 = vmin.xlane.f32.xlu0 %v4197_v21  ;;  %v4116_v23 = vpop.xlane.xlu0 %4115  ;;  %v6310_v27 = vsel %vm4123_vm11, 1.0, %v7346_v5 }
0x1141   : > { %vm4122_vm12 = vcmp.le.f32.partialorder %v4106_v6, %v4116_v23  ;;  %7017 = vmatprep.mubr.msk.bf16.mxu1 %vm1309_vm3, %v4132_v20  ;;  %v4206_v25 = vsel %vm1309_vm3, %v4196_v22, inf }
0x1142   : > { %v6309_v28 = vsel %vm4122_vm12, 1.0, %v7346_v5  ;;  %v4195_v29 = vsel %vm4122_vm12, inf, %v4106_v6  ;;  %4207 = vmin.xlane.f32.xlu1 %v4206_v25  ;;  %v6962_v6 = vpop.f32.mrf.mxu0 }
0x1143   : > { %v4133_v30 = vpack.c.bf16 %v6310_v27, %v6309_v28  ;;  %v4203_v31 = vsel %vm1309_vm3, %v4195_v29, inf }
0x1144   : > { %4204 = vmin.xlane.f32.xlu0 %v4203_v31  ;;  %v3571_v7 = vpop.f32.mrf.mxu0 }
0x1145   : > { %7018 = vmatmul.mubr.msk.bf16.vlgmr.msra.gmra.mxu1 %vm1309_vm3, %v4133_v30 }
0x1146   : > { %7030 = vmatpush3.bf16.msra.mxu1 %v8008_v24  ;;  %v6979_v8 = vpop.f32.mrf.mxu0 }
0x1147   : > { %7031 = vmatprep.subr.bf16.mxu1 %v8010_v13 }
0x1148   : > { %v3733_v9 = vpop.f32.mrf.mxu0 }
0x114a   : > { %7032 = vmatpush3.bf16.msra.mxu1 %v8010_v13 }
0x11c7   : > { %v4202_v32 = vpop.xlane.xlu1 %4201 }
0x11c8   : > { %vm4210_vm13 = vcmp.le.f32.partialorder %v4194_v10, %v4202_v32 }
0x11c9   : > { %v4199_v33 = vpop.xlane.xlu0 %4198  ;;  %v4283_v34 = vsel %vm4210_vm13, inf, %v4194_v10  ;;  %v6314_v36 = vsel %vm4210_vm13, 1.0, %v7346_v5  ;;  %v6980_v10 = vpop.f32.mrf.mxu0 }
0x11ca   : > { %vm4209_vm14 = vcmp.le.f32.partialorder %v4193_v0, %v4199_v33  ;;  %v4289_v35 = vsel %vm1309_vm3, %v4283_v34, inf }
0x11cb   : > { %v6313_v37 = vsel %vm4209_vm14, 1.0, %v7346_v5  ;;  %4290 = vmin.xlane.f32.xlu1 %v4289_v35  ;;  %v4208_v38 = vpop.xlane.xlu1 %4207  ;;  %v4282_v39 = vsel %vm4209_vm14, inf, %v4193_v0  ;;  %v3736_v12 = vpop.f32.mrf.mxu0 }
0x11cc   : > { %v4221_v1 = vpack.c.bf16 %v6314_v36, %v6313_v37  ;;  %vm4212_vm15 = vcmp.le.f32.partialorder %v4196_v22, %v4208_v38  ;;  %v4286_v24 = vsel %vm1309_vm3, %v4282_v39, inf  ;;  %v6988_v0 = vpop.f32.mrf.mxu1  ;;  %v3835_v36 = vmax.f32 %v6979_v8, %v6987_v11 }
0x11cd   : > { %4287 = vmin.xlane.f32.xlu0 %v4286_v24  ;;  %v4205_v13 = vpop.xlane.xlu0 %4204  ;;  %v4285_v40 = vsel %vm4212_vm15, inf, %v4196_v22  ;;  %v6316_v41 = vsel %vm4212_vm15, 1.0, %v7346_v5  ;;  %v6995_v15 = vpop.f32.mrf.mxu0  ;;  %v3833_v37 = vmax.f32 %v3733_v9, %v3818_v14  ;;  %v3836_v38 = vmax.f32 %v6980_v10, %v6988_v0 }
0x11ce   : > { %vm4211_vm0 = vcmp.le.f32.partialorder %v4195_v29, %v4205_v13  ;;  %7025 = vmatprep.mubr.msk.bf16.mxu0 %vm1309_vm3, %v4221_v1  ;;  %v4295_v42 = vsel %vm1309_vm3, %v4285_v40, inf  ;;  %v3821_v20 = vpop.f32.mrf.mxu1 }
0x11cf   : > { %v6315_v26 = vsel %vm4211_vm0, 1.0, %v7346_v5  ;;  %4296 = vmin.xlane.f32.xlu1 %v4295_v42  ;;  %v4284_v63 = vsel %vm4211_vm0, inf, %v4195_v29  ;;  %v3907_v2 = vpop.f32.mrf.mxu0 }
0x11d0   : > { %v4222_v17 = vpack.c.bf16 %v6316_v41, %v6315_v26  ;;  %v4292_v43 = vsel %vm1309_vm3, %v4284_v63, inf  ;;  %v7003_v22 = vpop.f32.mrf.mxu1  ;;  %v3922_v1 = vmax.f32 %v3833_v37, %v3907_v2 }
0x11d1   : > { %4293 = vmin.xlane.f32.xlu0 %v4292_v43  ;;  %v6996_v21 = vpop.f32.mrf.mxu0 }
0x11d2   : > { %7026 = vmatmul.mubr.msk.bf16.vlgmr.msra.gmra.mxu0 %vm1309_vm3, %v4222_v17  ;;  %v3996_v25 = vpop.f32.mrf.mxu1  ;;  %v3925_v42 = vmax.f32 %v3836_v38, %v6996_v21  ;;  %v4485_v38 = vld [vmem:[%s8572_s12 + $0x8] sm:$0xff] }
0x11d3   : > { %7038 = vmatpush3.msra.mxu0 %v4380_v52  ;;  %v3910_v23 = vpop.f32.mrf.mxu0  ;;  %v4011_v26 = vmax.f32 %v3922_v1, %v3996_v25  ;;  %v4484_v1 = vld [vmem:[%s8572_s12] sm:$0xff]  ;;  %s7254_s12 = scalar_lea.vmem %s5999_s9, 16 }
0x11d4   : > { %7039 = vmatprep.subr.mxu0 %v4379_v62  ;;  %v7004_v28 = vpop.f32.mrf.mxu1  ;;  %p7255_p11 = scmp.ne.s32.totalorder %s5999_s9, %s7254_s12 }
0x11d5   : > { %7040 = vmatpush3.msra.mxu0 %v4379_v62  ;;  %v7011_v27 = vpop.f32.mrf.mxu0  ;;  %v4014_v17 = vmax.f32 %v3925_v42, %v7004_v28 }
0x11d6   : > { %7061 = vmatprep.subr.mxu0 %v7346_v5  ;;  %v3999_v30 = vpop.f32.mrf.mxu1  ;;  %p7256_p12 = pnand %p7255_p11, %p7524_p5 }
0x11d7   : > { %v4085_v29 = vpop.f32.mrf.mxu0 }
0x11d8   : > { %p7257_p13 = pneg %p7256_p12 }
0x11d9   : > { %v7012_v31 = vpop.f32.mrf.mxu0 }
0x11db   : > { %v4088_v33 = vpop.f32.mrf.mxu0 }
0x1205   : > { %v7019_v32 = vpop.f32.mrf.mxu1 }
0x1254   : > { %v4291_v45 = vpop.xlane.xlu1 %4290 }
0x1255   : > { %vm4299_vm1 = vcmp.le.f32.partialorder %v4283_v34, %v4291_v45  ;;  %v4174_v34 = vpop.f32.mrf.mxu1  ;;  %v4100_v45 = vmax.f32 %v4011_v26, %v4085_v29 }
0x1256   : > { %v4288_v44 = vpop.xlane.xlu0 %4287  ;;  %v6320_v46 = vsel %vm4299_vm1, 1.0, %v7346_v5 }
0x1257   : > { %vm4298_vm4 = vcmp.le.f32.partialorder %v4282_v39, %v4288_v44  ;;  %v3924_v39 = vmax.f32 %v3835_v36, %v6995_v15  ;;  %v7020_v24 = vpop.f32.mrf.mxu1  ;;  %v4483_v36 = vld [vmem:[%s8571_s11 + $0x8] sm:$0xff] }
0x1258   : > { %v6319_v47 = vsel %vm4298_vm4, 1.0, %v7346_v5  ;;  %v4297_v56 = vpop.xlane.xlu1 %4296 }
0x1259   : > { %v4310_v57 = vpack.c.bf16 %v6320_v46, %v6319_v47  ;;  %vm4301_vm5 = vcmp.le.f32.partialorder %v4285_v40, %v4297_v56  ;;  %v3834_v40 = vmax.f32 %v3736_v12, %v3821_v20  ;;  %v4013_v41 = vmax.f32 %v3924_v39, %v7003_v22  ;;  %v4177_v44 = vpop.f32.mrf.mxu1  ;;  %v4482_v39 = vld [vmem:[%s8571_s11] sm:$0xff]  ;;  %s5973_s11 = scalar_lea.sflag [#allocation5], %s8403_s1 }
0x125a   : > { %v4294_v59 = vpop.xlane.xlu0 %4293  ;;  %v6322_v60 = vsel %vm4301_vm5, 1.0, %v7346_v5  ;;  %v4103_v56 = vmax.f32 %v4014_v17, %v7012_v31 }
0x125b   : > { %vm4300_vm6 = vcmp.le.f32.partialorder %v4284_v63, %v4294_v59  ;;  %7033 = vmatprep.mubr.msk.bf16.mxu1 %vm1309_vm3, %v4310_v57  ;;  %v3923_v63 = vmax.f32 %v3834_v40, %v3910_v23  ;;  %v4102_v43 = vmax.f32 %v4013_v41, %v7011_v27  ;;  %v4189_v59 = vmax.f32 %v4100_v45, %v4174_v34 }
0x125c   : > { %v6321_v61 = vsel %vm4300_vm6, 1.0, %v7346_v5  ;;  %v4192_v52 = vmax.f32 %v4103_v56, %v7020_v24  ;;  %v3298_v41 = vadd.f32 %v7995_v53, %v7999_v55 }
0x125d   : > { %v4311_v51 = vpack.c.bf16 %v6322_v60, %v6321_v61  ;;  %v4012_v47 = vmax.f32 %v3923_v63, %v3999_v30  ;;  %v4191_v57 = vmax.f32 %v4102_v43, %v7019_v32  ;;  %v6268_v61 = vld [vmem:[%s8570_s27] ss:$0 sm:$0xff]  ;;  %s7349_s27 = smov [#allocation4]  }
0x125e   : > { %v3562_v9 = vadd.f32 %v6268_v61, %v3561_v4  ;;  %v3577_v2 = vadd.f32 %v6962_v6, %v6268_v61  ;;  %v3572_v21 = vadd.f32 %v6268_v61, %v3571_v7  ;;  %v3567_v27 = vadd.f32 %v8127_v3, %v6268_v61  ;;  %s7258_s7 = sshll.u32 %s7349_s27, 4  ;;  %s7259_s7 = int_to_ptr.vmem [resolvable:$false] %s7258_s7 }
0x125f   : > { %7034 = vmatmul.mubr.msk.bf16.vlgmr.msra.gmra.mxu1 %vm1309_vm3, %v4311_v51  ;;  %v4101_v51 = vmax.f32 %v4012_v47, %v4088_v33  ;;  %p7261_p0 = scmp.lt.s32.totalorder %s5999_s9, %s7259_s7 }
0x1261   : > { %v4190_v12 = vmax.f32 %v4101_v51, %v4177_v44 }
0x1292   : > { %v7027_v35 = vpop.f32.mrf.mxu0 }
0x1293   : > { %v4280_v62 = vmax.f32 %v4191_v57, %v7027_v35 }
0x1294   : > { %v4263_v13 = vpop.f32.mrf.mxu0 }
0x1295   : > { %v4278_v8 = vmax.f32 %v4189_v59, %v4263_v13  ;;  %v3283_v13 = vadd.f32 %v7991_v49, %v7997_v54 }
0x1296   : > { %v7028_v46 = vpop.f32.mrf.mxu0 }
0x1297   : > { %v4281_v14 = vmax.f32 %v4192_v52, %v7028_v46 }
0x1298   : > { %v4266_v10 = vpop.f32.mrf.mxu0 }
0x1299   : > { %v4279_v22 = vmax.f32 %v4190_v12, %v4266_v10 }
0x131f   : > { %v7035_v60 = vpop.f32.mrf.mxu1 }
0x1320   : > { %v4369_v15 = vmax.f32 %v4280_v62, %v7035_v60 }
0x1321   : > { %v4352_v11 = vpop.f32.mrf.mxu1 }
0x1322   : > { %v4367_v0 = vmax.f32 %v4278_v8, %v4352_v11  ;;  %v4373_v29 = vadd.f32 %v4369_v15, %v3572_v21 }
0x1323   : > { %v7036_v20 = vpop.f32.mrf.mxu1 }
0x1324   : > { %v4371_v23 = vadd.f32 %v4367_v0, %v3562_v9  ;;  %v4370_v25 = vmax.f32 %v4281_v14, %v7036_v20  ;;  %v4377_v34 = vmax.f32 %v4373_v29, 0.0 }
0x1325   : > { %v4355_v28 = vpop.f32.mrf.mxu1 }
0x1326   : > { %v4375_v30 = vmax.f32 %v4371_v23, 0.0  ;;  %v4374_v31 = vadd.f32 %v4370_v25, %v3577_v2  ;;  %v4368_v32 = vmax.f32 %v4279_v22, %v4355_v28  ;;  %v4574_v3 = vmul.f32 %v4377_v34, %v4377_v34 }
0x1328   : > { %v4378_v4 = vmax.f32 %v4374_v31, 0.0  ;;  %v4372_v33 = vadd.f32 %v4368_v32, %v3567_v27  ;;  %7041 = vmatprep.mubr.msk.f32.mxu0 %vm2029_vm8, %v4375_v30  ;;  %7055 = vmatprep.mubr.msk.f32.mxu1 %vm2029_vm8, %v4375_v30  ;;  %v4572_v37 = vmul.f32 %v4375_v30, %v4375_v30 }
0x132a   : > { %v4376_v6 = vmax.f32 %v4372_v33, 0.0  ;;  %7047 = vmatprep.subr.msk.mxu1 %vm2029_vm8, %v4378_v4  ;;  %v4575_v7 = vmul.f32 %v4378_v4, %v4378_v4 }
0x132b   : > { %7048 = vmatpush3.xpose.msk.msra.mxu1 %vm2029_vm8, %v4378_v4 }
0x132c   : > { %7042 = vmatmul.mubr.msk.f32.vlgmr.msra.gmra.mxu0 %vm2029_vm8, %v4376_v6  ;;  %7049 = vmatprep.subr.msk.mxu1 %vm2029_vm8, %v4377_v34  ;;  %v4573_v35 = vmul.f32 %v4376_v6, %v4376_v6 }
0x132d   : > { %7062 = vmatpush3.xpose.msk.msra.mxu0 %vm2029_vm8, %v4575_v7  ;;  %7044 = vmatprep.mubr.msk.f32.mxu0 %vm2029_vm8, %v4377_v34 }
0x132e   : > { %7063 = vmatprep.subr.mxu0 %v7346_v5 }
0x132f   : > { %7050 = vmatpush3.xpose.msk.msra.mxu1 %vm2029_vm8, %v4377_v34 }
0x1330   : > { %7045 = vmatmul.mubr.msk.f32.gmra.mxu0 %vm2029_vm8, %v4378_v4  ;;  %7051 = vmatprep.subr.msk.mxu1 %vm2029_vm8, %v4376_v6 }
0x1331   : > { %7064 = vmatpush3.xpose.msk.msra.mxu0 %vm2029_vm8, %v4574_v3  ;;  %7069 = vmatprep.mubr.msk.f32.mxu0 %vm7347_vm2, %v7346_v5 }
0x1332   : > { %7065 = vmatprep.subr.mxu0 %v7346_v5 }
0x1333   : > { %7052 = vmatpush3.xpose.msk.msra.mxu1 %vm2029_vm8, %v4376_v6 }
0x1334   : > { %7053 = vmatprep.subr.msk.mxu1 %vm2029_vm8, %v4375_v30 }
0x1335   : > { %7066 = vmatpush3.xpose.msk.msra.mxu0 %vm2029_vm8, %v4573_v35 }
0x1336   : > { %7067 = vmatprep.subr.mxu0 %v7346_v5 }
0x1337   : > { %7054 = vmatpush3.xpose.msk.msra.mxu1 %vm2029_vm8, %v4375_v30 }
0x1338   : > { %7072 = vmatprep.subr.mxu1 %v4483_v36 }
0x1339   : > { %7068 = vmatpush3.xpose.msk.msra.mxu0 %vm2029_vm8, %v4572_v37 }
0x133a   : > { %7056 = vmatmul.mubr.msk.f32.vlgmr.msra.gmra.mxu1 %vm2029_vm8, %v4376_v6  ;;  %7082 = vmatprep.subr.mxu0 %v4485_v38 }
0x133b   : > { %7058 = vmatprep.mubr.msk.f32.mxu1 %vm2029_vm8, %v4377_v34  ;;  %7073 = vmatpush3.msra.mxu1 %v4483_v36 }
0x133c   : > { %7070 = vmatmul.mubr.msk.f32.vlgmr.msra.gmra.mxu0 %vm2029_vm8, %v7348_v16  ;;  %7074 = vmatprep.subr.mxu1 %v4482_v39  ;;  %v3288_v16 = vadd.f32 %v7989_v48, %v7993_v50 }
0x133d   : > { %7083 = vmatpush3.msra.mxu0 %v4485_v38  ;;  %7086 = vmatprep.mubr.msk.f32.mxu0 %vm2029_vm8, %v4375_v30 }
0x133e   : > { %7084 = vmatprep.subr.mxu0 %v4484_v1  ;;  %7059 = vmatmul.mubr.msk.f32.gmra.mxu1 %vm2029_vm8, %v4378_v4 }
0x133f   : > { %7085 = vmatpush3.msra.mxu0 %v4484_v1  ;;  %7076 = vmatprep.mubr.msk.f32.mxu1 %vm2029_vm8, %v4375_v30 }
0x1340   : > { %7087 = vmatmul.mubr.msk.f32.vlgmr.msra.gmra.mxu0 %vm2029_vm8, %v4376_v6  ;;  %7075 = vmatpush3.msra.mxu1 %v4482_v39 }
0x1341   : > { %7089 = vmatprep.mubr.msk.f32.mxu0 %vm2029_vm8, %v4377_v34 }
0x1342   : > { %7077 = vmatmul.mubr.msk.f32.vlgmr.msra.gmra.mxu1 %vm2029_vm8, %v4376_v6 }
0x1343   : > { %7079 = vmatprep.mubr.msk.f32.mxu1 %vm2029_vm8, %v4377_v34 }
0x1344   : > { %7090 = vmatmul.mubr.msk.f32.gmra.mxu0 %vm2029_vm8, %v4378_v4 }
0x1346   : > { %7080 = vmatmul.mubr.msk.f32.gmra.mxu1 %vm2029_vm8, %v4378_v4 }
0x13ec   : > { %v7043_v24 = vpop.f32.mrf.mxu0 }
0x13ed   : > { %v8184_v40 = vadd.f32 %v7043_v24, %v3288_v16 }
0x13ee   : > { %v4459_v42 = vpop.f32.mrf.mxu0 }
0x13ef   : > { %v8188_v26 = vadd.f32 %v4459_v42, %v3283_v13 }
0x13f0   : > { %v7046_v63 = vpop.f32.mrf.mxu0 }
0x13f1   : > { %v8190_v17 = vadd.f32 %v7046_v63, %v3298_v41 }
0x13f2   : > { %v4469_v43 = vpop.f32.mrf.mxu0 }
0x13f3   : > { %v8193_v45 = vadd.f32 %v4469_v43, %v8001_v58 }
0x13fa   : > { %v7057_v48 = vpop.f32.mrf.mxu1 }
0x13fb   : > { %v4659_v50 = vmul.f32 2.0, %v7057_v48 }
0x13fc   : > { %v4654_v44 = vpop.f32.mrf.mxu0  ;;  %v4553_v46 = vpop.f32.mrf.mxu1 }
0x13fd   : > { %v4665_v49 = vrot.slane %v4654_v44, %v7593_v19  ;;  %v4658_v54 = vmul.f32 2.0, %v4553_v46 }
0x13fe   : > { %v7071_v47 = vpop.f32.mrf.mxu0  ;;  %v7060_v56 = vpop.f32.mrf.mxu1 }
0x13ff   : > { %v4666_v57 = vsub.f32 %v4665_v49, %v4658_v54  ;;  %v4661_v53 = vmul.f32 2.0, %v7060_v56  ;;  %v4667_v55 = vsub.f32 %v4665_v49, %v4659_v50 }
0x1400   : > { %v7088_v59 = vpop.f32.mrf.mxu0  ;;  %v4563_v60 = vpop.f32.mrf.mxu1 }
0x1401   : > { %v4669_v61 = vsub.f32 %v4665_v49, %v4661_v53  ;;  %v4660_v51 = vmul.f32 2.0, %v4563_v60  ;;  %v4851_v52 = vsel %vm1309_vm3, %v4667_v55, inf  ;;  %v4848_v58 = vsel %vm1309_vm3, %v4666_v57, inf }
0x1402   : > { %4852 = vmin.xlane.f32.xlu1 %v4851_v52  ;;  %v4827_v62 = vpop.f32.mrf.mxu0  ;;  %4849 = vmin.xlane.f32.xlu0 %v4848_v58 }
0x1403   : > { %v4668_v8 = vsub.f32 %v4665_v49, %v4660_v51  ;;  %v4857_v19 = vsel %vm1309_vm3, %v4669_v61, inf  ;;  %v8202_v14 = vpack.c.bf16 %v7088_v59, %v4827_v62 }
0x1404   : > { %v7091_v9 = vpop.f32.mrf.mxu0 }
0x1405   : > { %v4854_v10 = vsel %vm1309_vm3, %v4668_v8, inf }
0x1406   : > { %4858 = vmin.xlane.f32.xlu1 %v4857_v19  ;;  %v4837_v11 = vpop.f32.mrf.mxu0  ;;  %4855 = vmin.xlane.f32.xlu0 %v4854_v10 }
0x1407   : > { %v8200_v12 = vpack.c.bf16 %v7091_v9, %v4837_v11 }
0x1409   : > { %7092 = vmatprep.subr.bf16.mxu1 %v8200_v12  ;;  %7100 = vmatprep.subr.bf16.mxu0 %v8200_v12 }
0x140a   : > { %7093 = vmatpush3.bf16.msra.mxu1 %v8200_v12  ;;  %7101 = vmatpush3.bf16.msra.mxu0 %v8200_v12 }
0x140b   : > { %7094 = vmatprep.subr.bf16.mxu1 %v8202_v14  ;;  %7102 = vmatprep.subr.bf16.mxu0 %v8202_v14 }
0x140e   : > { %7095 = vmatpush3.bf16.msra.mxu1 %v8202_v14  ;;  %7103 = vmatpush3.bf16.msra.mxu0 %v8202_v14 }
0x140f   : > { %7108 = vmatprep.subr.bf16.mxu1 %v8200_v12  ;;  %7116 = vmatprep.subr.bf16.mxu0 %v8200_v12 }
0x148b   : > { %v4853_v15 = vpop.xlane.xlu1 %4852  ;;  %v4850_v0 = vpop.xlane.xlu0 %4849 }
0x148c   : > { %vm4861_vm7 = vcmp.le.f32.partialorder %v4667_v55, %v4853_v15  ;;  %vm4860_vm9 = vcmp.le.f32.partialorder %v4666_v57, %v4850_v0 }
0x148d   : > { %v6352_v2 = vsel %vm4861_vm7, 1.0, %v7346_v5  ;;  %v4930_v20 = vsel %vm4861_vm7, inf, %v4667_v55  ;;  %v6351_v21 = vsel %vm4860_vm9, 1.0, %v7346_v5  ;;  %v4929_v22 = vsel %vm4860_vm9, inf, %v4666_v57 }
0x148e   : > { %v4872_v23 = vpack.c.bf16 %v6352_v2, %v6351_v21  ;;  %v4936_v25 = vsel %vm1309_vm3, %v4930_v20, inf  ;;  %v4933_v27 = vsel %vm1309_vm3, %v4929_v22, inf }
0x148f   : > { %4937 = vmin.xlane.f32.xlu1 %v4936_v25  ;;  %v4859_v28 = vpop.xlane.xlu1 %4858  ;;  %4934 = vmin.xlane.f32.xlu0 %v4933_v27  ;;  %v4856_v29 = vpop.xlane.xlu0 %4855 }
0x1490   : > { %vm4863_vm10 = vcmp.le.f32.partialorder %v4669_v61, %v4859_v28  ;;  %vm4862_vm11 = vcmp.le.f32.partialorder %v4668_v8, %v4856_v29  ;;  %7096 = vmatprep.mubr.msk.bf16.mxu1 %vm1309_vm3, %v4872_v23 }
0x1491   : > { %v6354_v30 = vsel %vm4863_vm10, 1.0, %v7346_v5  ;;  %v4932_v31 = vsel %vm4863_vm10, inf, %v4669_v61  ;;  %v6353_v32 = vsel %vm4862_vm11, 1.0, %v7346_v5  ;;  %v4931_v4 = vsel %vm4862_vm11, inf, %v4668_v8 }
0x1492   : > { %v4873_v33 = vpack.c.bf16 %v6354_v30, %v6353_v32  ;;  %v4942_v34 = vsel %vm1309_vm3, %v4932_v31, inf  ;;  %v4939_v6 = vsel %vm1309_vm3, %v4931_v4, inf }
0x1493   : > { %4943 = vmin.xlane.f32.xlu1 %v4942_v34  ;;  %4940 = vmin.xlane.f32.xlu0 %v4939_v6 }
0x1494   : > { %7097 = vmatmul.mubr.msk.bf16.vlgmr.msra.gmra.mxu1 %vm1309_vm3, %v4873_v33 }
0x1495   : > { %7109 = vmatpush3.bf16.msra.mxu1 %v8200_v12 }
0x1496   : > { %7110 = vmatprep.subr.bf16.mxu1 %v8202_v14 }
0x1499   : > { %7111 = vmatpush3.bf16.msra.mxu1 %v8202_v14 }
0x149a   : > { %7124 = vmatprep.subr.bf16.mxu1 %v8200_v12 }
0x1518   : > { %v4938_v7 = vpop.xlane.xlu1 %4937  ;;  %v4935_v3 = vpop.xlane.xlu0 %4934 }
0x1519   : > { %vm4946_vm12 = vcmp.le.f32.partialorder %v4930_v20, %v4938_v7  ;;  %vm4945_vm13 = vcmp.le.f32.partialorder %v4929_v22, %v4935_v3 }
0x151a   : > { %v6358_v35 = vsel %vm4946_vm12, 1.0, %v7346_v5  ;;  %v5019_v36 = vsel %vm4946_vm12, inf, %v4930_v20  ;;  %v6357_v37 = vsel %vm4945_vm13, 1.0, %v7346_v5  ;;  %v5018_v38 = vsel %vm4945_vm13, inf, %v4929_v22 }
0x151b   : > { %v4957_v39 = vpack.c.bf16 %v6358_v35, %v6357_v37  ;;  %v5025_v1 = vsel %vm1309_vm3, %v5019_v36, inf  ;;  %v5022_v16 = vsel %vm1309_vm3, %v5018_v38, inf }
0x151c   : > { %5026 = vmin.xlane.f32.xlu1 %v5025_v1  ;;  %v4944_v24 = vpop.xlane.xlu1 %4943  ;;  %5023 = vmin.xlane.f32.xlu0 %v5022_v16  ;;  %v4941_v13 = vpop.xlane.xlu0 %4940 }
0x151d   : > { %vm4948_vm14 = vcmp.le.f32.partialorder %v4932_v31, %v4944_v24  ;;  %vm4947_vm15 = vcmp.le.f32.partialorder %v4931_v4, %v4941_v13  ;;  %7104 = vmatprep.mubr.msk.bf16.mxu0 %vm1309_vm3, %v4957_v39 }
0x151e   : > { %v6360_v42 = vsel %vm4948_vm14, 1.0, %v7346_v5  ;;  %v5021_v41 = vsel %vm4948_vm14, inf, %v4932_v31  ;;  %v6359_v63 = vsel %vm4947_vm15, 1.0, %v7346_v5  ;;  %v5020_v43 = vsel %vm4947_vm15, inf, %v4931_v4 }
0x151f   : > { %v4958_v48 = vpack.c.bf16 %v6360_v42, %v6359_v63  ;;  %v5031_v50 = vsel %vm1309_vm3, %v5021_v41, inf  ;;  %v5028_v44 = vsel %vm1309_vm3, %v5020_v43, inf }
0x1520   : > { %5032 = vmin.xlane.f32.xlu1 %v5031_v50  ;;  %5029 = vmin.xlane.f32.xlu0 %v5028_v44 }
0x1521   : > { %7105 = vmatmul.mubr.msk.bf16.vlgmr.msra.gmra.mxu0 %vm1309_vm3, %v4958_v48 }
0x1522   : > { %7117 = vmatpush3.bf16.msra.mxu0 %v8200_v12 }
0x1523   : > { %7118 = vmatprep.subr.bf16.mxu0 %v8202_v14 }
0x1526   : > { %7119 = vmatpush3.bf16.msra.mxu0 %v8202_v14 }
0x1527   : > { %7132 = vmatprep.subr.bf16.mxu0 %v8200_v12 }
0x15a5   : > { %v5027_v46 = vpop.xlane.xlu1 %5026  ;;  %v5024_v49 = vpop.xlane.xlu0 %5023 }
0x15a6   : > { %vm5035_vm0 = vcmp.le.f32.partialorder %v5019_v36, %v5027_v46  ;;  %vm5034_vm1 = vcmp.le.f32.partialorder %v5018_v38, %v5024_v49 }
0x15a7   : > { %v6364_v54 = vsel %vm5035_vm0, 1.0, %v7346_v5  ;;  %v5108_v47 = vsel %vm5035_vm0, inf, %v5019_v36  ;;  %v6363_v56 = vsel %vm5034_vm1, 1.0, %v7346_v5  ;;  %v5107_v57 = vsel %vm5034_vm1, inf, %v5018_v38 }
0x15a8   : > { %v5046_v53 = vpack.c.bf16 %v6364_v54, %v6363_v56  ;;  %v5114_v55 = vsel %vm1309_vm3, %v5108_v47, inf  ;;  %v5111_v59 = vsel %vm1309_vm3, %v5107_v57, inf }
0x15a9   : > { %5115 = vmin.xlane.f32.xlu1 %v5114_v55  ;;  %v5033_v60 = vpop.xlane.xlu1 %5032  ;;  %5112 = vmin.xlane.f32.xlu0 %v5111_v59  ;;  %v5030_v61 = vpop.xlane.xlu0 %5029 }
0x15aa   : > { %vm5037_vm4 = vcmp.le.f32.partialorder %v5021_v41, %v5033_v60  ;;  %vm5036_vm5 = vcmp.le.f32.partialorder %v5020_v43, %v5030_v61  ;;  %7112 = vmatprep.mubr.msk.bf16.mxu1 %vm1309_vm3, %v5046_v53 }
0x15ab   : > { %v6366_v51 = vsel %vm5037_vm4, 1.0, %v7346_v5  ;;  %v5110_v52 = vsel %vm5037_vm4, inf, %v5021_v41  ;;  %v6365_v58 = vsel %vm5036_vm5, 1.0, %v7346_v5  ;;  %v5109_v62 = vsel %vm5036_vm5, inf, %v5020_v43 }
0x15ac   : > { %v5047_v8 = vpack.c.bf16 %v6366_v51, %v6365_v58  ;;  %v5120_v19 = vsel %vm1309_vm3, %v5110_v52, inf  ;;  %v5117_v9 = vsel %vm1309_vm3, %v5109_v62, inf }
0x15ad   : > { %5121 = vmin.xlane.f32.xlu1 %v5120_v19  ;;  %5118 = vmin.xlane.f32.xlu0 %v5117_v9 }
0x15ae   : > { %7113 = vmatmul.mubr.msk.bf16.vlgmr.msra.gmra.mxu1 %vm1309_vm3, %v5047_v8 }
0x15af   : > { %7125 = vmatpush3.bf16.msra.mxu1 %v8200_v12 }
0x15b0   : > { %7126 = vmatprep.subr.bf16.mxu1 %v8202_v14 }
0x15b3   : > { %7127 = vmatpush3.bf16.msra.mxu1 %v8202_v14 }
0x15b4   : > { %7140 = vmatprep.subr.bf16.mxu1 %v8200_v12 }
0x1632   : > { %v5116_v10 = vpop.xlane.xlu1 %5115  ;;  %v5113_v11 = vpop.xlane.xlu0 %5112 }
0x1633   : > { %vm5124_vm6 = vcmp.le.f32.partialorder %v5108_v47, %v5116_v10  ;;  %vm5123_vm7 = vcmp.le.f32.partialorder %v5107_v57, %v5113_v11 }
0x1634   : > { %v6370_v15 = vsel %vm5124_vm6, 1.0, %v7346_v5  ;;  %v5197_v0 = vsel %vm5124_vm6, inf, %v5108_v47  ;;  %v6369_v2 = vsel %vm5123_vm7, 1.0, %v7346_v5  ;;  %v5196_v20 = vsel %vm5123_vm7, inf, %v5107_v57 }
0x1635   : > { %v5135_v21 = vpack.c.bf16 %v6370_v15, %v6369_v2  ;;  %v5203_v22 = vsel %vm1309_vm3, %v5197_v0, inf  ;;  %v5200_v23 = vsel %vm1309_vm3, %v5196_v20, inf }
0x1636   : > { %5204 = vmin.xlane.f32.xlu1 %v5203_v22  ;;  %v5122_v25 = vpop.xlane.xlu1 %5121  ;;  %5201 = vmin.xlane.f32.xlu0 %v5200_v23  ;;  %v5119_v27 = vpop.xlane.xlu0 %5118 }
0x1637   : > { %vm5126_vm9 = vcmp.le.f32.partialorder %v5110_v52, %v5122_v25  ;;  %vm5125_vm10 = vcmp.le.f32.partialorder %v5109_v62, %v5119_v27  ;;  %7120 = vmatprep.mubr.msk.bf16.mxu0 %vm1309_vm3, %v5135_v21 }
0x1638   : > { %v6372_v28 = vsel %vm5126_vm9, 1.0, %v7346_v5  ;;  %v5199_v29 = vsel %vm5126_vm9, inf, %v5110_v52  ;;  %v6371_v30 = vsel %vm5125_vm10, 1.0, %v7346_v5  ;;  %v5198_v31 = vsel %vm5125_vm10, inf, %v5109_v62 }
0x1639   : > { %v5136_v32 = vpack.c.bf16 %v6372_v28, %v6371_v30  ;;  %v5209_v4 = vsel %vm1309_vm3, %v5199_v29, inf  ;;  %v5206_v33 = vsel %vm1309_vm3, %v5198_v31, inf }
0x163a   : > { %5210 = vmin.xlane.f32.xlu1 %v5209_v4  ;;  %5207 = vmin.xlane.f32.xlu0 %v5206_v33 }
0x163b   : > { %7121 = vmatmul.mubr.msk.bf16.vlgmr.msra.gmra.mxu0 %vm1309_vm3, %v5136_v32 }
0x163c   : > { %7133 = vmatpush3.bf16.msra.mxu0 %v8200_v12 }
0x163d   : > { %7134 = vmatprep.subr.bf16.mxu0 %v8202_v14 }
0x1640   : > { %7135 = vmatpush3.bf16.msra.mxu0 %v8202_v14 }
0x1641   : > { %7148 = vmatprep.subr.bf16.mxu0 %v8200_v12 }
0x16bf   : > { %v5205_v34 = vpop.xlane.xlu1 %5204  ;;  %v5202_v6 = vpop.xlane.xlu0 %5201 }
0x16c0   : > { %vm5213_vm11 = vcmp.le.f32.partialorder %v5197_v0, %v5205_v34  ;;  %vm5212_vm12 = vcmp.le.f32.partialorder %v5196_v20, %v5202_v6 }
0x16c1   : > { %v6376_v7 = vsel %vm5213_vm11, 1.0, %v7346_v5  ;;  %v5286_v3 = vsel %vm5213_vm11, inf, %v5197_v0  ;;  %v6375_v35 = vsel %vm5212_vm12, 1.0, %v7346_v5  ;;  %v5285_v36 = vsel %vm5212_vm12, inf, %v5196_v20 }
0x16c2   : > { %v5224_v37 = vpack.c.bf16 %v6376_v7, %v6375_v35  ;;  %v5292_v38 = vsel %vm1309_vm3, %v5286_v3, inf  ;;  %v5289_v39 = vsel %vm1309_vm3, %v5285_v36, inf }
0x16c3   : > { %5293 = vmin.xlane.f32.xlu1 %v5292_v38  ;;  %v5211_v1 = vpop.xlane.xlu1 %5210  ;;  %5290 = vmin.xlane.f32.xlu0 %v5289_v39  ;;  %v5208_v16 = vpop.xlane.xlu0 %5207  ;;  %v5562_v38 = vld [vmem:[%s8512_s17 + $0x10] sm:$0xff]  ;;  %v5561_v39 = vld [vmem:[%s8512_s17 + $0x8] sm:$0xff] }
0x16c4   : > { %vm5215_vm13 = vcmp.le.f32.partialorder %v5199_v29, %v5211_v1  ;;  %vm5214_vm14 = vcmp.le.f32.partialorder %v5198_v31, %v5208_v16  ;;  %7128 = vmatprep.mubr.msk.bf16.mxu1 %vm1309_vm3, %v5224_v37  ;;  %v5563_v37 = vld [vmem:[%s8512_s17 + $0x18] sm:$0xff]  ;;  %v5560_v1 = vld [vmem:[%s8512_s17] sm:$0xff]  ;;  %v8328_v16 = vpop.f32.mrf.mxu1 }
0x16c5   : > { %v6378_v24 = vsel %vm5215_vm13, 1.0, %v7346_v5  ;;  %v5288_v13 = vsel %vm5215_vm13, inf, %v5199_v29  ;;  %v6377_v42 = vsel %vm5214_vm14, 1.0, %v7346_v5  ;;  %v5287_v41 = vsel %vm5214_vm14, inf, %v5198_v31 }
0x16c6   : > { %v5225_v63 = vpack.c.bf16 %v6378_v24, %v6377_v42  ;;  %v5298_v43 = vsel %vm1309_vm3, %v5288_v13, inf  ;;  %v5295_v48 = vsel %vm1309_vm3, %v5287_v41, inf  ;;  %v4742_v24 = vpop.f32.mrf.mxu1  ;;  %vm5680_vm14 = vcmask 523264  }
0x16c7   : > { %5299 = vmin.xlane.f32.xlu1 %v5298_v43  ;;  %5296 = vmin.xlane.f32.xlu0 %v5295_v48  ;;  %v7106_v48 = vpop.f32.mrf.mxu0 }
0x16c8   : > { %7129 = vmatmul.mubr.msk.bf16.vlgmr.msra.gmra.mxu1 %vm1309_vm3, %v5225_v63 }
0x16c9   : > { %7141 = vmatpush3.bf16.msra.mxu1 %v8200_v12 }
0x16ca   : > { %7142 = vmatprep.subr.bf16.mxu1 %v8202_v14 }
0x16cd   : > { %7143 = vmatpush3.bf16.msra.mxu1 %v8202_v14 }
0x16ce   : > { %7156 = vmatprep.subr.mxu1 %v5563_v37 }
0x174c   : > { %v5294_v50 = vpop.xlane.xlu1 %5293  ;;  %v5291_v44 = vpop.xlane.xlu0 %5290 }
0x174d   : > { %vm5302_vm15 = vcmp.le.f32.partialorder %v5286_v3, %v5294_v50  ;;  %vm5301_vm0 = vcmp.le.f32.partialorder %v5285_v36, %v5291_v44  ;;  %v4999_v44 = vpop.f32.mrf.mxu0 }
0x174e   : > { %v6382_v46 = vsel %vm5302_vm15, 1.0, %v7346_v5  ;;  %v5375_v49 = vsel %vm5302_vm15, inf, %v5286_v3  ;;  %v6381_v54 = vsel %vm5301_vm0, 1.0, %v7346_v5  ;;  %v5374_v47 = vsel %vm5301_vm0, inf, %v5285_v36 }
0x174f   : > { %v5313_v56 = vpack.c.bf16 %v6382_v46, %v6381_v54  ;;  %v5381_v57 = vsel %vm1309_vm3, %v5375_v49, inf  ;;  %v5378_v53 = vsel %vm1309_vm3, %v5374_v47, inf }
0x1750   : > { %5382 = vmin.xlane.f32.xlu1 %v5381_v57  ;;  %v5300_v55 = vpop.xlane.xlu1 %5299  ;;  %5379 = vmin.xlane.f32.xlu0 %v5378_v53  ;;  %v5297_v59 = vpop.xlane.xlu0 %5296 }
0x1751   : > { %vm5304_vm1 = vcmp.le.f32.partialorder %v5288_v13, %v5300_v55  ;;  %vm5303_vm4 = vcmp.le.f32.partialorder %v5287_v41, %v5297_v59  ;;  %7136 = vmatprep.mubr.msk.bf16.mxu0 %vm1309_vm3, %v5313_v56 }
0x1752   : > { %v6384_v60 = vsel %vm5304_vm1, 1.0, %v7346_v5  ;;  %v5377_v61 = vsel %vm5304_vm1, inf, %v5288_v13  ;;  %v6383_v51 = vsel %vm5303_vm4, 1.0, %v7346_v5  ;;  %v5376_v52 = vsel %vm5303_vm4, inf, %v5287_v41  ;;  %v8330_v13 = vpop.f32.mrf.mxu1 }
0x1753   : > { %v5314_v58 = vpack.c.bf16 %v6384_v60, %v6383_v51  ;;  %v5387_v62 = vsel %vm1309_vm3, %v5377_v61, inf  ;;  %v5384_v8 = vsel %vm1309_vm3, %v5376_v52, inf }
0x1754   : > { %5388 = vmin.xlane.f32.xlu1 %v5387_v62  ;;  %5385 = vmin.xlane.f32.xlu0 %v5384_v8  ;;  %v4752_v42 = vpop.f32.mrf.mxu1 }
0x1755   : > { %7137 = vmatmul.mubr.msk.bf16.vlgmr.msra.gmra.mxu0 %vm1309_vm3, %v5314_v58 }
0x1756   : > { %7149 = vmatpush3.bf16.msra.mxu0 %v8200_v12  ;;  %v7098_v41 = vpop.f32.mrf.mxu1 }
0x1757   : > { %7150 = vmatprep.subr.bf16.mxu0 %v8202_v14 }
0x1758   : > { %v4914_v63 = vpop.f32.mrf.mxu1 }
0x175a   : > { %7151 = vmatpush3.bf16.msra.mxu0 %v8202_v14  ;;  %v7099_v43 = vpop.f32.mrf.mxu1 }
0x175b   : > { %7170 = vmatprep.subr.mxu0 %v7346_v5 }
0x175c   : > { %v4917_v50 = vpop.f32.mrf.mxu1 }
0x175e   : > { %v7114_v46 = vpop.f32.mrf.mxu1 }
0x1760   : > { %v5088_v54 = vpop.f32.mrf.mxu1 }
0x1762   : > { %v7115_v56 = vpop.f32.mrf.mxu1 }
0x1764   : > { %v5091_v53 = vpop.f32.mrf.mxu1 }
0x1788   : > { %v7130_v59 = vpop.f32.mrf.mxu1 }
0x17d9   : > { %v5383_v19 = vpop.xlane.xlu1 %5382  ;;  %v5380_v9 = vpop.xlane.xlu0 %5379 }
0x17da   : > { %vm5391_vm5 = vcmp.le.f32.partialorder %v5375_v49, %v5383_v19  ;;  %vm5390_vm6 = vcmp.le.f32.partialorder %v5374_v47, %v5380_v9  ;;  %v5014_v9 = vmax.f32 %v4914_v63, %v4999_v44 }
0x17db   : > { %v6388_v10 = vsel %vm5391_vm5, 1.0, %v7346_v5  ;;  %v5464_v11 = vsel %vm5391_vm5, inf, %v5375_v49  ;;  %v6387_v15 = vsel %vm5390_vm6, 1.0, %v7346_v5  ;;  %v5463_v0 = vsel %vm5390_vm6, inf, %v5374_v47  ;;  %v7107_v49 = vpop.f32.mrf.mxu0 }
0x17dc   : > { %v5402_v2 = vpack.c.bf16 %v6388_v10, %v6387_v15  ;;  %v5470_v20 = vsel %vm1309_vm3, %v5464_v11, inf  ;;  %v5467_v12 = vsel %vm1309_vm3, %v5463_v0, inf  ;;  %v5016_v10 = vmax.f32 %v7098_v41, %v7106_v48 }
0x17dd   : > { %5471 = vmin.xlane.f32.xlu1 %v5470_v20  ;;  %v5389_v21 = vpop.xlane.xlu1 %5388  ;;  %5468 = vmin.xlane.f32.xlu0 %v5467_v12  ;;  %v5386_v14 = vpop.xlane.xlu0 %5385  ;;  %v5017_v20 = vmax.f32 %v7099_v43, %v7107_v49 }
0x17de   : > { %vm5393_vm7 = vcmp.le.f32.partialorder %v5377_v61, %v5389_v21  ;;  %vm5392_vm9 = vcmp.le.f32.partialorder %v5376_v52, %v5386_v14  ;;  %7144 = vmatprep.mubr.msk.bf16.mxu1 %vm1309_vm3, %v5402_v2  ;;  %v5002_v47 = vpop.f32.mrf.mxu0  ;;  %v5105_v15 = vmax.f32 %v5016_v10, %v7114_v46  ;;  %v5811_v10 = vld [vmem:[%s8516_s21 + $0x10] sm:$0xff] }
0x17df   : > { %v6390_v22 = vsel %vm5393_vm7, 1.0, %v7346_v5  ;;  %v5466_v23 = vsel %vm5393_vm7, inf, %v5377_v61  ;;  %v6389_v25 = vsel %vm5392_vm9, 1.0, %v7346_v5  ;;  %v5465_v27 = vsel %vm5392_vm9, inf, %v5376_v52  ;;  %v5266_v61 = vpop.f32.mrf.mxu1 }
0x17e0   : > { %v5403_v28 = vpack.c.bf16 %v6390_v22, %v6389_v25  ;;  %v5476_v29 = vsel %vm1309_vm3, %v5466_v23, inf  ;;  %v5473_v30 = vsel %vm1309_vm3, %v5465_v27, inf  ;;  %v7122_v57 = vpop.f32.mrf.mxu0  ;;  %v5015_v12 = vmax.f32 %v4917_v50, %v5002_v47 }
0x17e1   : > { %5477 = vmin.xlane.f32.xlu1 %v5476_v29  ;;  %5474 = vmin.xlane.f32.xlu0 %v5473_v30  ;;  %v7131_v52 = vpop.f32.mrf.mxu1  ;;  %v5194_v14 = vmax.f32 %v5105_v15, %v7122_v57  ;;  %v5106_v22 = vmax.f32 %v5017_v20, %v7115_v56  ;;  %v6403_v15 = vld [vmem:[%s8513_s18] ss:$0 sm:$0xff] }
0x17e2   : > { %7145 = vmatmul.mubr.msk.bf16.vlgmr.msra.gmra.mxu1 %vm1309_vm3, %v5403_v28  ;;  %v5177_v55 = vpop.f32.mrf.mxu0 }
0x17e3   : > { %7157 = vmatpush3.msra.mxu1 %v5563_v37  ;;  %v5269_v62 = vpop.f32.mrf.mxu1 }
0x17e4   : > { %7158 = vmatprep.subr.mxu1 %v5562_v38  ;;  %v7123_v60 = vpop.f32.mrf.mxu0 }
0x17e5   : > { %7159 = vmatpush3.msra.mxu1 %v5562_v38  ;;  %v5195_v30 = vmax.f32 %v5106_v22, %v7123_v60 }
0x17e6   : > { %7160 = vmatprep.subr.mxu1 %v5561_v39  ;;  %v5180_v51 = vpop.f32.mrf.mxu0 }
0x17e7   : > { %7161 = vmatpush3.msra.mxu1 %v5561_v39 }
0x17e8   : > { %7162 = vmatprep.subr.mxu1 %v5560_v1 }
0x17e9   : > { %7163 = vmatpush3.msra.mxu1 %v5560_v1 }
0x17ea   : > { %7189 = vmatprep.subr.mxu1 %v7346_v5 }
0x1815   : > { %v7138_v58 = vpop.f32.mrf.mxu0 }
0x1817   : > { %v5355_v8 = vpop.f32.mrf.mxu0 }
0x1866   : > { %v5472_v31 = vpop.xlane.xlu1 %5471  ;;  %v5469_v32 = vpop.xlane.xlu0 %5468 }
0x1867   : > { %vm5480_vm10 = vcmp.le.f32.partialorder %v5464_v11, %v5472_v31  ;;  %vm5479_vm11 = vcmp.le.f32.partialorder %v5463_v0, %v5469_v32  ;;  %v5103_v11 = vmax.f32 %v5014_v9, %v5088_v54  ;;  %v7139_v0 = vpop.f32.mrf.mxu0  ;;  %v5812_v9 = vld [vmem:[%s8516_s21 + $0x18] sm:$0xff] }
0x1868   : > { %v6394_v4 = vsel %vm5480_vm10, 1.0, %v7346_v5  ;;  %v6393_v33 = vsel %vm5479_vm11, 1.0, %v7346_v5  ;;  %vm5966_vm11 = vcmask 516096  }
0x1869   : > { %v5491_v34 = vpack.c.bf16 %v6394_v4, %v6393_v33  ;;  %v5192_v21 = vmax.f32 %v5103_v11, %v5177_v55  ;;  %v5358_v28 = vpop.f32.mrf.mxu0 }
0x186a   : > { %v5478_v6 = vpop.xlane.xlu1 %5477  ;;  %v5475_v7 = vpop.xlane.xlu0 %5474 }
0x186b   : > { %vm5482_vm12 = vcmp.le.f32.partialorder %v5466_v23, %v5478_v6  ;;  %vm5481_vm13 = vcmp.le.f32.partialorder %v5465_v27, %v5475_v7  ;;  %7152 = vmatprep.mubr.msk.bf16.mxu0 %vm1309_vm3, %v5491_v34  ;;  %v5104_v23 = vmax.f32 %v5015_v12, %v5091_v53  ;;  %v5281_v25 = vmax.f32 %v5192_v21, %v5266_v61 }
0x186c   : > { %v6396_v3 = vsel %vm5482_vm12, 1.0, %v7346_v5  ;;  %v6395_v35 = vsel %vm5481_vm13, 1.0, %v7346_v5  ;;  %v5283_v27 = vmax.f32 %v5194_v14, %v7130_v59  ;;  %v5284_v34 = vmax.f32 %v5195_v30, %v7131_v52  ;;  %v5730_v52 = vld [vmem:[%s8514_s19 + $0x20] sm:$0xff] }
0x186d   : > { %v5492_v36 = vpack.c.bf16 %v6396_v3, %v6395_v35  ;;  %v5193_v31 = vmax.f32 %v5104_v23, %v5180_v51  ;;  %v5370_v32 = vmax.f32 %v5281_v25, %v5355_v8  ;;  %v6342_v3 = vld [vmem:[%s8573_s13] ss:$0 sm:$0xff]  ;;  %v5731_v51 = vld [vmem:[%s8514_s19 + $0x28] sm:$0xff]  ;;  %s7260_s13 = scalar_lea.vmem %s7259_s7, 32 }
0x186e   : > { %v5372_v4 = vmax.f32 %v5283_v27, %v7138_v58  ;;  %v4743_v38 = vadd.f32 %v6342_v3, %v4742_v24  ;;  %v5373_v39 = vmax.f32 %v5284_v34, %v7139_v0  ;;  %v4753_v46 = vadd.f32 %v6342_v3, %v4752_v42  ;;  %v5729_v58 = vld [vmem:[%s8514_s19 + $0x18] sm:$0xff]  ;;  %v5727_v8 = vld [vmem:[%s8514_s19 + $0x8] sm:$0xff]  ;;  %p7262_p1 = scmp.lt.s32.totalorder %s7260_s13, %s7254_s12 }
0x186f   : > { %7153 = vmatmul.mubr.msk.bf16.vlgmr.msra.gmra.mxu0 %vm1309_vm3, %v5492_v36  ;;  %v5282_v6 = vmax.f32 %v5193_v31, %v5269_v62  ;;  %v4748_v54 = vadd.f32 %v8328_v16, %v6342_v3  ;;  %v4758_v55 = vadd.f32 %v8330_v13, %v6342_v3  ;;  %v5733_v16 = vld [vmem:[%s8514_s19 + $0x38] sm:$0xff]  ;;  %v5732_v13 = vld [vmem:[%s8514_s19 + $0x30] sm:$0xff] }
0x1870   : > { %7186 = vmatprep.mubr.msk.f32.mxu0 %vm7347_vm2, %v7346_v5  ;;  %7171 = vmatpush3.msra.mxu0 %v5733_v16  ;;  %v5728_v62 = vld [vmem:[%s8514_s19 + $0x10] sm:$0xff]  ;;  %p7263_p2 = por %p7262_p1, %p7261_p0 }
0x1871   : > { %v5371_v1 = vmax.f32 %v5282_v6, %v5358_v28  ;;  %7172 = vmatprep.subr.mxu0 %v7346_v5 }
0x1872   : > { %7173 = vmatpush3.msra.mxu0 %v5732_v13  ;;  %p7264_p3 = pnand %p7263_p2, %p7257_p13 }
0x1873   : > { %7174 = vmatprep.subr.mxu0 %v7346_v5 }
0x1874   : > { %7175 = vmatpush3.msra.mxu0 %v5731_v51 }
0x1875   : > { %7176 = vmatprep.subr.mxu0 %v7346_v5 }
0x1876   : > { %7177 = vmatpush3.msra.mxu0 %v5730_v52 }
0x1877   : > { %7178 = vmatprep.subr.mxu0 %v7346_v5 }
0x1878   : > { %7179 = vmatpush3.msra.mxu0 %v5729_v58  ;;  %v5889_v58 = vld [vmem:[%s8518_s23 + $0x8] sm:$0xff] }
0x1879   : > { %7180 = vmatprep.subr.mxu0 %v7346_v5 }
0x187a   : > { %7181 = vmatpush3.msra.mxu0 %v5728_v62  ;;  %v5888_v62 = vld [vmem:[%s8518_s23] sm:$0xff] }
0x187b   : > { %7182 = vmatprep.subr.mxu0 %v7346_v5 }
0x187c   : > { %7183 = vmatpush3.msra.mxu0 %v5727_v8  ;;  %v5813_v8 = vld [vmem:[%s8517_s22] sm:$0x1] }
0x187d   : > { %7184 = vmatprep.subr.mxu0 %v7346_v5 }
0x18a2   : > { %v7146_v19 = vpop.f32.mrf.mxu1 }
0x18a3   : > { %v5461_v35 = vmax.f32 %v5372_v4, %v7146_v19  ;;  %v5726_v19 = vld [vmem:[%s8514_s19] sm:$0xff] }
0x18a4   : > { %v5444_v2 = vpop.f32.mrf.mxu1  ;;  %7185 = vmatpush3.msra.mxu0 %v5726_v19 }
0x18a5   : > { %v5459_v7 = vmax.f32 %v5370_v32, %v5444_v2 }
0x18a6   : > { %v7147_v29 = vpop.f32.mrf.mxu1 }
0x18a7   : > { %v5462_v48 = vmax.f32 %v5373_v39, %v7147_v29  ;;  %v5698_v39 = vadd.s32 24, %v7590_v18 }
0x18a8   : > { %v5447_v36 = vpop.f32.mrf.mxu1 }
0x18a9   : > { %v5460_v50 = vmax.f32 %v5371_v1, %v5447_v36 }
0x192f   : > { %v7154_v33 = vpop.f32.mrf.mxu0 }
0x1930   : > { %v5550_v63 = vmax.f32 %v5461_v35, %v7154_v33 }
0x1931   : > { %v5533_v37 = vpop.f32.mrf.mxu0 }
0x1932   : > { %v5548_v41 = vmax.f32 %v5459_v7, %v5533_v37  ;;  %v5554_v53 = vadd.f32 %v5550_v63, %v4753_v46 }
0x1933   : > { %v7155_v43 = vpop.f32.mrf.mxu0 }
0x1934   : > { %v5552_v44 = vadd.f32 %v5548_v41, %v4743_v38  ;;  %v5551_v56 = vmax.f32 %v5462_v48, %v7155_v43  ;;  %v5558_v61 = vmax.f32 %v5554_v53, 0.0  ;;  %v5697_v38 = vadd.s32 16, %v7590_v18 }
0x1935   : > { %v5536_v49 = vpop.f32.mrf.mxu0 }
0x1936   : > { %v5556_v47 = vmax.f32 %v5552_v44, 0.0  ;;  %v5549_v57 = vmax.f32 %v5460_v50, %v5536_v49  ;;  %v5555_v24 = vadd.f32 %v5551_v56, %v4758_v55 }
0x1938   : > { %v5553_v59 = vadd.f32 %v5549_v57, %v4748_v54  ;;  %7164 = vmatprep.mubr.msk.f32.mxu1 %vm1309_vm3, %v5556_v47  ;;  %v5559_v42 = vmax.f32 %v5555_v24, 0.0 }
0x193a   : > { %v5557_v60 = vmax.f32 %v5553_v59, 0.0 }
0x193c   : > { %7165 = vmatmul.mubr.msk.f32.vlgmr.msra.gmra.mxu1 %vm1309_vm3, %v5557_v60  ;;  %v5810_v60 = vld [vmem:[%s8516_s21 + $0x8] sm:$0xff] }
0x193d   : > { %7167 = vmatprep.mubr.msk.f32.mxu1 %vm1309_vm3, %v5558_v61  ;;  %7190 = vmatpush3.msra.mxu1 %v5812_v9  ;;  %v5809_v61 = vld [vmem:[%s8516_s21] sm:$0xff] }
0x193e   : > { %7191 = vmatprep.subr.mxu1 %v7346_v5 }
0x193f   : > { %7192 = vmatpush3.msra.mxu1 %v5811_v10 }
0x1940   : > { %7168 = vmatmul.mubr.msk.f32.gmra.mxu1 %vm1309_vm3, %v5559_v42  ;;  %7193 = vmatprep.subr.mxu1 %v7346_v5  ;;  %v5734_v42 = vld [vmem:[%s8515_s20] sm:$0x1] }
0x1941   : > { %7197 = vmatprep.mubr.msk.f32.mxu1 %vm7347_vm2, %v7346_v5  ;;  %7194 = vmatpush3.msra.mxu1 %v5810_v60 }
0x1942   : > { %7195 = vmatprep.subr.mxu1 %v7346_v5 }
0x1943   : > { %7196 = vmatpush3.msra.mxu1 %v5809_v61 }
0x1944   : > { %7200 = vmatprep.subr.mxu1 %v7346_v5 }
0x19fc   : > { %v7166_v11 = vpop.f32.mrf.mxu1 }
0x19fd   : > { %v5662_v0 = vadd.f32 %v7166_v11, %v8184_v40 }
0x19fe   : > { %v5642_v2 = vpop.f32.mrf.mxu1 }
0x19ff   : > { %v5673_v20 = vadd.f32 %v6403_v15, %v5662_v0  ;;  %v5661_v12 = vadd.f32 %v5642_v2, %v8188_v26 }
0x1a00   : > { %v7169_v21 = vpop.f32.mrf.mxu1 }
0x1a01   : > { %v5677_v14 = vmax.f32 %v5673_v20, 0.0  ;;  %v5672_v22 = vadd.f32 %v6403_v15, %v5661_v12  ;;  %v5664_v23 = vadd.f32 %v7169_v21, %v8190_v17 }
0x1a02   : > { %v5652_v25 = vpop.f32.mrf.mxu1 }
0x1a03   : > { %v5676_v27 = vmax.f32 %v5672_v22, 0.0  ;;  %v5675_v28 = vadd.f32 %v6403_v15, %v5664_v23  ;;  %v5663_v29 = vadd.f32 %v5652_v25, %v8193_v45  ;;  %v5682_v30 = vsel %vm5680_vm14, %v5677_v14, -inf }
0x1a04   : > { %v5696_v45 = vadd.s32 8, %v7590_v18 }
0x1a05   : > { %v5681_v31 = vsel %vm5680_vm14, %v5676_v27, -inf  ;;  %v5679_v40 = vmax.f32 %v5675_v28, 0.0  ;;  %v5674_v32 = vadd.f32 %v6403_v15, %v5663_v29 }
0x1a06   : > { %v5685_v4 = vmax.f32 %v5681_v31, %v5682_v30 }
0x1a07   : > { %v5678_v33 = vmax.f32 %v5674_v32, 0.0  ;;  %v5684_v26 = vsel %vm5680_vm14, %v5679_v40, -inf }
0x1a09   : > { %v5683_v34 = vsel %vm5680_vm14, %v5678_v33, -inf }
0x1a0a   : > { %v5686_v6 = vmax.f32 %v5683_v34, %v5684_v26 }
0x1a0c   : > { %v5687_v17 = vmax.f32 %v5685_v4, %v5686_v6 }
0x1a0e   : > { %v5688_v7 = vrot.slane %v5687_v17, 4 }
0x1a10   : > { %v5689_v3 = vmax.f32 %v5687_v17, %v5688_v7 }
0x1a12   : > { %v5690_v35 = vrot.slane %v5689_v3, 2 }
0x1a14   : > { %v5691_v36 = vmax.f32 %v5689_v3, %v5690_v35 }
0x1a16   : > { %v5692_v37 = vrot.slane %v5691_v36, 1 }
0x1a18   : > { %v5693_v1 = vmax.f32 %v5691_v36, %v5692_v37 }
0x1a1a   : > { %vm5699_vm15 = vcmp.ge.f32.partialorder %v5676_v27, %v5693_v1  ;;  %vm5700_vm0 = vcmp.ge.f32.partialorder %v5677_v14, %v5693_v1  ;;  %vm5701_vm1 = vcmp.ge.f32.partialorder %v5678_v33, %v5693_v1  ;;  %vm5702_vm4 = vcmp.ge.f32.partialorder %v5679_v40, %v5693_v1  ;;  %7187 = vmatmul.mubr.msk.f32.vlgmr.msra.gmra.mxu0 %vm5680_vm14, %v5693_v1 }
0x1a1b   : > { %v5703_v41 = vsel %vm5699_vm15, %v7590_v18, 32  ;;  %v5704_v63 = vsel %vm5700_vm0, %v5696_v45, 32  ;;  %v5705_v43 = vsel %vm5701_vm1, %v5697_v38, 32  ;;  %v5706_v48 = vsel %vm5702_vm4, %v5698_v39, 32 }
0x1a1c   : > { %v5707_v50 = vsel %vm5680_vm14, %v5703_v41, 2147483647  ;;  %v5708_v44 = vsel %vm5680_vm14, %v5704_v63, 2147483647  ;;  %v5709_v46 = vsel %vm5680_vm14, %v5705_v43, 2147483647 }
0x1a1d   : > { %v5710_v49 = vsel %vm5680_vm14, %v5706_v48, 2147483647  ;;  %vm5711_vm5 = vcmp.lt.s32.totalorder %v5707_v50, %v5708_v44 }
0x1a1e   : > { %v5712_v54 = vsel %vm5711_vm5, %v5707_v50, %v5708_v44  ;;  %vm5713_vm6 = vcmp.lt.s32.totalorder %v5709_v46, %v5710_v49 }
0x1a1f   : > { %v5714_v47 = vsel %vm5713_vm6, %v5709_v46, %v5710_v49 }
0x1a20   : > { %vm5715_vm7 = vcmp.lt.s32.totalorder %v5712_v54, %v5714_v47 }
0x1a21   : > { %v5716_v56 = vsel %vm5715_vm7, %v5712_v54, %v5714_v47 }
0x1a22   : > { %v5717_v57 = vrot.slane %v5716_v56, 4 }
0x1a24   : > { %vm5718_vm9 = vcmp.lt.s32.totalorder %v5716_v56, %v5717_v57 }
0x1a25   : > { %v5719_v18 = vsel %vm5718_vm9, %v5716_v56, %v5717_v57 }
0x1a26   : > { %v5720_v53 = vrot.slane %v5719_v18, 2 }
0x1a28   : > { %vm5721_vm10 = vcmp.lt.s32.totalorder %v5719_v18, %v5720_v53 }
0x1a29   : > { %v5722_v55 = vsel %vm5721_vm10, %v5719_v18, %v5720_v53 }
0x1a2a   : > { %v5723_v59 = vrot.slane %v5722_v55, 1 }
0x1a2c   : > { %vm5724_vm12 = vcmp.lt.s32.totalorder %v5722_v55, %v5723_v59 }
0x1a2d   : > { %v5725_v24 = vsel %vm5724_vm12, %v5722_v55, %v5723_v59 }
0x1a2e   : > { %5967 = vst.msk [vmem:[%s806_s10] sm:$0x1] %vm5966_vm11, %v5725_v24 }
0x1ada   : > { %v5804_v16 = vpop.f32.mrf.mxu0 }
0x1adb   : > { %v5805_v13 = vadd.f32 %v5804_v16, %v5734_v42 }
0x1adc   : > { %v7188_v51 = vpop.f32.mrf.mxu0 }
0x1add   : > { %v5808_v52 = vmax.f32 %v5805_v13, 0.0 }
0x1adf   : > { %7198 = vmatmul.mubr.msk.f32.vlgmr.msra.gmra.mxu1 %vm1309_vm3, %v5808_v52 }
0x1ae0   : > { %7204 = vmatprep.mubr.msk.f32.mxu1 %vm7347_vm2, %v7346_v5  ;;  %7201 = vmatpush3.msra.mxu1 %v5889_v58 }
0x1ae1   : > { %7202 = vmatprep.subr.mxu1 %v7346_v5 }
0x1ae2   : > { %7203 = vmatpush3.msra.mxu1 %v5888_v62 }
0x1b9f   : > { %v5883_v19 = vpop.f32.mrf.mxu1 }
0x1ba0   : > { %v5884_v9 = vadd.f32 %v5883_v19, %v5813_v8 }
0x1ba1   : > { %v7199_v10 = vpop.f32.mrf.mxu1 }
0x1ba2   : > { %v5887_v11 = vmax.f32 %v5884_v9, 0.0 }
0x1ba4   : > { %7205 = vmatmul.mubr.msk.f32.vlgmr.msra.gmra.mxu1 %vm2029_vm8, %v5887_v11 }
0x1ba5   : > { %7267 = shalt.err (!%p7264_p3)
}
0x1ba6   : > { %s7268_s14 = scalar_lea.hbm %s5996_s0, 16  ;;  %s7272_s4 = scalar_lea.hbm %s8521_s26, 32 }
0x1ba7   : > { %p7269_p4 = scmp.ne.s32.totalorder %s5996_s0, %s7268_s14  ;;  %p7273_p9 = scmp.lt.s32.totalorder %s5996_s0, %s8521_s26 }
0x1ba8   : > { %p7274_p10 = scmp.lt.s32.totalorder %s7272_s4, %s7268_s14 }
0x1ba9   : > { %p7270_p7 = pnand %p7269_p4, %p7524_p5 }
0x1baa   : > { %p7275_p11 = por %p7274_p10, %p7273_p9 }
0x1bab   : > { %p7271_p8 = pneg %p7270_p7 }
0x1bad   : > { %p7276_p12 = pnand %p7275_p11, %p7271_p8 }
0x1baf   : > { %7279 = shalt.err (!%p7276_p12)
}
0x1bb0   : > { %7208 = dma.vmem_to_hbm [thread:$0]  (%p7524_p5), %s5999_s9, 16, %s5996_s0, %s5973_s11   ;;  %v5890_v5 = vld [vmem:[%s8519_s24] sm:$0x1]  ;;  %vm5964_vm2 = vcmask 73728  }
0x1bb1   : > { %s800_s27 = scalar_lea.vmem [#allocation2], %s8403_s1  ;;  %s8574_s14 = sshll.u32 %s7507_s8, 4 }
0x1bb2   : > { %s5985_s7 = sshll.u32 %s800_s27, 4  ;;  %s8459_s5 = scalar_lea.hbm %s8520_s25, %s8574_s14  ;;  %s5986_s7 = int_to_ptr.vmem [resolvable:$true] %s5985_s7 }
0x1bb3   : > { %s5969_s10 = scalar_lea.sflag [#allocation3], %s8403_s1  ;;  %s7280_s11 = scalar_lea.vmem %s5986_s7, 16 }
0x1bb4   : > { %p7281_p13 = scmp.ne.s32.totalorder %s5986_s7, %s7280_s11  ;;  %s7350_s0 = smov [#allocation2]  }
0x1bb5   : > { %s7284_s9 = sshll.u32 %s7350_s0, 4  ;;  %s7285_s9 = int_to_ptr.vmem [resolvable:$false] %s7284_s9 }
0x1bb6   : > { %p7282_p0 = pnand %p7281_p13, %p7524_p5  ;;  %s7286_s4 = scalar_lea.vmem %s7285_s9, 32 }
0x1bb7   : > { %p7287_p2 = scmp.lt.s32.totalorder %s5986_s7, %s7285_s9  ;;  %p7288_p3 = scmp.lt.s32.totalorder %s7286_s4, %s7280_s11 }
0x1bb8   : > { %p7283_p1 = pneg %p7282_p0 }
0x1bb9   : > { %p7289_p4 = por %p7288_p3, %p7287_p2 }
0x1bbb   : > { %p7290_p7 = pnand %p7289_p4, %p7283_p1 }
0x1c64   : > { %v5960_v15 = vpop.f32.mrf.mxu1 }
0x1c65   : > { %v5961_v0 = vadd.f32 %v5960_v15, %v5890_v5 }
0x1c66   : > { %v7206_v2 = vpop.f32.mrf.mxu1 }
0x1c67   : > { %5965 = vst.msk [vmem:[%s800_s27] sm:$0x1] %vm5964_vm2, %v5961_v0 }
0x1c68   : > { %7293 = shalt.err (!%p7290_p7)
}
0x1c69   : > { %s7294_s8 = scalar_lea.hbm %s8459_s5, 16  ;;  %s7298_s13 = scalar_lea.hbm %s8520_s25, 32 }
0x1c6a   : > { %p7295_p8 = scmp.ne.s32.totalorder %s8459_s5, %s7294_s8  ;;  %p7299_p11 = scmp.lt.s32.totalorder %s8459_s5, %s8520_s25 }
0x1c6b   : > { %p7300_p12 = scmp.lt.s32.totalorder %s7298_s13, %s7294_s8 }
0x1c6c   : > { %p7296_p9 = pnand %p7295_p8, %p7524_p5 }
0x1c6d   : > { %p7301_p13 = por %p7300_p12, %p7299_p11 }
0x1c6e   : > { %p7297_p10 = pneg %p7296_p9 }
0x1c70   : > { %p7302_p0 = pnand %p7301_p13, %p7297_p10 }
0x1c72   : > { %7305 = shalt.err (!%p7302_p0)
}
0x1c73   : > { %7207 = dma.vmem_to_hbm [thread:$0]  (%p7524_p5), %s5986_s7, 16, %s8459_s5, %s5969_s10  }
0x1c74 PF: > { %s8575_s15 = sld [smem:[#allocation8_spill]]  ;;  %p7218_p1 = scmp.ge.s32.totalorder %s7344_s28, 2 }
0x1c76   : > { %p7212_p2 = pnand %p7218_p1, %p7528_p6 }
0x1c78   : > { %p7213_p3 = pneg %p7212_p2 }
0x1c7a   : > { %s6010_s11 = sand.u32 1, %s8575_s15  }
0x1c7b   : > { %s6011_s0 = scalar_lea.sflag [#allocation3], %s6010_s11 }
0x1c7c   : > { %7323 = dma.done.wait (%p7213_p3), %s6011_s0, 16  }
0x1c7d   : > { %7325 = vsyncadd (%p7213_p3), %s6011_s0, 4294967280  ;;  %s6019_s9 = scalar_lea.sflag [#allocation5], %s6010_s11 }
0x1c7e   : > { %7327 = dma.done.wait (%p7213_p3), %s6019_s9, 16  }
0x1c7f   : > { %7329 = vsyncadd (%p7213_p3), %s6019_s9, 4294967280  ;;  %s8577_s28 = sld [smem:[#allocation10_spill]]  ;;  %s8580_s27 = smov %s7336_s3 }
0x1c80   : > { %s8578_s2 = sld [smem:[#allocation9_spill]] }
0x1c81   : > { %s8579_s7 = sld [smem:[#allocation11_spill]] }
0x1c85   : > { %p40_p5 = scmp.ge.s32.totalorder %s8577_s28, 4  }
0x1c86   : > { %s8581_s3 = smov %s8578_s2 }
0x1c87   :  { %42 = sbr.rel (!%p40_p5) target bundleno = 22 (0x16), region = 175 }
0x1c8c   :  { %6023 = vsyncpa [#allocation3], 1 }
0x1c8d   :  { %6025 = vsyncpa [#allocation3 + $0x1], 1 }
0x1c8e   :  { %6026 = vsyncpa [#allocation5], 1 }
0x1c8f   :  { %6028 = vsyncpa [#allocation5 + $0x1], 1 }

</bundles_post_ra>
